<compile_context>
chip_gen: v7x
topology: tpu7x:2x2x1
jax: 0.10.0
libtpu: 0.0.40
codegen_flags: <defaults>
</compile_context>

<pallas_src>
import jax
import jax.numpy as jnp
from jax.experimental import pallas as pl
from jax.experimental.pallas import tpu as pltpu


# ----------------------------------------------------------------------------
# Pallas kernel: DiseaseDependentAttention + merged dr_fc/dme_fc classifier
# ----------------------------------------------------------------------------
def _sigmoid(x):
    # exp on the EUP; exact reciprocal for parity with the fp32 reference.
    return pl.reciprocal(1.0 + jnp.exp(-x))


def canet_head_kernel(pooled_ref,        # (Bblk, 2048) f32
                      w_att1_ref,        # (2048, 256) bf16  = [fc_dr[0] | fc_dme[0]]
                      w_dr2_ref,         # (128, 2048) bf16  = fc_dr[2]
                      w_dme2_ref,        # (128, 2048) bf16  = fc_dme[2]
                      w_cls_ref,         # (2048, 8)   bf16  = [dr_fc | dme_fc]
                      b_all_ref,         # (1, 4360)   f32   = packed biases
                      out_ref):          # (Bblk, 16)  f32
    pooled_f32 = pooled_ref[...]
    pooled_bf = pooled_f32.astype(jnp.bfloat16)

    hidden = w_dr2_ref.shape[0]          # 128
    in_f = w_dr2_ref.shape[1]            # 2048
    ncls = w_cls_ref.shape[1]            # 8 = num_dr + num_dme
    bb = pooled_f32.shape[0]

    # Packed bias layout: [b_dr1 | b_dme1 | b_dr2 | b_dme2 | b_drfc | b_dmefc]
    b_att1 = b_all_ref[:, 0:2 * hidden]
    b_dr2 = b_all_ref[:, 2 * hidden:2 * hidden + in_f]
    b_dme2 = b_all_ref[:, 2 * hidden + in_f:2 * hidden + 2 * in_f]
    b_cls = b_all_ref[:, 2 * hidden + 2 * in_f:2 * hidden + 2 * in_f + ncls]

    # Fused first attention layer (shared LHS): cols [0:H)=fc_dr, [H:2H)=fc_dme.
    h = jnp.dot(pooled_bf, w_att1_ref[...],
                preferred_element_type=jnp.float32) + b_att1
    h = jnp.maximum(h, 0.0)                                  # ReLU
    h_dr = h[:, :hidden].astype(jnp.bfloat16)
    h_dme = h[:, hidden:].astype(jnp.bfloat16)

    # dr_attention = fc_dr(dme_features), dme_attention = fc_dme(dr_features);
    # dr_features == dme_features == pooled, so both use the same LHS source.
    dr_att = _sigmoid(
        jnp.dot(h_dr, w_dr2_ref[...], preferred_element_type=jnp.float32)
        + b_dr2)
    dme_att = _sigmoid(
        jnp.dot(h_dme, w_dme2_ref[...], preferred_element_type=jnp.float32)
        + b_dme2)

    refined_dr = pooled_f32 * dr_att                         # f32 refine
    refined_dme = pooled_f32 * dme_att

    # Merged classifier: one matmul with M = 2*Bblk against the (2048, 8)
    # [dr_fc | dme_fc] weight; real dr logits live in cols 0:num_dr of the dr
    # rows, dme logits in cols num_dr:num_dr+num_dme of the dme rows.
    lhs = jnp.concatenate([refined_dr, refined_dme], axis=0).astype(jnp.bfloat16)
    logits = jnp.dot(lhs, w_cls_ref[...],
                     preferred_element_type=jnp.float32) + b_cls  # (2*Bblk, 8)

    # Combined output: cols [0:8) = dr-row logits, cols [8:16) = dme-row logits.
    out_ref[...] = jnp.concatenate([logits[:bb, :], logits[bb:, :]], axis=1)


def canet_head(pooled, hp_packed, num_classes_dr, num_classes_dme):
    """pooled: (B, 2048) fp32 pooled backbone features."""
    B, in_f = pooled.shape
    hidden = hp_packed["w_dr2"].shape[0]
    ncls = hp_packed["w_cls"].shape[1]
    nb = hp_packed["b_all"].shape[1]

    # Batch grid (parallel) so both v7x TensorCores engage once B grows;
    # with the toy B=2 this is a single grid step over the full batch.
    block_b = B if B <= 256 else 256
    grid = (pl.cdiv(B, block_b),)

    out = pl.pallas_call(
        canet_head_kernel,
        out_shape=jax.ShapeDtypeStruct((B, 2 * ncls), jnp.float32),
        grid=grid,
        in_specs=[
            pl.BlockSpec((block_b, in_f), lambda b: (b, 0)),      # pooled
            pl.BlockSpec((in_f, 2 * hidden), lambda b: (0, 0)),   # w_att1
            pl.BlockSpec((hidden, in_f), lambda b: (0, 0)),       # w_dr2
            pl.BlockSpec((hidden, in_f), lambda b: (0, 0)),       # w_dme2
            pl.BlockSpec((in_f, ncls), lambda b: (0, 0)),         # w_cls
            pl.BlockSpec((1, nb), lambda b: (0, 0)),              # packed biases
        ],
        out_specs=pl.BlockSpec((block_b, 2 * ncls), lambda b: (b, 0)),
        compiler_params=pltpu.CompilerParams(
            dimension_semantics=("parallel",)),
    )(pooled.astype(jnp.float32),
      hp_packed["w_att1"], hp_packed["w_dr2"], hp_packed["w_dme2"],
      hp_packed["w_cls"], hp_packed["b_all"])

    dr_out = out[:, :num_classes_dr]
    dme_out = out[:, ncls + num_classes_dr:ncls + num_classes_dr + num_classes_dme]
    return dr_out, dme_out


# ----------------------------------------------------------------------------
# Plain-JAX ResNet50 backbone (deterministic synthetic weights, eval-mode BN)
# ----------------------------------------------------------------------------
def _conv(x, w, stride=1, padding=0):
    return jax.lax.conv_general_dilated(
        x, w, (stride, stride),
        [(padding, padding), (padding, padding)],
        dimension_numbers=("NCHW", "OIHW", "NCHW"))


def _bn(x):
    # eval-mode BatchNorm with gamma=1, beta=0, running_mean=0, running_var=1
    return x * (1.0 / jnp.sqrt(1.0 + 1e-5))


def _he(key, shape):  # OIHW conv weight, He-normal init
    fan_in = shape[1] * shape[2] * shape[3]
    return jax.random.normal(key, shape, jnp.float32) * jnp.sqrt(2.0 / fan_in)


def make_backbone_params(key):
    keys = iter(jax.random.split(key, 256))
    params = {"conv1": _he(next(keys), (64, 3, 7, 7)), "blocks": []}
    cfg = [(64, 3, 1), (128, 4, 2), (256, 6, 2), (512, 3, 2)]
    in_ch = 64
    for planes, n_blocks, stride in cfg:
        for b in range(n_blocks):
            s = stride if b == 0 else 1
            blk = {
                "w1": _he(next(keys), (planes, in_ch, 1, 1)),
                "w2": _he(next(keys), (planes, planes, 3, 3)),
                "w3": _he(next(keys), (planes * 4, planes, 1, 1)),
                "stride": s,
            }
            if b == 0:
                blk["wd"] = _he(next(keys), (planes * 4, in_ch, 1, 1))
            params["blocks"].append(blk)
            in_ch = planes * 4
    return params


def backbone_forward(params, x):
    x = _conv(x, params["conv1"], stride=2, padding=3)
    x = jax.nn.relu(_bn(x))
    x = jax.lax.reduce_window(
        x, -jnp.inf, jax.lax.max,
        (1, 1, 3, 3), (1, 1, 2, 2),
        [(0, 0), (0, 0), (1, 1), (1, 1)])
    for blk in params["blocks"]:
        identity = x
        out = jax.nn.relu(_bn(_conv(x, blk["w1"])))
        out = jax.nn.relu(_bn(_conv(out, blk["w2"], stride=blk["stride"], padding=1)))
        out = _bn(_conv(out, blk["w3"]))
        if "wd" in blk:
            identity = _bn(_conv(x, blk["wd"], stride=blk["stride"]))
        x = jax.nn.relu(out + identity)
    return x  # (B, 2048, H/32, W/32)


# ----------------------------------------------------------------------------
# Head parameters (DiseaseDependentAttention + dr_fc + dme_fc)
# ----------------------------------------------------------------------------
def _linear_init(key, fan_in, fan_out):
    kw, kb = jax.random.split(key)
    bound = 1.0 / jnp.sqrt(fan_in)
    w = jax.random.uniform(kw, (fan_in, fan_out), jnp.float32, -bound, bound)
    b = jax.random.uniform(kb, (1, fan_out), jnp.float32, -bound, bound)
    return w, b


def make_head_params(key, in_features=2048, reduction_ratio=16,
                     num_classes_dr=5, num_classes_dme=3):
    hidden = in_features // reduction_ratio
    ks = jax.random.split(key, 6)
    hp = {}
    hp["w_dr1"], hp["b_dr1"] = _linear_init(ks[0], in_features, hidden)
    hp["w_dr2"], hp["b_dr2"] = _linear_init(ks[1], hidden, in_features)
    hp["w_dme1"], hp["b_dme1"] = _linear_init(ks[2], in_features, hidden)
    hp["w_dme2"], hp["b_dme2"] = _linear_init(ks[3], hidden, in_features)
    hp["w_drfc"], hp["b_drfc"] = _linear_init(ks[4], in_features, num_classes_dr)
    hp["w_dmefc"], hp["b_dmefc"] = _linear_init(ks[5], in_features, num_classes_dme)
    return hp


def pack_head_params(hp):
    """One-time packing:
      - fuse the two first-layer attention weights -> (2048, 256) bf16
      - merge the two classifier weights at true width -> (2048, 8) bf16
      - pack all five biases into one (1, 4360) fp32 array
    Biases stay fp32 and are added to the f32 matmul accumulators."""
    ndr = hp["w_drfc"].shape[1]
    ndme = hp["w_dmefc"].shape[1]
    packed = {
        "w_att1": jnp.concatenate([hp["w_dr1"], hp["w_dme1"]],
                                  axis=1).astype(jnp.bfloat16),        # (2048, 256)
        "w_dr2": hp["w_dr2"].astype(jnp.bfloat16),                      # (128, 2048)
        "w_dme2": hp["w_dme2"].astype(jnp.bfloat16),                    # (128, 2048)
        "w_cls": jnp.concatenate([hp["w_drfc"], hp["w_dmefc"]],
                                 axis=1).astype(jnp.bfloat16),          # (2048, 8)
        "b_all": jnp.concatenate([hp["b_dr1"], hp["b_dme1"],
                                  hp["b_dr2"], hp["b_dme2"],
                                  hp["b_drfc"], hp["b_dmefc"]], axis=1),  # (1, 4360)
    }
    return packed, ndr, ndme


def canet_forward(x, backbone_params, head_packed, num_dr, num_dme):
    feat = backbone_forward(backbone_params, x)            # (B, 2048, h, w)
    # AdaptiveAvgPool2d((1,1)) + flatten in plain JAX; the Pallas head only
    # DMAs the pooled (B, 2048) vector.
    pooled = jnp.mean(feat, axis=(2, 3))                   # (B, 2048)
    return canet_head(pooled, head_packed, num_dr, num_dme)


# ----------------------------------------------------------------------------
if __name__ == "__main__":
    key = jax.random.PRNGKey(0)
    k_x, k_bb, k_head = jax.random.split(key, 3)

    # small image batch: (B=2, C=3, H=64, W=64) -> backbone features (2, 2048, 2, 2)
    x = jax.random.normal(k_x, (2, 3, 64, 64), jnp.float32)

    # TODO(synk): resnet50(pretrained=True) checkpoint not loadable here;
    # backbone uses deterministic synthetic He-init weights instead.
    backbone_params = make_backbone_params(k_bb)
    head_params = make_head_params(k_head)
    head_packed, n_dr, n_dme = pack_head_params(head_params)

    dr_out, dme_out = canet_forward(x, backbone_params, head_packed, n_dr, n_dme)
    jax.block_until_ready((dr_out, dme_out))

    assert dr_out.shape == (2, 5) and dme_out.shape == (2, 3)
    assert bool(jnp.all(jnp.isfinite(dr_out))) and bool(jnp.all(jnp.isfinite(dme_out)))
    print("KERNEL_OK")
</pallas_src>

<mosaic_0001>
module attributes {stable_mosaic.version = 11 : i64} {
  func.func @canet_head_kernel(%arg0: i32, %arg1: memref<2x2048xf32, #tpu.memory_space<vmem>>, %arg2: memref<2048x256xbf16, #tpu.memory_space<vmem>>, %arg3: memref<128x2048xbf16, #tpu.memory_space<vmem>>, %arg4: memref<128x2048xbf16, #tpu.memory_space<vmem>>, %arg5: memref<2048x8xbf16, #tpu.memory_space<vmem>>, %arg6: memref<1x4360xf32, #tpu.memory_space<vmem>>, %arg7: memref<2x16xf32, #tpu.memory_space<vmem>>) attributes {dimension_semantics = [#tpu.dimension_semantics<parallel>], iteration_bounds = array<i64: 1>, scalar_prefetch = 0 : i64, scratch_operands = 0 : i64, tpu.core_type = #tpu.core_type<tc>, window_params = [{transform_indices = @transform_0, window_bounds = array<i64: 2, 2048>}, {pipeline_mode = #tpu.pipeline_mode<synchronous>, transform_indices = @transform_1, window_bounds = array<i64: 2048, 256>}, {pipeline_mode = #tpu.pipeline_mode<synchronous>, transform_indices = @transform_2, window_bounds = array<i64: 128, 2048>}, {pipeline_mode = #tpu.pipeline_mode<synchronous>, transform_indices = @transform_3, window_bounds = array<i64: 128, 2048>}, {pipeline_mode = #tpu.pipeline_mode<synchronous>, transform_indices = @transform_4, window_bounds = array<i64: 2048, 8>}, {pipeline_mode = #tpu.pipeline_mode<synchronous>, transform_indices = @transform_5, window_bounds = array<i64: 1, 4360>}, {transform_indices = @transform_6, window_bounds = array<i64: 2, 16>}]} {
    %c0 = arith.constant 0 : index
    %c0_0 = arith.constant 0 : index
    %0 = vector.load %arg1[%c0, %c0_0] : memref<2x2048xf32, #tpu.memory_space<vmem>>, vector<2x2048xf32>
    %1 = arith.truncf %0 : vector<2x2048xf32> to vector<2x2048xbf16>
    %c0_1 = arith.constant 0 : index
    %c0_2 = arith.constant 0 : index
    %2 = vector.load %arg6[%c0_1, %c0_2] : memref<1x4360xf32, #tpu.memory_space<vmem>>, vector<1x256xf32>
    %c0_3 = arith.constant 0 : index
    %c256 = arith.constant 256 : index
    %3 = vector.load %arg6[%c0_3, %c256] : memref<1x4360xf32, #tpu.memory_space<vmem>>, vector<1x2048xf32>
    %c0_4 = arith.constant 0 : index
    %c2304 = arith.constant 2304 : index
    %4 = vector.load %arg6[%c0_4, %c2304] : memref<1x4360xf32, #tpu.memory_space<vmem>>, vector<1x2048xf32>
    %c0_5 = arith.constant 0 : index
    %c4352 = arith.constant 4352 : index
    %5 = vector.load %arg6[%c0_5, %c4352] : memref<1x4360xf32, #tpu.memory_space<vmem>>, vector<1x8xf32>
    %c0_6 = arith.constant 0 : index
    %c0_7 = arith.constant 0 : index
    %6 = vector.load %arg2[%c0_6, %c0_7] : memref<2048x256xbf16, #tpu.memory_space<vmem>>, vector<2048x256xbf16>
    %cst = arith.constant dense<0.000000e+00> : vector<2x256xf32>
    %7 = tpu.matmul %1, %6, %cst {dimension_numbers = #tpu.dot_dimension_numbers<[1], [0], [0], [1], [0, 0, 1, 1], [], []>} : vector<2x2048xbf16>, vector<2048x256xbf16>, vector<2x256xf32> -> vector<2x256xf32>
    %8 = vector.broadcast %2 : vector<1x256xf32> to vector<2x256xf32>
    %9 = arith.addf %7, %8 : vector<2x256xf32>
    %cst_8 = arith.constant 0.000000e+00 : f32
    %10 = vector.broadcast %cst_8 : f32 to vector<2x256xf32>
    %11 = arith.maximumf %9, %10 : vector<2x256xf32>
    %12 = vector.extract_strided_slice %11 {offsets = [0, 0], sizes = [2, 128], strides = [1, 1]} : vector<2x256xf32> to vector<2x128xf32>
    %13 = arith.truncf %12 : vector<2x128xf32> to vector<2x128xbf16>
    %14 = vector.extract_strided_slice %11 {offsets = [0, 128], sizes = [2, 128], strides = [1, 1]} : vector<2x256xf32> to vector<2x128xf32>
    %15 = arith.truncf %14 : vector<2x128xf32> to vector<2x128xbf16>
    %c0_9 = arith.constant 0 : index
    %c0_10 = arith.constant 0 : index
    %16 = vector.load %arg3[%c0_9, %c0_10] : memref<128x2048xbf16, #tpu.memory_space<vmem>>, vector<128x2048xbf16>
    %cst_11 = arith.constant dense<0.000000e+00> : vector<2x2048xf32>
    %17 = tpu.matmul %13, %16, %cst_11 {dimension_numbers = #tpu.dot_dimension_numbers<[1], [0], [0], [1], [0, 0, 1, 1], [], []>} : vector<2x128xbf16>, vector<128x2048xbf16>, vector<2x2048xf32> -> vector<2x2048xf32>
    %18 = vector.broadcast %3 : vector<1x2048xf32> to vector<2x2048xf32>
    %19 = arith.addf %17, %18 : vector<2x2048xf32>
    %cst_12 = arith.constant 0.000000e+00 : f32
    %20 = vector.broadcast %cst_12 : f32 to vector<2x2048xf32>
    %21 = arith.subf %20, %19 : vector<2x2048xf32>
    %22 = math.exp %21 : vector<2x2048xf32>
    %cst_13 = arith.constant 1.000000e+00 : f32
    %23 = vector.broadcast %cst_13 : f32 to vector<2x2048xf32>
    %24 = arith.addf %23, %22 : vector<2x2048xf32>
    %25 = tpu.reciprocal %24 : vector<2x2048xf32> -> vector<2x2048xf32>
    %c0_14 = arith.constant 0 : index
    %c0_15 = arith.constant 0 : index
    %26 = vector.load %arg4[%c0_14, %c0_15] : memref<128x2048xbf16, #tpu.memory_space<vmem>>, vector<128x2048xbf16>
    %cst_16 = arith.constant dense<0.000000e+00> : vector<2x2048xf32>
    %27 = tpu.matmul %15, %26, %cst_16 {dimension_numbers = #tpu.dot_dimension_numbers<[1], [0], [0], [1], [0, 0, 1, 1], [], []>} : vector<2x128xbf16>, vector<128x2048xbf16>, vector<2x2048xf32> -> vector<2x2048xf32>
    %28 = vector.broadcast %4 : vector<1x2048xf32> to vector<2x2048xf32>
    %29 = arith.addf %27, %28 : vector<2x2048xf32>
    %cst_17 = arith.constant 0.000000e+00 : f32
    %30 = vector.broadcast %cst_17 : f32 to vector<2x2048xf32>
    %31 = arith.subf %30, %29 : vector<2x2048xf32>
    %32 = math.exp %31 : vector<2x2048xf32>
    %cst_18 = arith.constant 1.000000e+00 : f32
    %33 = vector.broadcast %cst_18 : f32 to vector<2x2048xf32>
    %34 = arith.addf %33, %32 : vector<2x2048xf32>
    %35 = tpu.reciprocal %34 : vector<2x2048xf32> -> vector<2x2048xf32>
    %36 = arith.mulf %0, %25 : vector<2x2048xf32>
    %37 = arith.mulf %0, %35 : vector<2x2048xf32>
    %38 = tpu.concatenate %36, %37 in 0 : vector<2x2048xf32>, vector<2x2048xf32> -> vector<4x2048xf32>
    %39 = arith.truncf %38 : vector<4x2048xf32> to vector<4x2048xbf16>
    %c0_19 = arith.constant 0 : index
    %c0_20 = arith.constant 0 : index
    %40 = vector.load %arg5[%c0_19, %c0_20] : memref<2048x8xbf16, #tpu.memory_space<vmem>>, vector<2048x8xbf16>
    %cst_21 = arith.constant dense<0.000000e+00> : vector<4x8xf32>
    %41 = tpu.matmul %39, %40, %cst_21 {dimension_numbers = #tpu.dot_dimension_numbers<[1], [0], [0], [1], [0, 0, 1, 1], [], []>} : vector<4x2048xbf16>, vector<2048x8xbf16>, vector<4x8xf32> -> vector<4x8xf32>
    %42 = vector.broadcast %5 : vector<1x8xf32> to vector<4x8xf32>
    %43 = arith.addf %41, %42 : vector<4x8xf32>
    %44 = vector.extract_strided_slice %43 {offsets = [0, 0], sizes = [2, 8], strides = [1, 1]} : vector<4x8xf32> to vector<2x8xf32>
    %45 = vector.extract_strided_slice %43 {offsets = [2, 0], sizes = [2, 8], strides = [1, 1]} : vector<4x8xf32> to vector<2x8xf32>
    %46 = tpu.concatenate %44, %45 in 1 : vector<2x8xf32>, vector<2x8xf32> -> vector<2x16xf32>
    %c0_22 = arith.constant 0 : index
    %c0_23 = arith.constant 0 : index
    %47 = vector.load %arg7[%c0_22, %c0_23] : memref<2x16xf32, #tpu.memory_space<vmem>>, vector<2x16xf32>
    tpu.vector_store %arg7[%c0_22, %c0_23], %46 {strides = array<i32>} : memref<2x16xf32, #tpu.memory_space<vmem>>, vector<2x16xf32>,
    return
  }
  func.func @transform_0(%arg0: i32) -> (i32, i32) {
    %c0_i32 = arith.constant 0 : i32
    %c0_i32_0 = arith.constant 0 : i32
    return %arg0, %c0_i32 : i32, i32
  }
  func.func @transform_1(%arg0: i32) -> (i32, i32) {
    %c0_i32 = arith.constant 0 : i32
    %c0_i32_0 = arith.constant 0 : i32
    %c0_i32_1 = arith.constant 0 : i32
    return %c0_i32, %c0_i32_0 : i32, i32
  }
  func.func @transform_2(%arg0: i32) -> (i32, i32) {
    %c0_i32 = arith.constant 0 : i32
    %c0_i32_0 = arith.constant 0 : i32
    %c0_i32_1 = arith.constant 0 : i32
    return %c0_i32, %c0_i32_0 : i32, i32
  }
  func.func @transform_3(%arg0: i32) -> (i32, i32) {
    %c0_i32 = arith.constant 0 : i32
    %c0_i32_0 = arith.constant 0 : i32
    %c0_i32_1 = arith.constant 0 : i32
    return %c0_i32, %c0_i32_0 : i32, i32
  }
  func.func @transform_4(%arg0: i32) -> (i32, i32) {
    %c0_i32 = arith.constant 0 : i32
    %c0_i32_0 = arith.constant 0 : i32
    %c0_i32_1 = arith.constant 0 : i32
    return %c0_i32, %c0_i32_0 : i32, i32
  }
  func.func @transform_5(%arg0: i32) -> (i32, i32) {
    %c0_i32 = arith.constant 0 : i32
    %c0_i32_0 = arith.constant 0 : i32
    %c0_i32_1 = arith.constant 0 : i32
    return %c0_i32, %c0_i32_0 : i32, i32
  }
  func.func @transform_6(%arg0: i32) -> (i32, i32) {
    %c0_i32 = arith.constant 0 : i32
    %c0_i32_0 = arith.constant 0 : i32
    return %arg0, %c0_i32 : i32, i32
  }
}

</mosaic_0001>

<bundles_post_ra>
// kernel: tpu_custom_call.1
= control target key start
LH: loop header
LB: loop body
LE: loop exit
PB: predicated region body
PF: predicated region fallthrough
CT: control target
= control target key end

     0   :  { %11 = vsyncpa [#allocation3], 0  ;;  %s9141_s0 = inlined_call_operand.vmem [shape: f32[2,2048], index: 0, kind: input, shape index: {}]   ;;  %s9142_s1 = inlined_call_operand.hbm [shape: bf16[2048,256], index: 1, kind: input, shape index: {}]   ;;  %s9143_s2 = inlined_call_operand.vmem [shape: bf16[128,2048], index: 2, kind: input, shape index: {}]   ;;  %s9144_s3 = inlined_call_operand.hbm [shape: bf16[128,2048], index: 3, kind: input, shape index: {}]   ;;  %s9145_s4 = inlined_call_operand.vmem [shape: bf16[2048,8], index: 4, kind: input, shape index: {}]   ;;  %s9146_s5 = inlined_call_operand.vmem [shape: f32[1,4360], index: 5, kind: input, shape index: {}]   ;;  %s9147_s6 = inlined_call_operand.hbm [shape: f32[2,16], index: 6, kind: output, shape index: {}]  }
   0x1   :  { %12 = vsyncpa [#allocation6], 0 }
   0x2   :  { %13 = vsyncpa [#allocation4], 0  ;;  %s7906_s21 = smov [#allocation2]   ;;  %s7834_s25 = scalar_lea.hbm %s9142_s1, 32768 }
   0x3   :  { %s21_s22 = sshll.u32 %s7906_s21, 4  ;;  %p7835_p0 = scmp.ne.s32.totalorder %s9142_s1, %s7834_s25  ;;  %s22_s22 = int_to_ptr.vmem [resolvable:$true] %s21_s22 }
   0x4   :  { %p7838_p1 = scmp.lt.u32.totalorder %s7834_s25, %s9142_s1 }
   0x6   :  { %p7840_p2 = pnand %p7838_p1, %p7835_p0 }
   0x8   :  { %7843 = shalt.err (!%p7840_p2)
}
   0x9   :  { %s7844_s30 = scalar_lea.vmem %s22_s22, 32768  ;;  %p7849_p4 = scmp.lt.s32.totalorder %s22_s22, %s22_s22 }
   0xa   :  { %p7845_p3 = scmp.ne.s32.totalorder %s22_s22, %s7844_s30  ;;  %p7850_p5 = scmp.lt.s32.totalorder %s7844_s30, %s7844_s30 }
   0xc   :  { %p7851_p6 = por %p7850_p5, %p7849_p4 }
   0xe   :  { %p7852_p7 = pnand %p7851_p6, %p7845_p3 }
  0x10   :  { %7855 = shalt.err (!%p7852_p7)
}
  0x11   :  { %s7907_s7 = smov 128   ;;  %s7908_s8 = smov 8  }
  0x12   :  { %27 = dma.hbm_to_vmem [thread:$0]  %s9142_s1, 32768, %s22_s22, [#allocation3], %s7907_s7, %s7907_s7, %s7908_s8  }
  0x13   :  { %s7909_s11 = smov [#allocation5]   ;;  %s7856_s15 = scalar_lea.hbm %s9144_s3, 16384 }
  0x14   :  { %s35_s12 = sshll.u32 %s7909_s11, 4  ;;  %p7857_p8 = scmp.ne.s32.totalorder %s9144_s3, %s7856_s15  ;;  %s36_s12 = int_to_ptr.vmem [resolvable:$true] %s35_s12 }
  0x15   :  { %p7860_p9 = scmp.lt.u32.totalorder %s7856_s15, %s9144_s3 }
  0x17   :  { %p7862_p10 = pnand %p7860_p9, %p7857_p8 }
  0x19   :  { %7865 = shalt.err (!%p7862_p10)
}
  0x1a   :  { %s7866_s20 = scalar_lea.vmem %s36_s12, 16384  ;;  %p7871_p12 = scmp.lt.s32.totalorder %s36_s12, %s36_s12 }
  0x1b   :  { %p7867_p11 = scmp.ne.s32.totalorder %s36_s12, %s7866_s20  ;;  %p7872_p13 = scmp.lt.s32.totalorder %s7866_s20, %s7866_s20 }
  0x1d   :  { %p7873_p0 = por %p7872_p13, %p7871_p12 }
  0x1f   :  { %p7874_p1 = pnand %p7873_p0, %p7867_p11 }
  0x21   :  { %7877 = shalt.err (!%p7874_p1)
}
  0x22   :  { %s7910_s1 = smov 1024   ;;  %s7911_s21 = smov 64  }
  0x23   :  { %41 = dma.hbm_to_vmem [thread:$0]  %s9144_s3, 16384, %s36_s12, [#allocation6], %s7910_s1, %s7910_s1, %s7911_s21  }
  0x24   :  { %7900 = dma.done.wait [#allocation3], 32768  }
  0x25   :  { %7901 = vsyncadd [#allocation3], 4294934528 }
  0x26   :  { %7902 = dma.done.wait [#allocation6], 16384  }
  0x27   :  { %7903 = vsyncadd [#allocation6], 4294950912  ;;  %v7186_v0 = vld [vmem:[#allocation2 + $0x4] ss:$8 sps:$4 sm:$0xff]   ;;  %v7188_v1 = vld [vmem:[#allocation2] ss:$8 sps:$4 sm:$0xff]   ;;  %v65_v9 = vlaneseq }
  0x28   :  { %1714 = vmatprep.subr.bf16.mxu0 %v7186_v0  ;;  %v7189_v2 = vld [vmem:[#allocation2 + $0x14] ss:$8 sps:$4 sm:$0xff]   ;;  %v7191_v3 = vld [vmem:[#allocation2 + $0x10] ss:$8 sps:$4 sm:$0xff]   ;;  %v7192_v4 = vld [vmem:[#allocation2 + $0x24] ss:$8 sps:$4 sm:$0xff]  }
  0x29   :  { %1715 = vmatpush1.bf16.msra.mxu0 %v7188_v1  ;;  %v7194_v5 = vld [vmem:[#allocation2 + $0x20] ss:$8 sps:$4 sm:$0xff]   ;;  %v7195_v6 = vld [vmem:[#allocation2 + $0x34] ss:$8 sps:$4 sm:$0xff]   ;;  %v7912_v7 = vmov 1983009808  }
  0x2a   :  { %1716 = vmatprep.subr.bf16.mxu0 %v7189_v2  ;;  %v63_v8 = vunpack.c.l.s4 %v7912_v7  ;;  %v7197_v10 = vld [vmem:[#allocation2 + $0x30] ss:$8 sps:$4 sm:$0xff]   ;;  %v7198_v11 = vld [vmem:[#allocation2 + $0x44] ss:$8 sps:$4 sm:$0xff]   ;;  %v7975_v13 = vshrl.u32 %v65_v9, 7  ;;  %vm4922_vm0 = vcmask 1041408  }
  0x2b   :  { %v7200_v14 = vld [vmem:[#allocation2 + $0x40] ss:$8 sps:$4 sm:$0xff]   ;;  %v7201_v15 = vld [vmem:[#allocation2 + $0x54] ss:$8 sps:$4 sm:$0xff]   ;;  %v7203_v17 = vld [vmem:[#allocation2 + $0x50] ss:$8 sps:$4 sm:$0xff]  }
  0x2c   :  { %v64_v12 = vunpack.c.0.s8 %v63_v8  ;;  %v7204_v18 = vld [vmem:[#allocation2 + $0x64] ss:$8 sps:$4 sm:$0xff]   ;;  %v7206_v21 = vld [vmem:[#allocation2 + $0x60] ss:$8 sps:$4 sm:$0xff]   ;;  %v7207_v22 = vld [vmem:[#allocation2 + $0x74] ss:$8 sps:$4 sm:$0xff]  }
  0x2d   :  { %1717 = vmatpush1.bf16.msra.mxu0 %v7191_v3  ;;  %v53_v19 = vld [vmem:[%s9141_s0] sm:$0xff]  ;;  %v7209_v25 = vld [vmem:[#allocation2 + $0x70] ss:$8 sps:$4 sm:$0xff]   ;;  %v7213_v28 = vld [vmem:[#allocation2 + $0x94] ss:$8 sps:$4 sm:$0xff]   ;;  %vm6310_vm1 = vcmask 64512  }
  0x2e   :  { %1718 = vmatprep.subr.bf16.mxu0 %v7192_v4  ;;  %v7978_v16 = vsub.s32 %v64_v12, %v7975_v13  ;;  %v7210_v26 = vld [vmem:[#allocation2 + $0x84] ss:$8 sps:$4 sm:$0xff]   ;;  %v7212_v27 = vld [vmem:[#allocation2 + $0x80] ss:$8 sps:$4 sm:$0xff]   ;;  %v7215_v29 = vld [vmem:[#allocation2 + $0x90] ss:$8 sps:$4 sm:$0xff]   ;;  %v61_v38 = vcombine.high %v53_v19, %v53_v19 }
  0x2f   :  { %v7216_v30 = vld [vmem:[#allocation2 + $0xa4] ss:$8 sps:$4 sm:$0xff]   ;;  %v7218_v31 = vld [vmem:[#allocation2 + $0xa0] ss:$8 sps:$4 sm:$0xff]   ;;  %v7219_v32 = vld [vmem:[#allocation2 + $0xb4] ss:$8 sps:$4 sm:$0xff]  }
  0x30   :  { %v68_v20 = vrot.slane %v53_v19, %v7978_v16  ;;  %v7221_v33 = vld [vmem:[#allocation2 + $0xb0] ss:$8 sps:$4 sm:$0xff]   ;;  %v7222_v34 = vld [vmem:[#allocation2 + $0xc4] ss:$8 sps:$4 sm:$0xff]   ;;  %v7224_v35 = vld [vmem:[#allocation2 + $0xc0] ss:$8 sps:$4 sm:$0xff]   ;;  %v7985_v41 = vrot.slane %v61_v38, %v7978_v16 }
  0x31   :  { %1719 = vmatpush1.bf16.msra.mxu0 %v7194_v5  ;;  %v7225_v36 = vld [vmem:[#allocation2 + $0xd4] ss:$8 sps:$4 sm:$0xff]   ;;  %v7227_v37 = vld [vmem:[#allocation2 + $0xd0] ss:$8 sps:$4 sm:$0xff]   ;;  %v7228_v39 = vld [vmem:[#allocation2 + $0xe4] ss:$8 sps:$4 sm:$0xff]  }
  0x32   :  { %1720 = vmatprep.subr.bf16.mxu0 %v7195_v6  ;;  %v76_v23 = vcombine.high %v68_v20, %v68_v20  ;;  %v7230_v40 = vld [vmem:[#allocation2 + $0xe0] ss:$8 sps:$4 sm:$0xff]   ;;  %v7231_v42 = vld [vmem:[#allocation2 + $0xf4] ss:$8 sps:$4 sm:$0xff]   ;;  %v7233_v43 = vld [vmem:[#allocation2 + $0xf0] ss:$8 sps:$4 sm:$0xff]   ;;  %v77_v44 = vcombine.high %v7985_v41, %v7985_v41  ;;  %v145_v46 = vpack.c.bf16 %v68_v20, %v68_v20 }
  0x33   :  { %v7236_v45 = vld [vmem:[#allocation2 + $0x104] ss:$8 sps:$4 sm:$0xff]   ;;  %v7234_v47 = vld [vmem:[#allocation2 + $0x100] ss:$8 sps:$4 sm:$0xff]   ;;  %v7239_v49 = vld [vmem:[#allocation2 + $0x114] ss:$8 sps:$4 sm:$0xff]  }
  0x34   :  { %v146_v24 = vpack.c.bf16 %v76_v23, %v76_v23  ;;  %v148_v48 = vpack.c.bf16 %v77_v44, %v77_v44  ;;  %v7237_v50 = vld [vmem:[#allocation2 + $0x110] ss:$8 sps:$4 sm:$0xff]   ;;  %v7242_v51 = vld [vmem:[#allocation2 + $0x124] ss:$8 sps:$4 sm:$0xff]   ;;  %v7240_v52 = vld [vmem:[#allocation2 + $0x120] ss:$8 sps:$4 sm:$0xff]  }
  0x35   :  { %1721 = vmatpush1.bf16.msra.mxu0 %v7197_v10  ;;  %v7245_v53 = vld [vmem:[#allocation2 + $0x134] ss:$8 sps:$4 sm:$0xff]   ;;  %v7243_v54 = vld [vmem:[#allocation2 + $0x130] ss:$8 sps:$4 sm:$0xff]   ;;  %v7248_v55 = vld [vmem:[#allocation2 + $0x144] ss:$8 sps:$4 sm:$0xff]  }
  0x36   :  { %1722 = vmatprep.subr.bf16.mxu0 %v7198_v11  ;;  %1746 = vmatprep.mubr.bf16.mxu0 %v146_v24  ;;  %v7246_v56 = vld [vmem:[#allocation2 + $0x140] ss:$8 sps:$4 sm:$0xff]   ;;  %v7251_v57 = vld [vmem:[#allocation2 + $0x154] ss:$8 sps:$4 sm:$0xff]   ;;  %v7249_v58 = vld [vmem:[#allocation2 + $0x150] ss:$8 sps:$4 sm:$0xff]  }
  0x37   :  { %v7254_v59 = vld [vmem:[#allocation2 + $0x164] ss:$8 sps:$4 sm:$0xff]   ;;  %v7252_v60 = vld [vmem:[#allocation2 + $0x160] ss:$8 sps:$4 sm:$0xff]   ;;  %v7257_v61 = vld [vmem:[#allocation2 + $0x174] ss:$8 sps:$4 sm:$0xff]  }
  0x38   :  { %v7255_v62 = vld [vmem:[#allocation2 + $0x170] ss:$8 sps:$4 sm:$0xff]   ;;  %v7260_v63 = vld [vmem:[#allocation2 + $0x184] ss:$8 sps:$4 sm:$0xff]   ;;  %v7258_v0 = vld [vmem:[#allocation2 + $0x180] ss:$8 sps:$4 sm:$0xff]  }
  0x39   :  { %1723 = vmatpush1.bf16.msra.mxu0 %v7200_v14  ;;  %v7263_v1 = vld [vmem:[#allocation2 + $0x194] ss:$8 sps:$4 sm:$0xff]   ;;  %v7261_v2 = vld [vmem:[#allocation2 + $0x190] ss:$8 sps:$4 sm:$0xff]   ;;  %v7266_v3 = vld [vmem:[#allocation2 + $0x1a4] ss:$8 sps:$4 sm:$0xff]  }
  0x3a   :  { %1724 = vmatprep.subr.bf16.mxu0 %v7201_v15  ;;  %v7264_v4 = vld [vmem:[#allocation2 + $0x1a0] ss:$8 sps:$4 sm:$0xff]   ;;  %v7269_v5 = vld [vmem:[#allocation2 + $0x1b4] ss:$8 sps:$4 sm:$0xff]   ;;  %v7267_v6 = vld [vmem:[#allocation2 + $0x1b0] ss:$8 sps:$4 sm:$0xff]  }
  0x3b   :  { %v7272_v7 = vld [vmem:[#allocation2 + $0x1c4] ss:$8 sps:$4 sm:$0xff]   ;;  %v7270_v8 = vld [vmem:[#allocation2 + $0x1c0] ss:$8 sps:$4 sm:$0xff]   ;;  %v7275_v9 = vld [vmem:[#allocation2 + $0x1d4] ss:$8 sps:$4 sm:$0xff]  }
  0x3c   :  { %v7273_v10 = vld [vmem:[#allocation2 + $0x1d0] ss:$8 sps:$4 sm:$0xff]   ;;  %v7278_v11 = vld [vmem:[#allocation2 + $0x1e4] ss:$8 sps:$4 sm:$0xff]   ;;  %v7276_v14 = vld [vmem:[#allocation2 + $0x1e0] ss:$8 sps:$4 sm:$0xff]  }
  0x3d   :  { %1725 = vmatpush1.bf16.msra.mxu0 %v7203_v17  ;;  %v7992_v12 = vld [vmem:[%s9141_s0 + $0x8] sm:$0xff]  ;;  %v7281_v15 = vld [vmem:[#allocation2 + $0x1f4] ss:$8 sps:$4 sm:$0xff]   ;;  %vm6312_vm2 = vcmask 123904  }
  0x3e   :  { %1726 = vmatprep.subr.bf16.mxu0 %v7204_v18  ;;  %v7996_v17 = vrot.slane %v7992_v12, %v7978_v16  ;;  %v7279_v18 = vld [vmem:[#allocation2 + $0x1f0] ss:$8 sps:$4 sm:$0xff]   ;;  %v7285_v19 = vld [vmem:[#allocation2 + $0x204] ss:$8 sps:$4 sm:$0xff]   ;;  %v7288_v23 = vld [vmem:[#allocation2 + $0x214] ss:$8 sps:$4 sm:$0xff]  }
  0x3f   :  { %v7309_v38 = vld [vmem:[#allocation2 + $0x284] ss:$8 sps:$4 sm:$0xff]   ;;  %v7318_v44 = vld [vmem:[#allocation2 + $0x2b4] ss:$8 sps:$4 sm:$0xff]  }
  0x40   :  { %v93_v20 = vcombine.high %v7996_v17, %v7996_v17 }
  0x41   :  { %1727 = vmatpush1.bf16.msra.mxu0 %v7206_v21  ;;  %v147_v21 = vpack.c.bf16 %v7985_v41, %v7985_v41  ;;  %v7310_v41 = vld [vmem:[#allocation2 + $0x290] ss:$8 sps:$4 sm:$0xff]  }
  0x42   :  { %1728 = vmatprep.subr.bf16.mxu0 %v7207_v22  ;;  %v7283_v22 = vld [vmem:[#allocation2 + $0x200] ss:$8 sps:$4 sm:$0xff]   ;;  %v150_v24 = vpack.c.bf16 %v93_v20, %v93_v20  ;;  %v7364_v20 = vld [vmem:[#allocation2 + $0x3b0] ss:$8 sps:$4 sm:$0xff]  }
  0x45   :  { %1729 = vmatpush1.bf16.msra.mxu0 %v7209_v25  ;;  %v7286_v25 = vld [vmem:[#allocation2 + $0x210] ss:$8 sps:$4 sm:$0xff]  }
  0x46   :  { %1730 = vmatprep.subr.bf16.mxu0 %v7210_v26  ;;  %v7291_v26 = vld [vmem:[#allocation2 + $0x224] ss:$8 sps:$4 sm:$0xff]  }
  0x49   :  { %1731 = vmatpush1.bf16.msra.mxu0 %v7212_v27  ;;  %v7289_v27 = vld [vmem:[#allocation2 + $0x220] ss:$8 sps:$4 sm:$0xff]  }
  0x4a   :  { %1732 = vmatprep.subr.bf16.mxu0 %v7213_v28  ;;  %v7294_v28 = vld [vmem:[#allocation2 + $0x234] ss:$8 sps:$4 sm:$0xff]  }
  0x4d   :  { %1733 = vmatpush1.bf16.msra.mxu0 %v7215_v29  ;;  %v7292_v29 = vld [vmem:[#allocation2 + $0x230] ss:$8 sps:$4 sm:$0xff]  }
  0x4e   :  { %1734 = vmatprep.subr.bf16.mxu0 %v7216_v30  ;;  %v7297_v30 = vld [vmem:[#allocation2 + $0x244] ss:$8 sps:$4 sm:$0xff]  }
  0x51   :  { %1735 = vmatpush1.bf16.msra.mxu0 %v7218_v31  ;;  %v7295_v31 = vld [vmem:[#allocation2 + $0x240] ss:$8 sps:$4 sm:$0xff]  }
  0x52   :  { %1736 = vmatprep.subr.bf16.mxu0 %v7219_v32  ;;  %v7300_v32 = vld [vmem:[#allocation2 + $0x254] ss:$8 sps:$4 sm:$0xff]  }
  0x55   :  { %1737 = vmatpush1.bf16.msra.mxu0 %v7221_v33  ;;  %v7298_v33 = vld [vmem:[#allocation2 + $0x250] ss:$8 sps:$4 sm:$0xff]  }
  0x56   :  { %1738 = vmatprep.subr.bf16.mxu0 %v7222_v34  ;;  %v7303_v34 = vld [vmem:[#allocation2 + $0x264] ss:$8 sps:$4 sm:$0xff]  }
  0x59   :  { %1739 = vmatpush1.bf16.msra.mxu0 %v7224_v35  ;;  %v7301_v35 = vld [vmem:[#allocation2 + $0x260] ss:$8 sps:$4 sm:$0xff]  }
  0x5a   :  { %1740 = vmatprep.subr.bf16.mxu0 %v7225_v36  ;;  %v7306_v36 = vld [vmem:[#allocation2 + $0x274] ss:$8 sps:$4 sm:$0xff]  }
  0x5d   :  { %1741 = vmatpush1.bf16.msra.mxu0 %v7227_v37  ;;  %v7304_v37 = vld [vmem:[#allocation2 + $0x270] ss:$8 sps:$4 sm:$0xff]  }
  0x5e   :  { %1742 = vmatprep.subr.bf16.mxu0 %v7228_v39  ;;  %v7307_v39 = vld [vmem:[#allocation2 + $0x280] ss:$8 sps:$4 sm:$0xff]  }
  0x61   :  { %1743 = vmatpush1.bf16.msra.mxu0 %v7230_v40  ;;  %v7312_v40 = vld [vmem:[#allocation2 + $0x294] ss:$8 sps:$4 sm:$0xff]  }
  0x62   :  { %1744 = vmatprep.subr.bf16.mxu0 %v7231_v42  ;;  %v7315_v42 = vld [vmem:[#allocation2 + $0x2a4] ss:$8 sps:$4 sm:$0xff]  }
  0x65   :  { %1745 = vmatpush1.bf16.msra.mxu0 %v7233_v43  ;;  %v7313_v43 = vld [vmem:[#allocation2 + $0x2a0] ss:$8 sps:$4 sm:$0xff]  }
  0x66   :  { %1755 = vmatprep.subr.bf16.mxu0 %v7236_v45  ;;  %v7316_v45 = vld [vmem:[#allocation2 + $0x2b0] ss:$8 sps:$4 sm:$0xff]  }
  0x68   :  { %1747 = vmatmul.mubr.bf16.vlgmr.msra.gmra.mrb[0].mxu0 %v145_v46  ;;  %v7321_v46 = vld [vmem:[#allocation2 + $0x2c4] ss:$8 sps:$4 sm:$0xff]  }
  0x69   :  { %1756 = vmatpush1.bf16.msra.mxu0 %v7234_v47  ;;  %1787 = vmatprep.mubr.bf16.mxu0 %v148_v48  ;;  %v7319_v47 = vld [vmem:[#allocation2 + $0x2c0] ss:$8 sps:$4 sm:$0xff]   ;;  %v7324_v48 = vld [vmem:[#allocation2 + $0x2d4] ss:$8 sps:$4 sm:$0xff]  }
  0x6a   :  { %1757 = vmatprep.subr.bf16.mxu0 %v7239_v49  ;;  %v7322_v49 = vld [vmem:[#allocation2 + $0x2d0] ss:$8 sps:$4 sm:$0xff]  }
  0x6d   :  { %1758 = vmatpush1.bf16.msra.mxu0 %v7237_v50  ;;  %v7327_v50 = vld [vmem:[#allocation2 + $0x2e4] ss:$8 sps:$4 sm:$0xff]  }
  0x6e   :  { %1759 = vmatprep.subr.bf16.mxu0 %v7242_v51  ;;  %v78_v51 = vcombine.high %v7992_v12, %v7992_v12  ;;  %v7355_v12 = vld [vmem:[#allocation2 + $0x380] ss:$8 sps:$4 sm:$0xff]  }
  0x71   :  { %1760 = vmatpush1.bf16.msra.mxu0 %v7240_v52  ;;  %v7325_v52 = vld [vmem:[#allocation2 + $0x2e0] ss:$8 sps:$4 sm:$0xff]  }
  0x72   :  { %1761 = vmatprep.subr.bf16.mxu0 %v7245_v53  ;;  %v7330_v53 = vld [vmem:[#allocation2 + $0x2f4] ss:$8 sps:$4 sm:$0xff]  }
  0x75   :  { %1762 = vmatpush1.bf16.msra.mxu0 %v7243_v54  ;;  %v8005_v54 = vrot.slane %v78_v51, %v7978_v16  ;;  %v7404_v51 = vld [vmem:[#allocation2 + $0x480] ss:$8 sps:$4 sm:$0xff]  }
  0x76   :  { %1763 = vmatprep.subr.bf16.mxu0 %v7248_v55  ;;  %v7328_v55 = vld [vmem:[#allocation2 + $0x2f0] ss:$8 sps:$4 sm:$0xff]  }
  0x79   :  { %1764 = vmatpush1.bf16.msra.mxu0 %v7246_v56  ;;  %v7333_v56 = vld [vmem:[#allocation2 + $0x304] ss:$8 sps:$4 sm:$0xff]  }
  0x7a   :  { %1765 = vmatprep.subr.bf16.mxu0 %v7251_v57  ;;  %v94_v57 = vcombine.high %v8005_v54, %v8005_v54 }
  0x7d   :  { %1766 = vmatpush1.bf16.msra.mxu0 %v7249_v58  ;;  %v149_v58 = vpack.c.bf16 %v7996_v17, %v7996_v17  ;;  %v7363_v17 = vld [vmem:[#allocation2 + $0x3a4] ss:$8 sps:$4 sm:$0xff]  }
  0x7e   :  { %1767 = vmatprep.subr.bf16.mxu0 %v7254_v59  ;;  %v7331_v59 = vld [vmem:[#allocation2 + $0x300] ss:$8 sps:$4 sm:$0xff]  }
  0x81   :  { %1768 = vmatpush1.bf16.msra.mxu0 %v7252_v60  ;;  %v7336_v60 = vld [vmem:[#allocation2 + $0x314] ss:$8 sps:$4 sm:$0xff]  }
  0x82   :  { %1769 = vmatprep.subr.bf16.mxu0 %v7257_v61  ;;  %v152_v61 = vpack.c.bf16 %v94_v57, %v94_v57  ;;  %v7413_v57 = vld [vmem:[#allocation2 + $0x4b0] ss:$8 sps:$4 sm:$0xff]  }
  0x85   :  { %1770 = vmatpush1.bf16.msra.mxu0 %v7255_v62  ;;  %v7334_v62 = vld [vmem:[#allocation2 + $0x310] ss:$8 sps:$4 sm:$0xff]  }
  0x86   :  { %1771 = vmatprep.subr.bf16.mxu0 %v7260_v63  ;;  %v7339_v63 = vld [vmem:[#allocation2 + $0x324] ss:$8 sps:$4 sm:$0xff]  }
  0x89   :  { %1772 = vmatpush1.bf16.msra.mxu0 %v7258_v0  ;;  %v7337_v0 = vld [vmem:[#allocation2 + $0x320] ss:$8 sps:$4 sm:$0xff]  }
  0x8a   :  { %1773 = vmatprep.subr.bf16.mxu0 %v7263_v1  ;;  %v7342_v1 = vld [vmem:[#allocation2 + $0x334] ss:$8 sps:$4 sm:$0xff]  }
  0x8d   :  { %1774 = vmatpush1.bf16.msra.mxu0 %v7261_v2  ;;  %v7340_v2 = vld [vmem:[#allocation2 + $0x330] ss:$8 sps:$4 sm:$0xff]  }
  0x8e   :  { %1775 = vmatprep.subr.bf16.mxu0 %v7266_v3  ;;  %v7345_v3 = vld [vmem:[#allocation2 + $0x344] ss:$8 sps:$4 sm:$0xff]  }
  0x91   :  { %1776 = vmatpush1.bf16.msra.mxu0 %v7264_v4  ;;  %v7343_v4 = vld [vmem:[#allocation2 + $0x340] ss:$8 sps:$4 sm:$0xff]  }
  0x92   :  { %1777 = vmatprep.subr.bf16.mxu0 %v7269_v5  ;;  %v7348_v5 = vld [vmem:[#allocation2 + $0x354] ss:$8 sps:$4 sm:$0xff]  }
  0x95   :  { %1778 = vmatpush1.bf16.msra.mxu0 %v7267_v6  ;;  %v7346_v6 = vld [vmem:[#allocation2 + $0x350] ss:$8 sps:$4 sm:$0xff]  }
  0x96   :  { %1779 = vmatprep.subr.bf16.mxu0 %v7272_v7  ;;  %v7351_v7 = vld [vmem:[#allocation2 + $0x364] ss:$8 sps:$4 sm:$0xff]  }
  0x99   :  { %1780 = vmatpush1.bf16.msra.mxu0 %v7270_v8  ;;  %v7349_v8 = vld [vmem:[#allocation2 + $0x360] ss:$8 sps:$4 sm:$0xff]  }
  0x9a   :  { %1781 = vmatprep.subr.bf16.mxu0 %v7275_v9  ;;  %v7354_v9 = vld [vmem:[#allocation2 + $0x374] ss:$8 sps:$4 sm:$0xff]  }
  0x9d   :  { %1782 = vmatpush1.bf16.msra.mxu0 %v7273_v10  ;;  %v7352_v10 = vld [vmem:[#allocation2 + $0x370] ss:$8 sps:$4 sm:$0xff]  }
  0x9e   :  { %1783 = vmatprep.subr.bf16.mxu0 %v7278_v11  ;;  %v7357_v11 = vld [vmem:[#allocation2 + $0x384] ss:$8 sps:$4 sm:$0xff]  }
  0xa1   :  { %1784 = vmatpush1.bf16.msra.mxu0 %v7276_v14  ;;  %v7360_v14 = vld [vmem:[#allocation2 + $0x394] ss:$8 sps:$4 sm:$0xff]  }
  0xa2   :  { %1785 = vmatprep.subr.bf16.mxu0 %v7281_v15  ;;  %v7358_v15 = vld [vmem:[#allocation2 + $0x390] ss:$8 sps:$4 sm:$0xff]  }
  0xa5   :  { %1786 = vmatpush1.bf16.msra.mxu0 %v7279_v18  ;;  %v7361_v18 = vld [vmem:[#allocation2 + $0x3a0] ss:$8 sps:$4 sm:$0xff]  }
  0xa6   :  { %1796 = vmatprep.subr.bf16.mxu0 %v7285_v19  ;;  %v7366_v19 = vld [vmem:[#allocation2 + $0x3b4] ss:$8 sps:$4 sm:$0xff]  }
  0xa8   :  { %1788 = vmatmul.mubr.bf16.vlgmr.msra.gmra.mrb[0].mxu0 %v147_v21  ;;  %v7369_v21 = vld [vmem:[#allocation2 + $0x3c4] ss:$8 sps:$4 sm:$0xff]  }
  0xa9   :  { %1797 = vmatpush1.bf16.msra.mxu0 %v7283_v22  ;;  %1828 = vmatprep.mubr.bf16.mxu0 %v150_v24  ;;  %v7367_v22 = vld [vmem:[#allocation2 + $0x3c0] ss:$8 sps:$4 sm:$0xff]   ;;  %v7370_v24 = vld [vmem:[#allocation2 + $0x3d0] ss:$8 sps:$4 sm:$0xff]  }
  0xaa   :  { %1798 = vmatprep.subr.bf16.mxu0 %v7288_v23  ;;  %v7372_v23 = vld [vmem:[#allocation2 + $0x3d4] ss:$8 sps:$4 sm:$0xff]  }
  0xad   :  { %1799 = vmatpush1.bf16.msra.mxu0 %v7286_v25  ;;  %v7375_v25 = vld [vmem:[#allocation2 + $0x3e4] ss:$8 sps:$4 sm:$0xff]  }
  0xae   :  { %1800 = vmatprep.subr.bf16.mxu0 %v7291_v26  ;;  %v8014_v26 = vld [vmem:[%s9141_s0 + $0x10] sm:$0xff] }
  0xb1   :  { %1801 = vmatpush1.bf16.msra.mxu0 %v7289_v27  ;;  %v7373_v27 = vld [vmem:[#allocation2 + $0x3e0] ss:$8 sps:$4 sm:$0xff]  }
  0xb2   :  { %1802 = vmatprep.subr.bf16.mxu0 %v7294_v28  ;;  %v8018_v28 = vrot.slane %v8014_v26, %v7978_v16 }
  0xb5   :  { %1803 = vmatpush1.bf16.msra.mxu0 %v7292_v29  ;;  %v7378_v29 = vld [vmem:[#allocation2 + $0x3f4] ss:$8 sps:$4 sm:$0xff]  }
  0xb6   :  { %1804 = vmatprep.subr.bf16.mxu0 %v7297_v30  ;;  %v7376_v30 = vld [vmem:[#allocation2 + $0x3f0] ss:$8 sps:$4 sm:$0xff]  }
  0xb9   :  { %1805 = vmatpush1.bf16.msra.mxu0 %v7295_v31  ;;  %v110_v31 = vcombine.high %v8018_v28, %v8018_v28 }
  0xba   :  { %1806 = vmatprep.subr.bf16.mxu0 %v7300_v32  ;;  %v7382_v32 = vld [vmem:[#allocation2 + $0x404] ss:$8 sps:$4 sm:$0xff]  }
  0xbd   :  { %1807 = vmatpush1.bf16.msra.mxu0 %v7298_v33  ;;  %v151_v33 = vpack.c.bf16 %v8005_v54, %v8005_v54  ;;  %v7412_v54 = vld [vmem:[#allocation2 + $0x4a4] ss:$8 sps:$4 sm:$0xff]  }
  0xbe   :  { %1808 = vmatprep.subr.bf16.mxu0 %v7303_v34  ;;  %v7380_v34 = vld [vmem:[#allocation2 + $0x400] ss:$8 sps:$4 sm:$0xff]  }
  0xc1   :  { %1809 = vmatpush1.bf16.msra.mxu0 %v7301_v35  ;;  %v154_v35 = vpack.c.bf16 %v110_v31, %v110_v31  ;;  %v7463_v31 = vld [vmem:[#allocation2 + $0x5b4] ss:$8 sps:$4 sm:$0xff]  }
  0xc2   :  { %1810 = vmatprep.subr.bf16.mxu0 %v7306_v36  ;;  %v7385_v36 = vld [vmem:[#allocation2 + $0x414] ss:$8 sps:$4 sm:$0xff]  }
  0xc5   :  { %1811 = vmatpush1.bf16.msra.mxu0 %v7304_v37  ;;  %v7383_v37 = vld [vmem:[#allocation2 + $0x410] ss:$8 sps:$4 sm:$0xff]  }
  0xc6   :  { %1812 = vmatprep.subr.bf16.mxu0 %v7309_v38  ;;  %v7388_v38 = vld [vmem:[#allocation2 + $0x424] ss:$8 sps:$4 sm:$0xff]  }
  0xc9   :  { %1813 = vmatpush1.bf16.msra.mxu0 %v7307_v39  ;;  %v7386_v39 = vld [vmem:[#allocation2 + $0x420] ss:$8 sps:$4 sm:$0xff]  }
  0xca   :  { %1814 = vmatprep.subr.bf16.mxu0 %v7312_v40  ;;  %v7391_v40 = vld [vmem:[#allocation2 + $0x434] ss:$8 sps:$4 sm:$0xff]  }
  0xcd   :  { %1815 = vmatpush1.bf16.msra.mxu0 %v7310_v41  ;;  %v7389_v41 = vld [vmem:[#allocation2 + $0x430] ss:$8 sps:$4 sm:$0xff]  }
  0xce   :  { %1816 = vmatprep.subr.bf16.mxu0 %v7315_v42  ;;  %v7394_v42 = vld [vmem:[#allocation2 + $0x444] ss:$8 sps:$4 sm:$0xff]  }
  0xd1   :  { %1817 = vmatpush1.bf16.msra.mxu0 %v7313_v43  ;;  %v7392_v43 = vld [vmem:[#allocation2 + $0x440] ss:$8 sps:$4 sm:$0xff]  }
  0xd2   :  { %1818 = vmatprep.subr.bf16.mxu0 %v7318_v44  ;;  %v7397_v44 = vld [vmem:[#allocation2 + $0x454] ss:$8 sps:$4 sm:$0xff]  }
  0xd5   :  { %1819 = vmatpush1.bf16.msra.mxu0 %v7316_v45  ;;  %v7395_v45 = vld [vmem:[#allocation2 + $0x450] ss:$8 sps:$4 sm:$0xff]  }
  0xd6   :  { %1820 = vmatprep.subr.bf16.mxu0 %v7321_v46  ;;  %v7400_v46 = vld [vmem:[#allocation2 + $0x464] ss:$8 sps:$4 sm:$0xff]  }
  0xd9   :  { %1821 = vmatpush1.bf16.msra.mxu0 %v7319_v47  ;;  %v7398_v47 = vld [vmem:[#allocation2 + $0x460] ss:$8 sps:$4 sm:$0xff]  }
  0xda   :  { %1822 = vmatprep.subr.bf16.mxu0 %v7324_v48  ;;  %v7403_v48 = vld [vmem:[#allocation2 + $0x474] ss:$8 sps:$4 sm:$0xff]  }
  0xdd   :  { %1823 = vmatpush1.bf16.msra.mxu0 %v7322_v49  ;;  %v7401_v49 = vld [vmem:[#allocation2 + $0x470] ss:$8 sps:$4 sm:$0xff]  }
  0xde   :  { %1824 = vmatprep.subr.bf16.mxu0 %v7327_v50  ;;  %v7406_v50 = vld [vmem:[#allocation2 + $0x484] ss:$8 sps:$4 sm:$0xff]  }
  0xe1   :  { %1825 = vmatpush1.bf16.msra.mxu0 %v7325_v52  ;;  %v7409_v52 = vld [vmem:[#allocation2 + $0x494] ss:$8 sps:$4 sm:$0xff]  }
  0xe2   :  { %1826 = vmatprep.subr.bf16.mxu0 %v7330_v53  ;;  %v7407_v53 = vld [vmem:[#allocation2 + $0x490] ss:$8 sps:$4 sm:$0xff]  }
  0xe5   :  { %1827 = vmatpush1.bf16.msra.mxu0 %v7328_v55  ;;  %v7410_v55 = vld [vmem:[#allocation2 + $0x4a0] ss:$8 sps:$4 sm:$0xff]  }
  0xe6   :  { %1837 = vmatprep.subr.bf16.mxu0 %v7333_v56  ;;  %v7415_v56 = vld [vmem:[#allocation2 + $0x4b4] ss:$8 sps:$4 sm:$0xff]  }
  0xe8   :  { %1829 = vmatmul.mubr.bf16.vlgmr.msra.gmra.mrb[0].mxu0 %v149_v58  ;;  %v7418_v58 = vld [vmem:[#allocation2 + $0x4c4] ss:$8 sps:$4 sm:$0xff]  }
  0xe9   :  { %1838 = vmatpush1.bf16.msra.mxu0 %v7331_v59  ;;  %1869 = vmatprep.mubr.bf16.mxu0 %v152_v61  ;;  %v7416_v59 = vld [vmem:[#allocation2 + $0x4c0] ss:$8 sps:$4 sm:$0xff]   ;;  %v7419_v61 = vld [vmem:[#allocation2 + $0x4d0] ss:$8 sps:$4 sm:$0xff]  }
  0xea   :  { %1839 = vmatprep.subr.bf16.mxu0 %v7336_v60  ;;  %v7421_v60 = vld [vmem:[#allocation2 + $0x4d4] ss:$8 sps:$4 sm:$0xff]  }
  0xed   :  { %1840 = vmatpush1.bf16.msra.mxu0 %v7334_v62  ;;  %v95_v62 = vcombine.high %v8014_v26, %v8014_v26  ;;  %v7452_v26 = vld [vmem:[#allocation2 + $0x580] ss:$8 sps:$4 sm:$0xff]  }
  0xee   :  { %1841 = vmatprep.subr.bf16.mxu0 %v7339_v63  ;;  %v7424_v63 = vld [vmem:[#allocation2 + $0x4e4] ss:$8 sps:$4 sm:$0xff]  }
  0xf1   :  { %1842 = vmatpush1.bf16.msra.mxu0 %v7337_v0  ;;  %v7422_v0 = vld [vmem:[#allocation2 + $0x4e0] ss:$8 sps:$4 sm:$0xff]  }
  0xf2   :  { %1843 = vmatprep.subr.bf16.mxu0 %v7342_v1  ;;  %v8027_v1 = vrot.slane %v95_v62, %v7978_v16 }
  0xf5   :  { %1844 = vmatpush1.bf16.msra.mxu0 %v7340_v2  ;;  %v7427_v2 = vld [vmem:[#allocation2 + $0x4f4] ss:$8 sps:$4 sm:$0xff]  }
  0xf6   :  { %1845 = vmatprep.subr.bf16.mxu0 %v7345_v3  ;;  %v7425_v3 = vld [vmem:[#allocation2 + $0x4f0] ss:$8 sps:$4 sm:$0xff]  }
  0xf9   :  { %1846 = vmatpush1.bf16.msra.mxu0 %v7343_v4  ;;  %v111_v4 = vcombine.high %v8027_v1, %v8027_v1 }
  0xfa   :  { %1847 = vmatprep.subr.bf16.mxu0 %v7348_v5  ;;  %v7430_v5 = vld [vmem:[#allocation2 + $0x504] ss:$8 sps:$4 sm:$0xff]  }
  0xfd   :  { %1848 = vmatpush1.bf16.msra.mxu0 %v7346_v6  ;;  %v153_v6 = vpack.c.bf16 %v8018_v28, %v8018_v28  ;;  %v7455_v28 = vld [vmem:[#allocation2 + $0x590] ss:$8 sps:$4 sm:$0xff]  }
  0xfe   :  { %1849 = vmatprep.subr.bf16.mxu0 %v7351_v7  ;;  %v7428_v7 = vld [vmem:[#allocation2 + $0x500] ss:$8 sps:$4 sm:$0xff]  }
 0x101   :  { %1850 = vmatpush1.bf16.msra.mxu0 %v7349_v8  ;;  %v156_v8 = vpack.c.bf16 %v111_v4, %v111_v4 }
 0x102   :  { %1851 = vmatprep.subr.bf16.mxu0 %v7354_v9  ;;  %v7433_v9 = vld [vmem:[#allocation2 + $0x514] ss:$8 sps:$4 sm:$0xff]  }
 0x105   :  { %1852 = vmatpush1.bf16.msra.mxu0 %v7352_v10  ;;  %v7431_v10 = vld [vmem:[#allocation2 + $0x510] ss:$8 sps:$4 sm:$0xff]  }
 0x106   :  { %1853 = vmatprep.subr.bf16.mxu0 %v7357_v11  ;;  %v7436_v11 = vld [vmem:[#allocation2 + $0x524] ss:$8 sps:$4 sm:$0xff]  }
 0x109   :  { %1854 = vmatpush1.bf16.msra.mxu0 %v7355_v12  ;;  %v7434_v12 = vld [vmem:[#allocation2 + $0x520] ss:$8 sps:$4 sm:$0xff]  }
 0x10a   :  { %1855 = vmatprep.subr.bf16.mxu0 %v7360_v14  ;;  %v7439_v14 = vld [vmem:[#allocation2 + $0x534] ss:$8 sps:$4 sm:$0xff]  }
 0x10d   :  { %1856 = vmatpush1.bf16.msra.mxu0 %v7358_v15  ;;  %v7437_v15 = vld [vmem:[#allocation2 + $0x530] ss:$8 sps:$4 sm:$0xff]  }
 0x10e   :  { %1857 = vmatprep.subr.bf16.mxu0 %v7363_v17  ;;  %v7442_v17 = vld [vmem:[#allocation2 + $0x544] ss:$8 sps:$4 sm:$0xff]  }
 0x111   :  { %1858 = vmatpush1.bf16.msra.mxu0 %v7361_v18  ;;  %v7440_v18 = vld [vmem:[#allocation2 + $0x540] ss:$8 sps:$4 sm:$0xff]  }
 0x112   :  { %1859 = vmatprep.subr.bf16.mxu0 %v7366_v19  ;;  %v7445_v19 = vld [vmem:[#allocation2 + $0x554] ss:$8 sps:$4 sm:$0xff]  }
 0x115   :  { %1860 = vmatpush1.bf16.msra.mxu0 %v7364_v20  ;;  %v7443_v20 = vld [vmem:[#allocation2 + $0x550] ss:$8 sps:$4 sm:$0xff]  }
 0x116   :  { %1861 = vmatprep.subr.bf16.mxu0 %v7369_v21  ;;  %v7448_v21 = vld [vmem:[#allocation2 + $0x564] ss:$8 sps:$4 sm:$0xff]  }
 0x119   :  { %1862 = vmatpush1.bf16.msra.mxu0 %v7367_v22  ;;  %v7446_v22 = vld [vmem:[#allocation2 + $0x560] ss:$8 sps:$4 sm:$0xff]  }
 0x11a   :  { %1863 = vmatprep.subr.bf16.mxu0 %v7372_v23  ;;  %v7451_v23 = vld [vmem:[#allocation2 + $0x574] ss:$8 sps:$4 sm:$0xff]  }
 0x11d   :  { %1864 = vmatpush1.bf16.msra.mxu0 %v7370_v24  ;;  %v7449_v24 = vld [vmem:[#allocation2 + $0x570] ss:$8 sps:$4 sm:$0xff]  }
 0x11e   :  { %1865 = vmatprep.subr.bf16.mxu0 %v7375_v25  ;;  %v7454_v25 = vld [vmem:[#allocation2 + $0x584] ss:$8 sps:$4 sm:$0xff]  }
 0x121   :  { %1866 = vmatpush1.bf16.msra.mxu0 %v7373_v27  ;;  %v7457_v27 = vld [vmem:[#allocation2 + $0x594] ss:$8 sps:$4 sm:$0xff]  }
 0x122   :  { %1867 = vmatprep.subr.bf16.mxu0 %v7378_v29  ;;  %v7460_v29 = vld [vmem:[#allocation2 + $0x5a4] ss:$8 sps:$4 sm:$0xff]  }
 0x125   :  { %1868 = vmatpush1.bf16.msra.mxu0 %v7376_v30  ;;  %v7458_v30 = vld [vmem:[#allocation2 + $0x5a0] ss:$8 sps:$4 sm:$0xff]  }
 0x126   :  { %1878 = vmatprep.subr.bf16.mxu0 %v7382_v32  ;;  %v7461_v32 = vld [vmem:[#allocation2 + $0x5b0] ss:$8 sps:$4 sm:$0xff]  }
 0x128   :  { %1870 = vmatmul.mubr.bf16.vlgmr.msra.gmra.mrb[0].mxu0 %v151_v33  ;;  %v7466_v33 = vld [vmem:[#allocation2 + $0x5c4] ss:$8 sps:$4 sm:$0xff]  }
 0x129   :  { %1879 = vmatpush1.bf16.msra.mxu0 %v7380_v34  ;;  %1910 = vmatprep.mubr.bf16.mxu0 %v154_v35  ;;  %v7464_v34 = vld [vmem:[#allocation2 + $0x5c0] ss:$8 sps:$4 sm:$0xff]   ;;  %v7469_v35 = vld [vmem:[#allocation2 + $0x5d4] ss:$8 sps:$4 sm:$0xff]  }
 0x12a   :  { %1880 = vmatprep.subr.bf16.mxu0 %v7385_v36  ;;  %v7467_v36 = vld [vmem:[#allocation2 + $0x5d0] ss:$8 sps:$4 sm:$0xff]  }
 0x12d   :  { %1881 = vmatpush1.bf16.msra.mxu0 %v7383_v37  ;;  %v7472_v37 = vld [vmem:[#allocation2 + $0x5e4] ss:$8 sps:$4 sm:$0xff]  }
 0x12e   :  { %1882 = vmatprep.subr.bf16.mxu0 %v7388_v38  ;;  %v8036_v38 = vld [vmem:[%s9141_s0 + $0x18] sm:$0xff] }
 0x131   :  { %1883 = vmatpush1.bf16.msra.mxu0 %v7386_v39  ;;  %v7470_v39 = vld [vmem:[#allocation2 + $0x5e0] ss:$8 sps:$4 sm:$0xff]  }
 0x132   :  { %1884 = vmatprep.subr.bf16.mxu0 %v7391_v40  ;;  %v8040_v40 = vrot.slane %v8036_v38, %v7978_v16 }
 0x135   :  { %1885 = vmatpush1.bf16.msra.mxu0 %v7389_v41  ;;  %v7475_v41 = vld [vmem:[#allocation2 + $0x5f4] ss:$8 sps:$4 sm:$0xff]  }
 0x136   :  { %1886 = vmatprep.subr.bf16.mxu0 %v7394_v42  ;;  %v7473_v42 = vld [vmem:[#allocation2 + $0x5f0] ss:$8 sps:$4 sm:$0xff]  }
 0x139   :  { %1887 = vmatpush1.bf16.msra.mxu0 %v7392_v43  ;;  %v127_v43 = vcombine.high %v8040_v40, %v8040_v40 }
 0x13a   :  { %1888 = vmatprep.subr.bf16.mxu0 %v7397_v44  ;;  %v7479_v44 = vld [vmem:[#allocation2 + $0x604] ss:$8 sps:$4 sm:$0xff]  }
 0x13d   :  { %1889 = vmatpush1.bf16.msra.mxu0 %v7395_v45  ;;  %v155_v45 = vpack.c.bf16 %v8027_v1, %v8027_v1  ;;  %v2102_v1 = vld [vmem:[%s9143_s2 + $0x1c0] sm:$0xff] }
 0x13e   :  { %1890 = vmatprep.subr.bf16.mxu0 %v7400_v46  ;;  %v7477_v46 = vld [vmem:[#allocation2 + $0x600] ss:$8 sps:$4 sm:$0xff]  }
 0x141   :  { %1891 = vmatpush1.bf16.msra.mxu0 %v7398_v47  ;;  %v158_v47 = vpack.c.bf16 %v127_v43, %v127_v43  ;;  %v7521_v43 = vld [vmem:[#allocation2 + $0x6e4] ss:$8 sps:$4 sm:$0xff]  }
 0x142   :  { %1892 = vmatprep.subr.bf16.mxu0 %v7403_v48  ;;  %v7482_v48 = vld [vmem:[#allocation2 + $0x614] ss:$8 sps:$4 sm:$0xff]  }
 0x145   :  { %1893 = vmatpush1.bf16.msra.mxu0 %v7401_v49  ;;  %v2046_v49 = vld [vmem:[%s9143_s2] sm:$0xff] }
 0x146   :  { %1894 = vmatprep.subr.bf16.mxu0 %v7406_v50  ;;  %v2054_v50 = vld [vmem:[%s9143_s2 + $0x40] sm:$0xff] }
 0x149   :  { %1895 = vmatpush1.bf16.msra.mxu0 %v7404_v51  ;;  %v2062_v51 = vld [vmem:[%s9143_s2 + $0x80] sm:$0xff] }
 0x14a   :  { %1896 = vmatprep.subr.bf16.mxu0 %v7409_v52  ;;  %v7480_v52 = vld [vmem:[#allocation2 + $0x610] ss:$8 sps:$4 sm:$0xff]  }
 0x14d   :  { %1897 = vmatpush1.bf16.msra.mxu0 %v7407_v53  ;;  %v6587_v53 = vcombine.high %v2046_v49, %v2054_v50 }
 0x14e   :  { %1898 = vmatprep.subr.bf16.mxu0 %v7412_v54  ;;  %v6586_v54 = vcombine.low %v2046_v49, %v2054_v50  ;;  %v7527_v49 = vld [vmem:[#allocation2 + $0x704] ss:$8 sps:$4 sm:$0xff]   ;;  %v157_v50 = vpack.c.bf16 %v8040_v40, %v8040_v40  ;;  %v7537_v40 = vld [vmem:[#allocation2 + $0x740] ss:$8 sps:$4 sm:$0xff]  }
 0x14f   :  { %2896 = vmatprep.subr.bf16.mxu1 %v6587_v53  ;;  %v7528_v53 = vld [vmem:[#allocation2 + $0x710] ss:$8 sps:$4 sm:$0xff]  }
 0x150   :  { %2897 = vmatpush1.bf16.msra.mxu1 %v6586_v54  ;;  %v7533_v54 = vld [vmem:[#allocation2 + $0x724] ss:$8 sps:$4 sm:$0xff]  }
 0x151   :  { %1899 = vmatpush1.bf16.msra.mxu0 %v7410_v55  ;;  %v2070_v55 = vld [vmem:[%s9143_s2 + $0xc0] sm:$0xff] }
 0x152   :  { %1900 = vmatprep.subr.bf16.mxu0 %v7415_v56  ;;  %v7485_v56 = vld [vmem:[#allocation2 + $0x624] ss:$8 sps:$4 sm:$0xff]  }
 0x155   :  { %1901 = vmatpush1.bf16.msra.mxu0 %v7413_v57  ;;  %v6603_v57 = vcombine.high %v2062_v51, %v2070_v55 }
 0x156   :  { %1902 = vmatprep.subr.bf16.mxu0 %v7418_v58  ;;  %v2078_v58 = vld [vmem:[%s9143_s2 + $0x100] sm:$0xff] }
 0x157   :  { %2898 = vmatprep.subr.bf16.mxu1 %v6603_v57  ;;  %v7534_v57 = vld [vmem:[#allocation2 + $0x730] ss:$8 sps:$4 sm:$0xff]  }
 0x159   :  { %1903 = vmatpush1.bf16.msra.mxu0 %v7416_v59  ;;  %v2086_v59 = vld [vmem:[%s9143_s2 + $0x140] sm:$0xff] }
 0x15a   :  { %1904 = vmatprep.subr.bf16.mxu0 %v7421_v60  ;;  %v6602_v60 = vcombine.low %v2062_v51, %v2070_v55  ;;  %v6619_v62 = vcombine.high %v2078_v58, %v2086_v59  ;;  %v7531_v55 = vld [vmem:[#allocation2 + $0x720] ss:$8 sps:$4 sm:$0xff]  }
 0x15c   :  { %2899 = vmatpush1.bf16.msra.mxu1 %v6602_v60  ;;  %v7540_v60 = vld [vmem:[#allocation2 + $0x750] ss:$8 sps:$4 sm:$0xff]  }
 0x15d   :  { %1905 = vmatpush1.bf16.msra.mxu0 %v7419_v61  ;;  %v7483_v61 = vld [vmem:[#allocation2 + $0x620] ss:$8 sps:$4 sm:$0xff]   ;;  %2900 = vmatprep.subr.bf16.mxu1 %v6619_v62 }
 0x15e   :  { %1906 = vmatprep.subr.bf16.mxu0 %v7424_v63  ;;  %v7488_v63 = vld [vmem:[#allocation2 + $0x634] ss:$8 sps:$4 sm:$0xff]   ;;  %v7543_v62 = vld [vmem:[#allocation2 + $0x760] ss:$8 sps:$4 sm:$0xff]  }
 0x161   :  { %1907 = vmatpush1.bf16.msra.mxu0 %v7422_v0  ;;  %v2094_v0 = vld [vmem:[%s9143_s2 + $0x180] sm:$0xff] }
 0x162   :  { %1908 = vmatprep.subr.bf16.mxu0 %v7427_v2  ;;  %v6618_v2 = vcombine.low %v2078_v58, %v2086_v59  ;;  %v6635_v4 = vcombine.high %v2094_v0, %v2102_v1  ;;  %v7539_v58 = vld [vmem:[#allocation2 + $0x744] ss:$8 sps:$4 sm:$0xff]   ;;  %v7542_v59 = vld [vmem:[#allocation2 + $0x754] ss:$8 sps:$4 sm:$0xff]  }
 0x164   :  { %2901 = vmatpush1.bf16.msra.mxu1 %v6618_v2  ;;  %v7549_v2 = vld [vmem:[#allocation2 + $0x780] ss:$8 sps:$4 sm:$0xff]  }
 0x165   :  { %1909 = vmatpush1.bf16.msra.mxu0 %v7425_v3  ;;  %v7486_v3 = vld [vmem:[#allocation2 + $0x630] ss:$8 sps:$4 sm:$0xff]   ;;  %2902 = vmatprep.subr.bf16.mxu1 %v6635_v4 }
 0x166   :  { %1919 = vmatprep.subr.bf16.mxu0 %v7430_v5  ;;  %v7491_v5 = vld [vmem:[#allocation2 + $0x644] ss:$8 sps:$4 sm:$0xff]   ;;  %v7552_v4 = vld [vmem:[#allocation2 + $0x790] ss:$8 sps:$4 sm:$0xff]  }
 0x168   :  { %1911 = vmatmul.mubr.bf16.vlgmr.msra.gmra.mrb[0].mxu0 %v153_v6  ;;  %v2110_v6 = vld [vmem:[%s9143_s2 + $0x200] sm:$0xff] }
 0x169   :  { %1920 = vmatpush1.bf16.msra.mxu0 %v7428_v7  ;;  %1951 = vmatprep.mubr.bf16.mxu0 %v156_v8  ;;  %v2118_v7 = vld [vmem:[%s9143_s2 + $0x240] sm:$0xff]  ;;  %v6634_v8 = vcombine.low %v2094_v0, %v2102_v1  ;;  %v7546_v0 = vld [vmem:[#allocation2 + $0x770] ss:$8 sps:$4 sm:$0xff]  }
 0x16a   :  { %1921 = vmatprep.subr.bf16.mxu0 %v7433_v9  ;;  %v7489_v9 = vld [vmem:[#allocation2 + $0x640] ss:$8 sps:$4 sm:$0xff]   ;;  %v7551_v1 = vld [vmem:[#allocation2 + $0x784] ss:$8 sps:$4 sm:$0xff]  }
 0x16b   :  { %2903 = vmatpush1.bf16.msra.mxu1 %v6634_v8  ;;  %v7558_v8 = vld [vmem:[#allocation2 + $0x7b0] ss:$8 sps:$4 sm:$0xff]  }
 0x16d   :  { %1922 = vmatpush1.bf16.msra.mxu0 %v7431_v10  ;;  %v6651_v10 = vcombine.high %v2110_v6, %v2118_v7 }
 0x16e   :  { %1923 = vmatprep.subr.bf16.mxu0 %v7436_v11  ;;  %v7494_v11 = vld [vmem:[#allocation2 + $0x654] ss:$8 sps:$4 sm:$0xff]  }
 0x16f   :  { %2904 = vmatprep.subr.bf16.mxu1 %v6651_v10  ;;  %v7561_v10 = vld [vmem:[#allocation2 + $0x7c0] ss:$8 sps:$4 sm:$0xff]  }
 0x171   :  { %1924 = vmatpush1.bf16.msra.mxu0 %v7434_v12  ;;  %v2126_v12 = vld [vmem:[%s9143_s2 + $0x280] sm:$0xff] }
 0x172   :  { %1925 = vmatprep.subr.bf16.mxu0 %v7439_v14  ;;  %v2134_v14 = vld [vmem:[%s9143_s2 + $0x2c0] sm:$0xff] }
 0x175   :  { %1926 = vmatpush1.bf16.msra.mxu0 %v7437_v15  ;;  %v6650_v15 = vcombine.low %v2110_v6, %v2118_v7  ;;  %v7555_v6 = vld [vmem:[#allocation2 + $0x7a0] ss:$8 sps:$4 sm:$0xff]   ;;  %v7560_v7 = vld [vmem:[#allocation2 + $0x7b4] ss:$8 sps:$4 sm:$0xff]  }
 0x176   :  { %1927 = vmatprep.subr.bf16.mxu0 %v7442_v17  ;;  %v7492_v17 = vld [vmem:[#allocation2 + $0x650] ss:$8 sps:$4 sm:$0xff]  }
 0x177   :  { %2905 = vmatpush1.bf16.msra.mxu1 %v6650_v15  ;;  %v7567_v15 = vld [vmem:[#allocation2 + $0x7e0] ss:$8 sps:$4 sm:$0xff]  }
 0x179   :  { %1928 = vmatpush1.bf16.msra.mxu0 %v7440_v18  ;;  %v6667_v18 = vcombine.high %v2126_v12, %v2134_v14 }
 0x17a   :  { %1929 = vmatprep.subr.bf16.mxu0 %v7445_v19  ;;  %v7497_v19 = vld [vmem:[#allocation2 + $0x664] ss:$8 sps:$4 sm:$0xff]  }
 0x17b   :  { %2906 = vmatprep.subr.bf16.mxu1 %v6667_v18  ;;  %v7570_v18 = vld [vmem:[#allocation2 + $0x7f0] ss:$8 sps:$4 sm:$0xff]  }
 0x17d   :  { %1930 = vmatpush1.bf16.msra.mxu0 %v7443_v20  ;;  %v2142_v20 = vld [vmem:[%s9143_s2 + $0x300] sm:$0xff] }
 0x17e   :  { %1931 = vmatprep.subr.bf16.mxu0 %v7448_v21  ;;  %v2150_v21 = vld [vmem:[%s9143_s2 + $0x340] sm:$0xff] }
 0x181   :  { %1932 = vmatpush1.bf16.msra.mxu0 %v7446_v22  ;;  %v6666_v22 = vcombine.low %v2126_v12, %v2134_v14  ;;  %v7564_v12 = vld [vmem:[#allocation2 + $0x7d0] ss:$8 sps:$4 sm:$0xff]   ;;  %v7569_v14 = vld [vmem:[#allocation2 + $0x7e4] ss:$8 sps:$4 sm:$0xff]  }
 0x182   :  { %1933 = vmatprep.subr.bf16.mxu0 %v7451_v23  ;;  %v7495_v23 = vld [vmem:[#allocation2 + $0x660] ss:$8 sps:$4 sm:$0xff]  }
 0x183   :  { %2907 = vmatpush1.bf16.msra.mxu1 %v6666_v22 }
 0x185   :  { %1934 = vmatpush1.bf16.msra.mxu0 %v7449_v24  ;;  %v6683_v24 = vcombine.high %v2142_v20, %v2150_v21 }
 0x186   :  { %1935 = vmatprep.subr.bf16.mxu0 %v7454_v25  ;;  %v7500_v25 = vld [vmem:[#allocation2 + $0x674] ss:$8 sps:$4 sm:$0xff]  }
 0x187   :  { %2908 = vmatprep.subr.bf16.mxu1 %v6683_v24  ;;  %v2047_v24 = vld [vmem:[%s9143_s2 + $0x8] sm:$0xff] }
 0x189   :  { %1936 = vmatpush1.bf16.msra.mxu0 %v7452_v26  ;;  %v6682_v26 = vcombine.low %v2142_v20, %v2150_v21  ;;  %v2158_v20 = vld [vmem:[%s9143_s2 + $0x380] sm:$0xff] }
 0x18a   :  { %1937 = vmatprep.subr.bf16.mxu0 %v7457_v27  ;;  %v7498_v27 = vld [vmem:[#allocation2 + $0x670] ss:$8 sps:$4 sm:$0xff]   ;;  %v2166_v21 = vld [vmem:[%s9143_s2 + $0x3c0] sm:$0xff] }
 0x18b   :  { %2909 = vmatpush1.bf16.msra.mxu1 %v6682_v26  ;;  %v6699_v22 = vcombine.high %v2158_v20, %v2166_v21 }
 0x18d   :  { %1938 = vmatpush1.bf16.msra.mxu0 %v7455_v28  ;;  %v7503_v28 = vld [vmem:[#allocation2 + $0x684] ss:$8 sps:$4 sm:$0xff]   ;;  %2910 = vmatprep.subr.bf16.mxu1 %v6699_v22 }
 0x18e   :  { %1939 = vmatprep.subr.bf16.mxu0 %v7460_v29  ;;  %v7501_v29 = vld [vmem:[#allocation2 + $0x680] ss:$8 sps:$4 sm:$0xff]  }
 0x191   :  { %1940 = vmatpush1.bf16.msra.mxu0 %v7458_v30  ;;  %v7506_v30 = vld [vmem:[#allocation2 + $0x694] ss:$8 sps:$4 sm:$0xff]  }
 0x192   :  { %1941 = vmatprep.subr.bf16.mxu0 %v7463_v31  ;;  %v7504_v31 = vld [vmem:[#allocation2 + $0x690] ss:$8 sps:$4 sm:$0xff]  }
 0x195   :  { %1942 = vmatpush1.bf16.msra.mxu0 %v7461_v32  ;;  %v7509_v32 = vld [vmem:[#allocation2 + $0x6a4] ss:$8 sps:$4 sm:$0xff]  }
 0x196   :  { %1943 = vmatprep.subr.bf16.mxu0 %v7466_v33  ;;  %v7507_v33 = vld [vmem:[#allocation2 + $0x6a0] ss:$8 sps:$4 sm:$0xff]  }
 0x199   :  { %1944 = vmatpush1.bf16.msra.mxu0 %v7464_v34  ;;  %v7512_v34 = vld [vmem:[#allocation2 + $0x6b4] ss:$8 sps:$4 sm:$0xff]  }
 0x19a   :  { %1945 = vmatprep.subr.bf16.mxu0 %v7469_v35  ;;  %v7510_v35 = vld [vmem:[#allocation2 + $0x6b0] ss:$8 sps:$4 sm:$0xff]  }
 0x19d   :  { %1946 = vmatpush1.bf16.msra.mxu0 %v7467_v36  ;;  %v7515_v36 = vld [vmem:[#allocation2 + $0x6c4] ss:$8 sps:$4 sm:$0xff]  }
 0x19e   :  { %1947 = vmatprep.subr.bf16.mxu0 %v7472_v37  ;;  %v7513_v37 = vld [vmem:[#allocation2 + $0x6c0] ss:$8 sps:$4 sm:$0xff]  }
 0x1a1   :  { %1948 = vmatpush1.bf16.msra.mxu0 %v7470_v39  ;;  %v7518_v39 = vld [vmem:[#allocation2 + $0x6d4] ss:$8 sps:$4 sm:$0xff]  }
 0x1a2   :  { %1949 = vmatprep.subr.bf16.mxu0 %v7475_v41  ;;  %v7516_v41 = vld [vmem:[#allocation2 + $0x6d0] ss:$8 sps:$4 sm:$0xff]  }
 0x1a5   :  { %1950 = vmatpush1.bf16.msra.mxu0 %v7473_v42  ;;  %v112_v42 = vcombine.high %v8036_v38, %v8036_v38  ;;  %v7525_v38 = vld [vmem:[#allocation2 + $0x700] ss:$8 sps:$4 sm:$0xff]  }
 0x1a6   :  { %1960 = vmatprep.subr.bf16.mxu0 %v7479_v44  ;;  %v7519_v44 = vld [vmem:[#allocation2 + $0x6e0] ss:$8 sps:$4 sm:$0xff]  }
 0x1a8   :  { %1952 = vmatmul.mubr.bf16.vlgmr.msra.gmra.mrb[0].mxu0 %v155_v45  ;;  %v8091_v45 = vrot.slane %v112_v42, %v7978_v16 }
 0x1a9   :  { %1961 = vmatpush1.bf16.msra.mxu0 %v7477_v46  ;;  %1992 = vmatprep.mubr.bf16.mxu0 %v158_v47  ;;  %v7524_v46 = vld [vmem:[#allocation2 + $0x6f4] ss:$8 sps:$4 sm:$0xff]   ;;  %v7522_v47 = vld [vmem:[#allocation2 + $0x6f0] ss:$8 sps:$4 sm:$0xff]  }
 0x1aa   :  { %1962 = vmatprep.subr.bf16.mxu0 %v7482_v48  ;;  %v128_v48 = vcombine.high %v8091_v45, %v8091_v45 }
 0x1ac   :  { %v160_v51 = vpack.c.bf16 %v128_v48, %v128_v48  ;;  %v2095_v48 = vld [vmem:[%s9143_s2 + $0x188] sm:$0xff] }
 0x1ad   :  { %1963 = vmatpush1.bf16.msra.mxu0 %v7480_v52  ;;  %v7530_v52 = vld [vmem:[#allocation2 + $0x714] ss:$8 sps:$4 sm:$0xff]  }
 0x1ae   :  { %1964 = vmatprep.subr.bf16.mxu0 %v7485_v56  ;;  %v7536_v56 = vld [vmem:[#allocation2 + $0x734] ss:$8 sps:$4 sm:$0xff]  }
 0x1b1   :  { %1965 = vmatpush1.bf16.msra.mxu0 %v7483_v61  ;;  %v7545_v61 = vld [vmem:[#allocation2 + $0x764] ss:$8 sps:$4 sm:$0xff]  }
 0x1b2   :  { %1966 = vmatprep.subr.bf16.mxu0 %v7488_v63  ;;  %v7548_v63 = vld [vmem:[#allocation2 + $0x774] ss:$8 sps:$4 sm:$0xff]  }
 0x1b5   :  { %1967 = vmatpush1.bf16.msra.mxu0 %v7486_v3  ;;  %v7554_v3 = vld [vmem:[#allocation2 + $0x794] ss:$8 sps:$4 sm:$0xff]  }
 0x1b6   :  { %1968 = vmatprep.subr.bf16.mxu0 %v7491_v5  ;;  %v7557_v5 = vld [vmem:[#allocation2 + $0x7a4] ss:$8 sps:$4 sm:$0xff]  }
 0x1b9   :  { %1969 = vmatpush1.bf16.msra.mxu0 %v7489_v9  ;;  %v7563_v9 = vld [vmem:[#allocation2 + $0x7c4] ss:$8 sps:$4 sm:$0xff]  }
 0x1ba   :  { %1970 = vmatprep.subr.bf16.mxu0 %v7494_v11  ;;  %v7566_v11 = vld [vmem:[#allocation2 + $0x7d4] ss:$8 sps:$4 sm:$0xff]  }
 0x1bd   :  { %1971 = vmatpush1.bf16.msra.mxu0 %v7492_v17  ;;  %v7572_v17 = vld [vmem:[#allocation2 + $0x7f4] ss:$8 sps:$4 sm:$0xff]  }
 0x1be   :  { %1972 = vmatprep.subr.bf16.mxu0 %v7497_v19  ;;  %v159_v19 = vpack.c.bf16 %v8091_v45, %v8091_v45  ;;  %v2087_v45 = vld [vmem:[%s9143_s2 + $0x148] sm:$0xff] }
 0x1c1   :  { %1973 = vmatpush1.bf16.msra.mxu0 %v7495_v23  ;;  %v6698_v23 = vcombine.low %v2158_v20, %v2166_v21  ;;  %v2112_v20 = vld [vmem:[%s9143_s2 + $0x210] sm:$0xff] }
 0x1c2   :  { %1974 = vmatprep.subr.bf16.mxu0 %v7500_v25  ;;  %v2055_v25 = vld [vmem:[%s9143_s2 + $0x48] sm:$0xff]  ;;  %v2120_v21 = vld [vmem:[%s9143_s2 + $0x250] sm:$0xff] }
 0x1c3   :  { %2911 = vmatpush1.bf16.msra.mxu1 %v6698_v23  ;;  %v6589_v26 = vcombine.high %v2047_v24, %v2055_v25  ;;  %v6655_v23 = vcombine.high %v2112_v20, %v2120_v21 }
 0x1c5   :  { %1975 = vmatpush1.bf16.msra.mxu0 %v7498_v27  ;;  %v6588_v27 = vcombine.low %v2047_v24, %v2055_v25  ;;  %2937 = vmatprep.subr.bf16.mxu1 %v6589_v26  ;;  %v2128_v24 = vld [vmem:[%s9143_s2 + $0x290] sm:$0xff]  ;;  %v6654_v26 = vcombine.low %v2112_v20, %v2120_v21  ;;  %v2090_v20 = vld [vmem:[%s9143_s2 + $0x160] sm:$0xff] }
 0x1c6   :  { %1976 = vmatprep.subr.bf16.mxu0 %v7503_v28  ;;  %v7913_v28 = vmov 0   ;;  %v2136_v25 = vld [vmem:[%s9143_s2 + $0x2d0] sm:$0xff] }
 0x1c7   :  { %2928 = vmatprep.mubr.bf16.mxu1 %v7913_v28 }
 0x1c9   :  { %1977 = vmatpush1.bf16.msra.mxu0 %v7501_v29  ;;  %v8113_v29 = vsub.s32 0, %v7975_v13 }
 0x1ca   :  { %1978 = vmatprep.subr.bf16.mxu0 %v7506_v30  ;;  %v8118_v30 = vld [vmem:[%s9146_s5] sm:$0x3] }
 0x1cd   :  { %1979 = vmatpush1.bf16.msra.mxu0 %v7504_v31  ;;  %v427_v31 = vrot.slane %v8118_v30, %v8113_v29 }
 0x1ce   :  { %1980 = vmatprep.subr.bf16.mxu0 %v7509_v32 }
 0x1d1   :  { %1981 = vmatpush1.bf16.msra.mxu0 %v7507_v33 }
 0x1d2   :  { %1982 = vmatprep.subr.bf16.mxu0 %v7512_v34 }
 0x1d5   :  { %1983 = vmatpush1.bf16.msra.mxu0 %v7510_v35 }
 0x1d6   :  { %1984 = vmatprep.subr.bf16.mxu0 %v7515_v36  ;;  %v2063_v36 = vld [vmem:[%s9143_s2 + $0x88] sm:$0xff] }
 0x1d9   :  { %1985 = vmatpush1.bf16.msra.mxu0 %v7513_v37  ;;  %v2071_v37 = vld [vmem:[%s9143_s2 + $0xc8] sm:$0xff] }
 0x1da   :  { %1986 = vmatprep.subr.bf16.mxu0 %v7518_v39 }
 0x1dd   :  { %1987 = vmatpush1.bf16.msra.mxu0 %v7516_v41 }
 0x1de   :  { %1988 = vmatprep.subr.bf16.mxu0 %v7521_v43  ;;  %v6605_v43 = vcombine.high %v2063_v36, %v2071_v37 }
 0x1e1   :  { %1989 = vmatpush1.bf16.msra.mxu0 %v7519_v44  ;;  %v2079_v44 = vld [vmem:[%s9143_s2 + $0x108] sm:$0xff] }
 0x1e2   :  { %1990 = vmatprep.subr.bf16.mxu0 %v7524_v46  ;;  %v6604_v46 = vcombine.low %v2063_v36, %v2071_v37  ;;  %v2160_v36 = vld [vmem:[%s9143_s2 + $0x390] sm:$0xff] }
 0x1e3   :  { %v2168_v37 = vld [vmem:[%s9143_s2 + $0x3d0] sm:$0xff] }
 0x1e5   :  { %1991 = vmatpush1.bf16.msra.mxu0 %v7522_v47  ;;  %v6621_v47 = vcombine.high %v2079_v44, %v2087_v45 }
 0x1e6   :  { %2001 = vmatprep.subr.bf16.mxu0 %v7527_v49  ;;  %v2103_v49 = vld [vmem:[%s9143_s2 + $0x1c8] sm:$0xff] }
 0x1e8   :  { %1993 = vmatmul.mubr.bf16.vlgmr.msra.gmra.mrb[0].mxu0 %v157_v50  ;;  %v6620_v50 = vcombine.low %v2079_v44, %v2087_v45  ;;  %v2057_v44 = vld [vmem:[%s9143_s2 + $0x58] sm:$0xff]  ;;  %v6702_v45 = vcombine.low %v2160_v36, %v2168_v37 }
 0x1e9   :  { %2002 = vmatpush1.bf16.msra.mxu0 %v7525_v38  ;;  %2033 = vmatprep.mubr.bf16.mxu0 %v160_v51  ;;  %v6637_v38 = vcombine.high %v2095_v48, %v2103_v49  ;;  %v2111_v51 = vld [vmem:[%s9143_s2 + $0x208] sm:$0xff] }
 0x1ea   :  { %2003 = vmatprep.subr.bf16.mxu0 %v7530_v52  ;;  %v2119_v52 = vld [vmem:[%s9143_s2 + $0x248] sm:$0xff] }
 0x1ed   :  { %2004 = vmatpush1.bf16.msra.mxu0 %v7528_v53  ;;  %v6636_v53 = vcombine.low %v2095_v48, %v2103_v49  ;;  %v2073_v48 = vld [vmem:[%s9143_s2 + $0xd8] sm:$0xff] }
 0x1ee   :  { %2005 = vmatprep.subr.bf16.mxu0 %v7533_v54  ;;  %v6653_v54 = vcombine.high %v2111_v51, %v2119_v52 }
 0x1f1   :  { %2006 = vmatpush1.bf16.msra.mxu0 %v7531_v55  ;;  %v2127_v55 = vld [vmem:[%s9143_s2 + $0x288] sm:$0xff] }
 0x1f2   :  { %2007 = vmatprep.subr.bf16.mxu0 %v7536_v56  ;;  %v2135_v56 = vld [vmem:[%s9143_s2 + $0x2c8] sm:$0xff] }
 0x1f5   :  { %2008 = vmatpush1.bf16.msra.mxu0 %v7534_v57  ;;  %v6652_v57 = vcombine.low %v2111_v51, %v2119_v52  ;;  %v2089_v51 = vld [vmem:[%s9143_s2 + $0x158] sm:$0xff] }
 0x1f6   :  { %2009 = vmatprep.subr.bf16.mxu0 %v7539_v58  ;;  %v6669_v58 = vcombine.high %v2127_v55, %v2135_v56 }
 0x1f9   :  { %2010 = vmatpush1.bf16.msra.mxu0 %v7537_v40  ;;  %v2143_v40 = vld [vmem:[%s9143_s2 + $0x308] sm:$0xff] }
 0x1fa   :  { %2011 = vmatprep.subr.bf16.mxu0 %v7542_v59  ;;  %v2151_v59 = vld [vmem:[%s9143_s2 + $0x348] sm:$0xff] }
 0x1fd   :  { %2012 = vmatpush1.bf16.msra.mxu0 %v7540_v60  ;;  %v6668_v60 = vcombine.low %v2127_v55, %v2135_v56  ;;  %v2105_v55 = vld [vmem:[%s9143_s2 + $0x1d8] sm:$0xff] }
 0x1fe   :  { %2013 = vmatprep.subr.bf16.mxu0 %v7545_v61  ;;  %v6685_v61 = vcombine.high %v2143_v40, %v2151_v59 }
 0x201   :  { %2014 = vmatpush1.bf16.msra.mxu0 %v7543_v62  ;;  %v2159_v62 = vld [vmem:[%s9143_s2 + $0x388] sm:$0xff] }
 0x202   :  { %2015 = vmatprep.subr.bf16.mxu0 %v7548_v63  ;;  %v2167_v63 = vld [vmem:[%s9143_s2 + $0x3c8] sm:$0xff] }
 0x205   :  { %2016 = vmatpush1.bf16.msra.mxu0 %v7546_v0  ;;  %v6684_v0 = vcombine.low %v2143_v40, %v2151_v59  ;;  %v2121_v40 = vld [vmem:[%s9143_s2 + $0x258] sm:$0xff] }
 0x206   :  { %2017 = vmatprep.subr.bf16.mxu0 %v7551_v1  ;;  %v6701_v1 = vcombine.high %v2159_v62, %v2167_v63 }
 0x209   :  { %2018 = vmatpush1.bf16.msra.mxu0 %v7549_v2  ;;  %v2048_v2 = vld [vmem:[%s9143_s2 + $0x10] sm:$0xff] }
 0x20a   :  { %2019 = vmatprep.subr.bf16.mxu0 %v7554_v3  ;;  %v2056_v3 = vld [vmem:[%s9143_s2 + $0x50] sm:$0xff] }
 0x20d   :  { %2020 = vmatpush1.bf16.msra.mxu0 %v7552_v4  ;;  %v6700_v4 = vcombine.low %v2159_v62, %v2167_v63  ;;  %v2137_v62 = vld [vmem:[%s9143_s2 + $0x2d8] sm:$0xff] }
 0x20e   :  { %2021 = vmatprep.subr.bf16.mxu0 %v7557_v5  ;;  %v6591_v5 = vcombine.high %v2048_v2, %v2056_v3 }
 0x211   :  { %2022 = vmatpush1.bf16.msra.mxu0 %v7555_v6  ;;  %v2064_v6 = vld [vmem:[%s9143_s2 + $0x90] sm:$0xff] }
 0x212   :  { %2023 = vmatprep.subr.bf16.mxu0 %v7560_v7  ;;  %v2072_v7 = vld [vmem:[%s9143_s2 + $0xd0] sm:$0xff] }
 0x215   :  { %2024 = vmatpush1.bf16.msra.mxu0 %v7558_v8  ;;  %v6590_v8 = vcombine.low %v2048_v2, %v2056_v3  ;;  %v2153_v2 = vld [vmem:[%s9143_s2 + $0x358] sm:$0xff] }
 0x216   :  { %2025 = vmatprep.subr.bf16.mxu0 %v7563_v9  ;;  %v6607_v9 = vcombine.high %v2064_v6, %v2072_v7 }
 0x219   :  { %2026 = vmatpush1.bf16.msra.mxu0 %v7561_v10  ;;  %v2080_v10 = vld [vmem:[%s9143_s2 + $0x110] sm:$0xff] }
 0x21a   :  { %2027 = vmatprep.subr.bf16.mxu0 %v7566_v11  ;;  %v2088_v11 = vld [vmem:[%s9143_s2 + $0x150] sm:$0xff] }
 0x21d   :  { %2028 = vmatpush1.bf16.msra.mxu0 %v7564_v12  ;;  %v6606_v12 = vcombine.low %v2064_v6, %v2072_v7  ;;  %v2169_v6 = vld [vmem:[%s9143_s2 + $0x3d8] sm:$0xff] }
 0x21e   :  { %2029 = vmatprep.subr.bf16.mxu0 %v7569_v14  ;;  %v6623_v14 = vcombine.high %v2080_v10, %v2088_v11 }
 0x221   :  { %2030 = vmatpush1.bf16.msra.mxu0 %v7567_v15  ;;  %v2096_v15 = vld [vmem:[%s9143_s2 + $0x190] sm:$0xff] }
 0x222   :  { %2031 = vmatprep.subr.bf16.mxu0 %v7572_v17  ;;  %v2104_v17 = vld [vmem:[%s9143_s2 + $0x1d0] sm:$0xff] }
 0x223   :  { %v6638_v22 = vcombine.low %v2096_v15, %v2104_v17 }
 0x225   :  { %2032 = vmatpush1.bf16.msra.mxu0 %v7570_v18  ;;  %v6622_v18 = vcombine.low %v2080_v10, %v2088_v11  ;;  %v2058_v10 = vld [vmem:[%s9143_s2 + $0x60] sm:$0xff] }
 0x228   :  { %2034 = vmatmul.mubr.bf16.vlgmr.msra.gmra.mrb[0].mxu0 %v159_v19  ;;  %v6639_v19 = vcombine.high %v2096_v15, %v2104_v17  ;;  %v2074_v15 = vld [vmem:[%s9143_s2 + $0xe0] sm:$0xff] }
 0x2fb   :  { %v2035_v32 = vpop.f32.mrb[0].mxu0 }
 0x2fc   :  { %v7147_v33 = vadd.f32 %v2035_v32, %v427_v31  ;;  %v8122_v34 = vpop.f32.mrb[1].mxu0  ;;  %v2144_v31 = vld [vmem:[%s9143_s2 + $0x310] sm:$0xff] }
 0x2fd   :  { %v2039_v35 = vpop.f32.mrb[2].mxu0  ;;  %v2152_v32 = vld [vmem:[%s9143_s2 + $0x350] sm:$0xff] }
 0x2fe   :  { %v2042_v39 = vmax.f32 %v7147_v33, 0.0  ;;  %v2040_v41 = vpop.f32.mrb[3].mxu0  ;;  %v6670_v33 = vcombine.low %v2128_v24, %v2136_v25  ;;  %v6687_v35 = vcombine.high %v2144_v31, %v2152_v32 }
 0x2ff   :  { %v6703_v41 = vcombine.high %v2160_v36, %v2168_v37  ;;  %v2138_v36 = vld [vmem:[%s9143_s2 + $0x2e0] sm:$0xff] }
 0x300   :  { %v8130_v42 = vpack.c.bf16 %v2042_v39, %v2042_v39  ;;  %v6686_v39 = vcombine.low %v2144_v31, %v2152_v32  ;;  %v2122_v31 = vld [vmem:[%s9143_s2 + $0x260] sm:$0xff] }
 0x302   :  { %2929 = vmatmul.mubr.bf16.vlgmr.msra.gmra.mrb[0].mxu1 %v8130_v42 }
 0x303   :  { %2938 = vmatpush1.bf16.msra.mxu1 %v6588_v27  ;;  %2969 = vmatprep.mubr.bf16.mxu1 %v7913_v28  ;;  %v6671_v27 = vcombine.high %v2128_v24, %v2136_v25  ;;  %v2106_v24 = vld [vmem:[%s9143_s2 + $0x1e0] sm:$0xff] }
 0x304   :  { %2939 = vmatprep.subr.bf16.mxu1 %v6605_v43  ;;  %v2049_v43 = vld [vmem:[%s9143_s2 + $0x18] sm:$0xff] }
 0x305   :  { %v6592_v49 = vcombine.low %v2049_v43, %v2057_v44 }
 0x307   :  { %2940 = vmatpush1.bf16.msra.mxu1 %v6604_v46  ;;  %v6593_v46 = vcombine.high %v2049_v43, %v2057_v44  ;;  %v2154_v43 = vld [vmem:[%s9143_s2 + $0x360] sm:$0xff] }
 0x308   :  { %2941 = vmatprep.subr.bf16.mxu1 %v6621_v47  ;;  %v2065_v47 = vld [vmem:[%s9143_s2 + $0x98] sm:$0xff] }
 0x309   :  { %v6608_v52 = vcombine.low %v2065_v47, %v2073_v48 }
 0x30b   :  { %2942 = vmatpush1.bf16.msra.mxu1 %v6620_v50  ;;  %v6609_v50 = vcombine.high %v2065_v47, %v2073_v48  ;;  %v2170_v47 = vld [vmem:[%s9143_s2 + $0x3e0] sm:$0xff] }
 0x30c   :  { %2943 = vmatprep.subr.bf16.mxu1 %v6637_v38  ;;  %v2081_v38 = vld [vmem:[%s9143_s2 + $0x118] sm:$0xff] }
 0x30d   :  { %v6624_v56 = vcombine.low %v2081_v38, %v2089_v51 }
 0x30f   :  { %2944 = vmatpush1.bf16.msra.mxu1 %v6636_v53  ;;  %v6625_v53 = vcombine.high %v2081_v38, %v2089_v51  ;;  %v2059_v38 = vld [vmem:[%s9143_s2 + $0x68] sm:$0xff] }
 0x310   :  { %2945 = vmatprep.subr.bf16.mxu1 %v6653_v54  ;;  %v2097_v54 = vld [vmem:[%s9143_s2 + $0x198] sm:$0xff] }
 0x311   :  { %v6640_v59 = vcombine.low %v2097_v54, %v2105_v55 }
 0x313   :  { %2946 = vmatpush1.bf16.msra.mxu1 %v6652_v57  ;;  %v6641_v57 = vcombine.high %v2097_v54, %v2105_v55  ;;  %v2075_v54 = vld [vmem:[%s9143_s2 + $0xe8] sm:$0xff] }
 0x314   :  { %2947 = vmatprep.subr.bf16.mxu1 %v6669_v58  ;;  %v2113_v58 = vld [vmem:[%s9143_s2 + $0x218] sm:$0xff] }
 0x315   :  { %v6656_v63 = vcombine.low %v2113_v58, %v2121_v40 }
 0x317   :  { %2948 = vmatpush1.bf16.msra.mxu1 %v6668_v60  ;;  %v6657_v60 = vcombine.high %v2113_v58, %v2121_v40  ;;  %v2091_v58 = vld [vmem:[%s9143_s2 + $0x168] sm:$0xff] }
 0x318   :  { %2949 = vmatprep.subr.bf16.mxu1 %v6685_v61  ;;  %v2129_v61 = vld [vmem:[%s9143_s2 + $0x298] sm:$0xff] }
 0x319   :  { %v6672_v3 = vcombine.low %v2129_v61, %v2137_v62 }
 0x31b   :  { %2950 = vmatpush1.bf16.msra.mxu1 %v6684_v0  ;;  %v6673_v0 = vcombine.high %v2129_v61, %v2137_v62  ;;  %v2107_v61 = vld [vmem:[%s9143_s2 + $0x1e8] sm:$0xff] }
 0x31c   :  { %2951 = vmatprep.subr.bf16.mxu1 %v6701_v1  ;;  %v2145_v1 = vld [vmem:[%s9143_s2 + $0x318] sm:$0xff] }
 0x31d   :  { %v6688_v7 = vcombine.low %v2145_v1, %v2153_v2 }
 0x31f   :  { %2952 = vmatpush1.bf16.msra.mxu1 %v6700_v4  ;;  %v6689_v4 = vcombine.high %v2145_v1, %v2153_v2  ;;  %v2123_v1 = vld [vmem:[%s9143_s2 + $0x268] sm:$0xff] }
 0x320   :  { %2978 = vmatprep.subr.bf16.mxu1 %v6591_v5  ;;  %v2161_v5 = vld [vmem:[%s9143_s2 + $0x398] sm:$0xff] }
 0x321   :  { %v6704_v11 = vcombine.low %v2161_v5, %v2169_v6 }
 0x322   :  { %2970 = vmatmul.mubr.bf16.vlgmr.msra.gmra.mrb[4].mxu1 %v8130_v42 }
 0x323   :  { %2979 = vmatpush1.bf16.msra.mxu1 %v6590_v8  ;;  %3010 = vmatprep.mubr.bf16.mxu1 %v7913_v28  ;;  %v6705_v8 = vcombine.high %v2161_v5, %v2169_v6  ;;  %v2139_v5 = vld [vmem:[%s9143_s2 + $0x2e8] sm:$0xff] }
 0x324   :  { %2980 = vmatprep.subr.bf16.mxu1 %v6607_v9  ;;  %v2050_v9 = vld [vmem:[%s9143_s2 + $0x20] sm:$0xff] }
 0x325   :  { %v6594_v17 = vcombine.low %v2050_v9, %v2058_v10 }
 0x327   :  { %2981 = vmatpush1.bf16.msra.mxu1 %v6606_v12  ;;  %v6595_v12 = vcombine.high %v2050_v9, %v2058_v10  ;;  %v2155_v9 = vld [vmem:[%s9143_s2 + $0x368] sm:$0xff] }
 0x328   :  { %2982 = vmatprep.subr.bf16.mxu1 %v6623_v14  ;;  %v2066_v14 = vld [vmem:[%s9143_s2 + $0xa0] sm:$0xff] }
 0x329   :  { %v6610_v21 = vcombine.low %v2066_v14, %v2074_v15 }
 0x32b   :  { %2983 = vmatpush1.bf16.msra.mxu1 %v6622_v18  ;;  %v6611_v18 = vcombine.high %v2066_v14, %v2074_v15  ;;  %v2171_v14 = vld [vmem:[%s9143_s2 + $0x3e8] sm:$0xff] }
 0x32c   :  { %2984 = vmatprep.subr.bf16.mxu1 %v6639_v19  ;;  %v2082_v19 = vld [vmem:[%s9143_s2 + $0x120] sm:$0xff] }
 0x32d   :  { %v6626_v25 = vcombine.low %v2082_v19, %v2090_v20 }
 0x32f   :  { %2985 = vmatpush1.bf16.msra.mxu1 %v6638_v22  ;;  %v6627_v22 = vcombine.high %v2082_v19, %v2090_v20  ;;  %v2060_v19 = vld [vmem:[%s9143_s2 + $0x70] sm:$0xff] }
 0x330   :  { %2986 = vmatprep.subr.bf16.mxu1 %v6655_v23  ;;  %v2098_v23 = vld [vmem:[%s9143_s2 + $0x1a0] sm:$0xff] }
 0x331   :  { %v6642_v32 = vcombine.low %v2098_v23, %v2106_v24 }
 0x333   :  { %2987 = vmatpush1.bf16.msra.mxu1 %v6654_v26  ;;  %v6643_v26 = vcombine.high %v2098_v23, %v2106_v24  ;;  %v2076_v23 = vld [vmem:[%s9143_s2 + $0xf0] sm:$0xff] }
 0x334   :  { %2988 = vmatprep.subr.bf16.mxu1 %v6671_v27  ;;  %v2114_v27 = vld [vmem:[%s9143_s2 + $0x220] sm:$0xff] }
 0x335   :  { %v6658_v37 = vcombine.low %v2114_v27, %v2122_v31 }
 0x337   :  { %2989 = vmatpush1.bf16.msra.mxu1 %v6670_v33  ;;  %v6659_v33 = vcombine.high %v2114_v27, %v2122_v31  ;;  %v2092_v27 = vld [vmem:[%s9143_s2 + $0x170] sm:$0xff] }
 0x338   :  { %2990 = vmatprep.subr.bf16.mxu1 %v6687_v35  ;;  %v2130_v35 = vld [vmem:[%s9143_s2 + $0x2a0] sm:$0xff] }
 0x339   :  { %v6674_v44 = vcombine.low %v2130_v35, %v2138_v36 }
 0x33b   :  { %2991 = vmatpush1.bf16.msra.mxu1 %v6686_v39  ;;  %v6675_v39 = vcombine.high %v2130_v35, %v2138_v36  ;;  %v2108_v35 = vld [vmem:[%s9143_s2 + $0x1f0] sm:$0xff] }
 0x33c   :  { %2992 = vmatprep.subr.bf16.mxu1 %v6703_v41  ;;  %v2146_v41 = vld [vmem:[%s9143_s2 + $0x320] sm:$0xff] }
 0x33d   :  { %v6690_v48 = vcombine.low %v2146_v41, %v2154_v43 }
 0x33f   :  { %2993 = vmatpush1.bf16.msra.mxu1 %v6702_v45  ;;  %v6691_v45 = vcombine.high %v2146_v41, %v2154_v43  ;;  %v2124_v41 = vld [vmem:[%s9143_s2 + $0x270] sm:$0xff] }
 0x340   :  { %3019 = vmatprep.subr.bf16.mxu1 %v6593_v46  ;;  %v2162_v46 = vld [vmem:[%s9143_s2 + $0x3a0] sm:$0xff] }
 0x341   :  { %v6706_v51 = vcombine.low %v2162_v46, %v2170_v47 }
 0x342   :  { %3011 = vmatmul.mubr.bf16.vlgmr.msra.gmra.mrb[8].mxu1 %v8130_v42 }
 0x343   :  { %3020 = vmatpush1.bf16.msra.mxu1 %v6592_v49  ;;  %3051 = vmatprep.mubr.bf16.mxu1 %v7913_v28  ;;  %v6707_v49 = vcombine.high %v2162_v46, %v2170_v47  ;;  %v2140_v46 = vld [vmem:[%s9143_s2 + $0x2f0] sm:$0xff] }
 0x344   :  { %3021 = vmatprep.subr.bf16.mxu1 %v6609_v50  ;;  %v2051_v50 = vld [vmem:[%s9143_s2 + $0x28] sm:$0xff] }
 0x345   :  { %v6596_v55 = vcombine.low %v2051_v50, %v2059_v38 }
 0x347   :  { %3022 = vmatpush1.bf16.msra.mxu1 %v6608_v52  ;;  %v6597_v52 = vcombine.high %v2051_v50, %v2059_v38  ;;  %v2156_v50 = vld [vmem:[%s9143_s2 + $0x370] sm:$0xff] }
 0x348   :  { %3023 = vmatprep.subr.bf16.mxu1 %v6625_v53  ;;  %v2067_v53 = vld [vmem:[%s9143_s2 + $0xa8] sm:$0xff] }
 0x349   :  { %v6612_v40 = vcombine.low %v2067_v53, %v2075_v54 }
 0x34b   :  { %3024 = vmatpush1.bf16.msra.mxu1 %v6624_v56  ;;  %v6613_v56 = vcombine.high %v2067_v53, %v2075_v54  ;;  %v2172_v53 = vld [vmem:[%s9143_s2 + $0x3f0] sm:$0xff] }
 0x34c   :  { %3025 = vmatprep.subr.bf16.mxu1 %v6641_v57  ;;  %v2083_v57 = vld [vmem:[%s9143_s2 + $0x128] sm:$0xff] }
 0x34d   :  { %v6628_v62 = vcombine.low %v2083_v57, %v2091_v58 }
 0x34f   :  { %3026 = vmatpush1.bf16.msra.mxu1 %v6640_v59  ;;  %v6629_v59 = vcombine.high %v2083_v57, %v2091_v58  ;;  %v2061_v57 = vld [vmem:[%s9143_s2 + $0x78] sm:$0xff] }
 0x350   :  { %3027 = vmatprep.subr.bf16.mxu1 %v6657_v60  ;;  %v2099_v60 = vld [vmem:[%s9143_s2 + $0x1a8] sm:$0xff] }
 0x351   :  { %v6644_v2 = vcombine.low %v2099_v60, %v2107_v61 }
 0x353   :  { %3028 = vmatpush1.bf16.msra.mxu1 %v6656_v63  ;;  %v6645_v63 = vcombine.high %v2099_v60, %v2107_v61  ;;  %v2077_v60 = vld [vmem:[%s9143_s2 + $0xf8] sm:$0xff] }
 0x354   :  { %3029 = vmatprep.subr.bf16.mxu1 %v6673_v0  ;;  %v2115_v0 = vld [vmem:[%s9143_s2 + $0x228] sm:$0xff] }
 0x355   :  { %v6660_v6 = vcombine.low %v2115_v0, %v2123_v1 }
 0x357   :  { %3030 = vmatpush1.bf16.msra.mxu1 %v6672_v3  ;;  %v6661_v3 = vcombine.high %v2115_v0, %v2123_v1  ;;  %v2093_v0 = vld [vmem:[%s9143_s2 + $0x178] sm:$0xff] }
 0x358   :  { %3031 = vmatprep.subr.bf16.mxu1 %v6689_v4  ;;  %v2131_v4 = vld [vmem:[%s9143_s2 + $0x2a8] sm:$0xff] }
 0x359   :  { %v6676_v10 = vcombine.low %v2131_v4, %v2139_v5 }
 0x35b   :  { %3032 = vmatpush1.bf16.msra.mxu1 %v6688_v7  ;;  %v6677_v7 = vcombine.high %v2131_v4, %v2139_v5  ;;  %v2109_v4 = vld [vmem:[%s9143_s2 + $0x1f8] sm:$0xff] }
 0x35c   :  { %3033 = vmatprep.subr.bf16.mxu1 %v6705_v8  ;;  %v2147_v8 = vld [vmem:[%s9143_s2 + $0x328] sm:$0xff] }
 0x35d   :  { %v6692_v15 = vcombine.low %v2147_v8, %v2155_v9 }
 0x35f   :  { %3034 = vmatpush1.bf16.msra.mxu1 %v6704_v11  ;;  %v6693_v11 = vcombine.high %v2147_v8, %v2155_v9  ;;  %v2125_v8 = vld [vmem:[%s9143_s2 + $0x278] sm:$0xff] }
 0x360   :  { %3060 = vmatprep.subr.bf16.mxu1 %v6595_v12  ;;  %v2163_v12 = vld [vmem:[%s9143_s2 + $0x3a8] sm:$0xff] }
 0x361   :  { %v6708_v20 = vcombine.low %v2163_v12, %v2171_v14 }
 0x362   :  { %3052 = vmatmul.mubr.bf16.vlgmr.msra.gmra.mrb[12].mxu1 %v8130_v42 }
 0x363   :  { %3061 = vmatpush1.bf16.msra.mxu1 %v6594_v17  ;;  %3092 = vmatprep.mubr.bf16.mxu1 %v7913_v28  ;;  %v6709_v17 = vcombine.high %v2163_v12, %v2171_v14  ;;  %v2141_v12 = vld [vmem:[%s9143_s2 + $0x2f8] sm:$0xff] }
 0x364   :  { %3062 = vmatprep.subr.bf16.mxu1 %v6611_v18  ;;  %v2052_v18 = vld [vmem:[%s9143_s2 + $0x30] sm:$0xff] }
 0x365   :  { %v6598_v24 = vcombine.low %v2052_v18, %v2060_v19 }
 0x367   :  { %3063 = vmatpush1.bf16.msra.mxu1 %v6610_v21  ;;  %v6599_v21 = vcombine.high %v2052_v18, %v2060_v19  ;;  %v8464_v18 = vsub.s32 1, %v7975_v13  ;;  %v2149_v19 = vld [vmem:[%s9143_s2 + $0x338] sm:$0xff] }
 0x368   :  { %3064 = vmatprep.subr.bf16.mxu1 %v6627_v22  ;;  %v2068_v22 = vld [vmem:[%s9143_s2 + $0xb0] sm:$0xff] }
 0x369   :  { %v6614_v31 = vcombine.low %v2068_v22, %v2076_v23 }
 0x36b   :  { %3065 = vmatpush1.bf16.msra.mxu1 %v6626_v25  ;;  %v6615_v25 = vcombine.high %v2068_v22, %v2076_v23 }
 0x36c   :  { %3066 = vmatprep.subr.bf16.mxu1 %v6643_v26  ;;  %v2084_v26 = vld [vmem:[%s9143_s2 + $0x130] sm:$0xff] }
 0x36d   :  { %v6630_v36 = vcombine.low %v2084_v26, %v2092_v27 }
 0x36f   :  { %3067 = vmatpush1.bf16.msra.mxu1 %v6642_v32  ;;  %v6631_v32 = vcombine.high %v2084_v26, %v2092_v27  ;;  %v2165_v26 = vld [vmem:[%s9143_s2 + $0x3b8] sm:$0xff] }
 0x370   :  { %3068 = vmatprep.subr.bf16.mxu1 %v6659_v33  ;;  %v2100_v33 = vld [vmem:[%s9143_s2 + $0x1b0] sm:$0xff]  ;;  %v2173_v27 = vld [vmem:[%s9143_s2 + $0x3f8] sm:$0xff] }
 0x371   :  { %v6646_v43 = vcombine.low %v2100_v33, %v2108_v35 }
 0x373   :  { %3069 = vmatpush1.bf16.msra.mxu1 %v6658_v37  ;;  %v6647_v37 = vcombine.high %v2100_v33, %v2108_v35 }
 0x374   :  { %3070 = vmatprep.subr.bf16.mxu1 %v6675_v39  ;;  %v2116_v39 = vld [vmem:[%s9143_s2 + $0x230] sm:$0xff] }
 0x375   :  { %v6662_v47 = vcombine.low %v2116_v39, %v2124_v41 }
 0x377   :  { %3071 = vmatpush1.bf16.msra.mxu1 %v6674_v44  ;;  %v6663_v44 = vcombine.high %v2116_v39, %v2124_v41  ;;  %v6713_v41 = vcombine.high %v2165_v26, %v2173_v27 }
 0x378   :  { %3072 = vmatprep.subr.bf16.mxu1 %v6691_v45  ;;  %v2132_v45 = vld [vmem:[%s9143_s2 + $0x2b0] sm:$0xff] }
 0x379   :  { %v6678_v38 = vcombine.low %v2132_v45, %v2140_v46 }
 0x37b   :  { %3073 = vmatpush1.bf16.msra.mxu1 %v6690_v48  ;;  %v6679_v48 = vcombine.high %v2132_v45, %v2140_v46  ;;  %v3312_v45 = vld [vmem:[#allocation5 + $0x40] sm:$0xff] }
 0x37c   :  { %3074 = vmatprep.subr.bf16.mxu1 %v6707_v49  ;;  %v2148_v49 = vld [vmem:[%s9143_s2 + $0x330] sm:$0xff] }
 0x37d   :  { %v6694_v54 = vcombine.low %v2148_v49, %v2156_v50 }
 0x37f   :  { %3075 = vmatpush1.bf16.msra.mxu1 %v6706_v51  ;;  %v6695_v51 = vcombine.high %v2148_v49, %v2156_v50  ;;  %v3320_v50 = vld [vmem:[#allocation5 + $0x80] sm:$0xff] }
 0x380   :  { %3101 = vmatprep.subr.bf16.mxu1 %v6597_v52  ;;  %v2164_v52 = vld [vmem:[%s9143_s2 + $0x3b0] sm:$0xff] }
 0x381   :  { %v6710_v58 = vcombine.low %v2164_v52, %v2172_v53 }
 0x382   :  { %3093 = vmatmul.mubr.bf16.vlgmr.msra.gmra.mrb[16].mxu1 %v8130_v42 }
 0x383   :  { %3102 = vmatpush1.bf16.msra.mxu1 %v6596_v55  ;;  %3133 = vmatprep.mubr.bf16.mxu1 %v7913_v28  ;;  %v6711_v55 = vcombine.high %v2164_v52, %v2172_v53  ;;  %v3336_v53 = vld [vmem:[#allocation5 + $0x100] sm:$0xff] }
 0x384   :  { %3103 = vmatprep.subr.bf16.mxu1 %v6613_v56  ;;  %v2053_v56 = vld [vmem:[%s9143_s2 + $0x38] sm:$0xff] }
 0x385   :  { %v6600_v61 = vcombine.low %v2053_v56, %v2061_v57 }
 0x387   :  { %3104 = vmatpush1.bf16.msra.mxu1 %v6612_v40  ;;  %v6601_v40 = vcombine.high %v2053_v56, %v2061_v57  ;;  %v3352_v57 = vld [vmem:[#allocation5 + $0x180] sm:$0xff] }
 0x388   :  { %3105 = vmatprep.subr.bf16.mxu1 %v6629_v59  ;;  %v2069_v59 = vld [vmem:[%s9143_s2 + $0xb8] sm:$0xff] }
 0x389   :  { %v6616_v1 = vcombine.low %v2069_v59, %v2077_v60 }
 0x38b   :  { %3106 = vmatpush1.bf16.msra.mxu1 %v6628_v62  ;;  %v6617_v62 = vcombine.high %v2069_v59, %v2077_v60 }
 0x38c   :  { %3107 = vmatprep.subr.bf16.mxu1 %v6645_v63  ;;  %v2085_v63 = vld [vmem:[%s9143_s2 + $0x138] sm:$0xff] }
 0x38d   :  { %v6632_v5 = vcombine.low %v2085_v63, %v2093_v0 }
 0x38f   :  { %3108 = vmatpush1.bf16.msra.mxu1 %v6644_v2  ;;  %v6633_v2 = vcombine.high %v2085_v63, %v2093_v0  ;;  %v3368_v0 = vld [vmem:[#allocation5 + $0x200] sm:$0xff] }
 0x390   :  { %3109 = vmatprep.subr.bf16.mxu1 %v6661_v3  ;;  %v2101_v3 = vld [vmem:[%s9143_s2 + $0x1b8] sm:$0xff] }
 0x391   :  { %v6648_v9 = vcombine.low %v2101_v3, %v2109_v4 }
 0x393   :  { %3110 = vmatpush1.bf16.msra.mxu1 %v6660_v6  ;;  %v6649_v6 = vcombine.high %v2101_v3, %v2109_v4  ;;  %v3384_v3 = vld [vmem:[#allocation5 + $0x280] sm:$0xff] }
 0x394   :  { %3111 = vmatprep.subr.bf16.mxu1 %v6677_v7  ;;  %v2117_v7 = vld [vmem:[%s9143_s2 + $0x238] sm:$0xff]  ;;  %v3392_v4 = vld [vmem:[#allocation5 + $0x2c0] sm:$0xff] }
 0x395   :  { %v6664_v14 = vcombine.low %v2117_v7, %v2125_v8 }
 0x397   :  { %3112 = vmatpush1.bf16.msra.mxu1 %v6676_v10  ;;  %v6665_v10 = vcombine.high %v2117_v7, %v2125_v8  ;;  %v8488_v7 = vsub.s32 3, %v7975_v13  ;;  %v6795_v8 = vcombine.high %v3384_v3, %v3392_v4 }
 0x398   :  { %3113 = vmatprep.subr.bf16.mxu1 %v6693_v11  ;;  %v2133_v11 = vld [vmem:[%s9143_s2 + $0x2b8] sm:$0xff] }
 0x399   :  { %v6680_v22 = vcombine.low %v2133_v11, %v2141_v12 }
 0x39b   :  { %3114 = vmatpush1.bf16.msra.mxu1 %v6692_v15  ;;  %v8461_v15 = vld [vmem:[%s9146_s5 + $0x2] sm:$0xff] }
 0x39c   :  { %3115 = vmatprep.subr.bf16.mxu1 %v6709_v17  ;;  %v6681_v17 = vcombine.high %v2133_v11, %v2141_v12  ;;  %v2183_v23 = vrot.slane %v8461_v15, %v8464_v18 }
 0x39f   :  { %3116 = vmatpush1.bf16.msra.mxu1 %v6708_v20  ;;  %v2157_v20 = vld [vmem:[%s9143_s2 + $0x378] sm:$0xff] }
 0x3a0   :  { %3142 = vmatprep.subr.bf16.mxu1 %v6599_v21  ;;  %v2179_v21 = vrot.slane %v8461_v15, %v8113_v29 }
 0x3a2   :  { %3134 = vmatmul.mubr.bf16.vlgmr.msra.gmra.mrb[20].mxu1 %v8130_v42 }
 0x3a3   :  { %3143 = vmatpush1.bf16.msra.mxu1 %v6598_v24  ;;  %3174 = vmatprep.mubr.bf16.mxu1 %v7913_v28  ;;  %v6697_v24 = vcombine.high %v2149_v19, %v2157_v20 }
 0x3a4   :  { %3144 = vmatprep.subr.bf16.mxu1 %v6615_v25 }
 0x3a7   :  { %3145 = vmatpush1.bf16.msra.mxu1 %v6614_v31 }
 0x3a8   :  { %3146 = vmatprep.subr.bf16.mxu1 %v6631_v32 }
 0x3ab   :  { %3147 = vmatpush1.bf16.msra.mxu1 %v6630_v36  ;;  %v6696_v36 = vcombine.low %v2149_v19, %v2157_v20  ;;  %v431_v20 = vrot.slane %v8118_v30, %v8464_v18 }
 0x3ac   :  { %3148 = vmatprep.subr.bf16.mxu1 %v6647_v37 }
 0x3af   :  { %3149 = vmatpush1.bf16.msra.mxu1 %v6646_v43 }
 0x3b0   :  { %3150 = vmatprep.subr.bf16.mxu1 %v6663_v44  ;;  %v3304_v44 = vld [vmem:[#allocation5] sm:$0xff] }
 0x3b1   :  { %v6715_v49 = vcombine.high %v3304_v44, %v3312_v45 }
 0x3b3   :  { %3151 = vmatpush1.bf16.msra.mxu1 %v6662_v47 }
 0x3b4   :  { %3152 = vmatprep.subr.bf16.mxu1 %v6679_v48  ;;  %v6712_v48 = vcombine.low %v2165_v26, %v2173_v27 }
 0x3b7   :  { %3153 = vmatpush1.bf16.msra.mxu1 %v6678_v38  ;;  %v3328_v38 = vld [vmem:[#allocation5 + $0xc0] sm:$0xff] }
 0x3b8   :  { %3154 = vmatprep.subr.bf16.mxu1 %v6695_v51  ;;  %v6714_v51 = vcombine.low %v3304_v44, %v3312_v45  ;;  %v6731_v52 = vcombine.high %v3320_v50, %v3328_v38 }
 0x3bb   :  { %3155 = vmatpush1.bf16.msra.mxu1 %v6694_v54  ;;  %v3344_v54 = vld [vmem:[#allocation5 + $0x140] sm:$0xff] }
 0x3bc   :  { %3156 = vmatprep.subr.bf16.mxu1 %v6711_v55  ;;  %v6730_v55 = vcombine.low %v3320_v50, %v3328_v38  ;;  %v6747_v56 = vcombine.high %v3336_v53, %v3344_v54  ;;  %v3329_v50 = vld [vmem:[#allocation5 + $0xc8] sm:$0xff] }
 0x3bf   :  { %3157 = vmatpush1.bf16.msra.mxu1 %v6710_v58  ;;  %v3360_v58 = vld [vmem:[#allocation5 + $0x1c0] sm:$0xff] }
 0x3c0   :  { %3183 = vmatprep.subr.bf16.mxu1 %v6601_v40  ;;  %v6763_v63 = vcombine.high %v3352_v57, %v3360_v58 }
 0x3c2   :  { %3175 = vmatmul.mubr.bf16.vlgmr.msra.gmra.mrb[24].mxu1 %v8130_v42 }
 0x3c3   :  { %3184 = vmatpush1.bf16.msra.mxu1 %v6600_v61  ;;  %3215 = vmatprep.mubr.bf16.mxu1 %v7913_v28  ;;  %v6746_v61 = vcombine.low %v3336_v53, %v3344_v54  ;;  %v3345_v53 = vld [vmem:[#allocation5 + $0x148] sm:$0xff] }
 0x3c4   :  { %3185 = vmatprep.subr.bf16.mxu1 %v6617_v62 }
 0x3c7   :  { %3186 = vmatpush1.bf16.msra.mxu1 %v6616_v1  ;;  %v3376_v1 = vld [vmem:[#allocation5 + $0x240] sm:$0xff] }
 0x3c8   :  { %3187 = vmatprep.subr.bf16.mxu1 %v6633_v2  ;;  %v6779_v2 = vcombine.high %v3368_v0, %v3376_v1 }
 0x3cb   :  { %3188 = vmatpush1.bf16.msra.mxu1 %v6632_v5  ;;  %v8485_v5 = vsub.s32 2, %v7975_v13 }
 0x3cc   :  { %3189 = vmatprep.subr.bf16.mxu1 %v6649_v6  ;;  %v6778_v6 = vcombine.low %v3368_v0, %v3376_v1  ;;  %v3377_v0 = vld [vmem:[#allocation5 + $0x248] sm:$0xff] }
 0x3cd   :  { %v2187_v11 = vrot.slane %v8461_v15, %v8485_v5 }
 0x3cf   :  { %3190 = vmatpush1.bf16.msra.mxu1 %v6648_v9  ;;  %v3400_v9 = vld [vmem:[#allocation5 + $0x300] sm:$0xff] }
 0x3d0   :  { %3191 = vmatprep.subr.bf16.mxu1 %v6665_v10  ;;  %v3408_v10 = vld [vmem:[#allocation5 + $0x340] sm:$0xff] }
 0x3d3   :  { %3192 = vmatpush1.bf16.msra.mxu1 %v6664_v14  ;;  %v2191_v14 = vrot.slane %v8461_v15, %v8488_v7 }
 0x3d4   :  { %3193 = vmatprep.subr.bf16.mxu1 %v6681_v17  ;;  %v6794_v17 = vcombine.low %v3384_v3, %v3392_v4  ;;  %v3393_v3 = vld [vmem:[#allocation5 + $0x2c8] sm:$0xff]  ;;  %v8508_v4 = vsub.s32 4, %v7975_v13 }
 0x3d5   :  { %v2930_v25 = vpop.f32.mrb[0].mxu1 }
 0x3d6   :  { %v2931_v31 = vadd.f32 %v2930_v25, %v2179_v21  ;;  %v2932_v32 = vpop.f32.mrb[1].mxu1  ;;  %v6811_v21 = vcombine.high %v3400_v9, %v3408_v10  ;;  %v3424_v25 = vld [vmem:[#allocation5 + $0x3c0] sm:$0xff] }
 0x3d7   :  { %v2933_v33 = vadd.f32 %v2932_v32, %v2183_v23  ;;  %3194 = vmatpush1.bf16.msra.mxu1 %v6680_v22  ;;  %v2934_v35 = vpop.f32.mrb[2].mxu1 }
 0x3d8   :  { %v3224_v37 = vsub.f32 0.0, %v2931_v31  ;;  %v2935_v39 = vpop.f32.mrb[3].mxu1  ;;  %3195 = vmatprep.subr.bf16.mxu1 %v6697_v24  ;;  %v3416_v24 = vld [vmem:[#allocation5 + $0x380] sm:$0xff]  ;;  %v7148_v35 = vadd.f32 %v8122_v34, %v431_v20 }
 0x3d9   :  { %v3225_v43 = vsub.f32 0.0, %v2933_v33  ;;  %v6810_v33 = vcombine.low %v3400_v9, %v3408_v10  ;;  %v6827_v30 = vcombine.high %v3416_v24, %v3424_v25  ;;  %v3401_v10 = vld [vmem:[#allocation5 + $0x308] sm:$0xff] }
 0x3da   :  { %v3240_v46 = vmul.f32 1.442695, %v3224_v37 }
 0x3db   :  { %v3242_v47 = vmul.f32 1.442695, %v3225_v43  ;;  %3196 = vmatpush1.bf16.msra.mxu1 %v6696_v36  ;;  %v3313_v43 = vld [vmem:[#allocation5 + $0x48] sm:$0xff] }
 0x3dc   :  { %7702 = vpow2.f32 %v3240_v46  ;;  %3197 = vmatprep.subr.bf16.mxu1 %v6713_v41  ;;  %v3305_v41 = vld [vmem:[#allocation5 + $0x8] sm:$0xff]  ;;  %v6826_v46 = vcombine.low %v3416_v24, %v3424_v25 }
 0x3dd   :  { %7704 = vpow2.f32 %v3242_v47  ;;  %v2043_v47 = vmax.f32 %v7148_v35, 0.0  ;;  %v6716_v34 = vcombine.low %v3305_v41, %v3313_v43 }
 0x3df   :  { %3198 = vmatpush1.bf16.msra.mxu1 %v6712_v48  ;;  %v6717_v48 = vcombine.high %v3305_v41, %v3313_v43  ;;  %v8503_v38 = vpack.c.bf16 %v2043_v47, %v2043_v47  ;;  %v3314_v47 = vld [vmem:[#allocation5 + $0x50] sm:$0xff] }
 0x3e0   :  { %4154 = vmatprep.subr.bf16.mxu1 %v6715_v49  ;;  %v3321_v49 = vld [vmem:[#allocation5 + $0x88] sm:$0xff] }
 0x3e1   :  { %v6732_v54 = vcombine.low %v3321_v49, %v3329_v50 }
 0x3e2   :  { %3216 = vmatmul.mubr.bf16.vlgmr.msra.gmra.mrb[28].mxu1 %v8130_v42  ;;  %v6762_v42 = vcombine.low %v3352_v57, %v3360_v58  ;;  %v3361_v57 = vld [vmem:[#allocation5 + $0x1c8] sm:$0xff] }
 0x3e3   :  { %4155 = vmatpush1.bf16.msra.mxu1 %v6714_v51  ;;  %4186 = vmatprep.mubr.bf16.mxu1 %v7913_v28  ;;  %v6733_v51 = vcombine.high %v3321_v49, %v3329_v50  ;;  %v3322_v50 = vld [vmem:[#allocation5 + $0x90] sm:$0xff] }
 0x3e4   :  { %4156 = vmatprep.subr.bf16.mxu1 %v6731_v52  ;;  %v3337_v52 = vld [vmem:[#allocation5 + $0x108] sm:$0xff] }
 0x3e6   :  { %v7703_v40 = vpop.eup %7702 }
 0x3e7   :  { %v7705_v59 = vpop.eup %7704  ;;  %v3272_v60 = vadd.f32 1.0, %v7703_v40  ;;  %4157 = vmatpush1.bf16.msra.mxu1 %v6730_v55  ;;  %v6749_v55 = vcombine.high %v3337_v52, %v3345_v53 }
 0x3e8   :  { %v3273_v62 = vadd.f32 1.0, %v7705_v59  ;;  %4158 = vmatprep.subr.bf16.mxu1 %v6747_v56  ;;  %v3353_v56 = vld [vmem:[#allocation5 + $0x188] sm:$0xff] }
 0x3e9   :  { %7706 = vrcp.f32 %v3272_v60  ;;  %v6748_v60 = vcombine.low %v3337_v52, %v3345_v53  ;;  %v6764_v1 = vcombine.low %v3353_v56, %v3361_v57  ;;  %v3338_v53 = vld [vmem:[#allocation5 + $0x110] sm:$0xff] }
 0x3ea   :  { %7708 = vrcp.f32 %v3273_v62  ;;  %v6765_v62 = vcombine.high %v3353_v56, %v3361_v57  ;;  %v3354_v57 = vld [vmem:[#allocation5 + $0x190] sm:$0xff] }
 0x3eb   :  { %4159 = vmatpush1.bf16.msra.mxu1 %v6746_v61 }
 0x3ec   :  { %4160 = vmatprep.subr.bf16.mxu1 %v6763_v63  ;;  %v3369_v63 = vld [vmem:[#allocation5 + $0x208] sm:$0xff] }
 0x3ef   :  { %4161 = vmatpush1.bf16.msra.mxu1 %v6762_v42  ;;  %v6781_v42 = vcombine.high %v3369_v63, %v3377_v0 }
 0x3f0   :  { %4162 = vmatprep.subr.bf16.mxu1 %v6779_v2  ;;  %v3385_v2 = vld [vmem:[#allocation5 + $0x288] sm:$0xff] }
 0x3f1   :  { %v6797_v9 = vcombine.high %v3385_v2, %v3393_v3 }
 0x3f3   :  { %v8492_v12 = vpop.eup %7706  ;;  %4163 = vmatpush1.bf16.msra.mxu1 %v6778_v6  ;;  %v6780_v6 = vcombine.low %v3369_v63, %v3377_v0  ;;  %v3370_v0 = vld [vmem:[#allocation5 + $0x210] sm:$0xff] }
 0x3f4   :  { %v8496_v19 = vpop.eup %7708  ;;  %4164 = vmatprep.subr.bf16.mxu1 %v6795_v8  ;;  %v8511_v8 = vsub.s32 5, %v7975_v13 }
 0x3f5   :  { %v4578_v22 = vcombine.low %v8492_v12, %v8496_v19  ;;  %v2971_v23 = vpop.f32.mrb[4].mxu1 }
 0x3f6   :  { %v2972_v26 = vadd.f32 %v2971_v23, %v2187_v11  ;;  %v2973_v27 = vpop.f32.mrb[5].mxu1  ;;  %v3409_v11 = vld [vmem:[#allocation5 + $0x348] sm:$0xff]  ;;  %v2199_v20 = vrot.slane %v8461_v15, %v8511_v8 }
 0x3f7   :  { %v2974_v31 = vadd.f32 %v2973_v27, %v2191_v14  ;;  %v2975_v32 = vpop.f32.mrb[6].mxu1  ;;  %4165 = vmatpush1.bf16.msra.mxu1 %v6794_v17  ;;  %v2195_v14 = vrot.slane %v8461_v15, %v8508_v4  ;;  %v6813_v24 = vcombine.high %v3401_v10, %v3409_v11  ;;  %v3417_v27 = vld [vmem:[#allocation5 + $0x388] sm:$0xff]  ;;  %v8521_v35 = vrot.slane %v4578_v22, %v7978_v16 }
 0x3f8   :  { %v3226_v36 = vsub.f32 0.0, %v2972_v26  ;;  %v2976_v37 = vpop.f32.mrb[7].mxu1  ;;  %4166 = vmatprep.subr.bf16.mxu1 %v6811_v21  ;;  %v6796_v21 = vcombine.low %v3385_v2, %v3393_v3  ;;  %v3386_v3 = vld [vmem:[#allocation5 + $0x290] sm:$0xff] }
 0x3f9   :  { %v3227_v39 = vsub.f32 0.0, %v2974_v31  ;;  %v3425_v31 = vld [vmem:[#allocation5 + $0x3c8] sm:$0xff] }
 0x3fa   :  { %v3244_v44 = vmul.f32 1.442695, %v3226_v36  ;;  %v6828_v22 = vcombine.low %v3417_v27, %v3425_v31 }
 0x3fb   :  { %v3246_v45 = vmul.f32 1.442695, %v3227_v39  ;;  %4167 = vmatpush1.bf16.msra.mxu1 %v6810_v33  ;;  %v6812_v39 = vcombine.low %v3401_v10, %v3409_v11  ;;  %v8534_v11 = vsub.s32 7, %v7975_v13 }
 0x3fc   :  { %7710 = vpow2.f32 %v3244_v44  ;;  %4168 = vmatprep.subr.bf16.mxu1 %v6827_v30  ;;  %v6829_v44 = vcombine.high %v3417_v27, %v3425_v31 }
 0x3fd   :  { %7712 = vpow2.f32 %v3246_v45 }
 0x3ff   :  { %4169 = vmatpush1.bf16.msra.mxu1 %v6826_v46  ;;  %v3306_v46 = vld [vmem:[#allocation5 + $0x10] sm:$0xff] }
 0x400   :  { %4195 = vmatprep.subr.bf16.mxu1 %v6717_v48  ;;  %v6719_v49 = vcombine.high %v3306_v46, %v3314_v47 }
 0x402   :  { %4187 = vmatmul.mubr.bf16.vlgmr.msra.gmra.mrb[32].mxu1 %v8503_v38 }
 0x403   :  { %4196 = vmatpush1.bf16.msra.mxu1 %v6716_v34  ;;  %4227 = vmatprep.mubr.bf16.mxu1 %v7913_v28  ;;  %v3330_v34 = vld [vmem:[#allocation5 + $0xd0] sm:$0xff] }
 0x404   :  { %4197 = vmatprep.subr.bf16.mxu1 %v6733_v51  ;;  %v6718_v51 = vcombine.low %v3306_v46, %v3314_v47  ;;  %v6735_v52 = vcombine.high %v3322_v50, %v3330_v34  ;;  %v3307_v47 = vld [vmem:[#allocation5 + $0x18] sm:$0xff] }
 0x406   :  { %v7711_v58 = vpop.eup %7710 }
 0x407   :  { %v7713_v40 = vpop.eup %7712  ;;  %v3274_v59 = vadd.f32 1.0, %v7711_v58  ;;  %4198 = vmatpush1.bf16.msra.mxu1 %v6732_v54  ;;  %v3346_v54 = vld [vmem:[#allocation5 + $0x150] sm:$0xff] }
 0x408   :  { %v3275_v61 = vadd.f32 1.0, %v7713_v40  ;;  %4199 = vmatprep.subr.bf16.mxu1 %v6749_v55  ;;  %v6734_v55 = vcombine.low %v3322_v50, %v3330_v34  ;;  %v6751_v56 = vcombine.high %v3338_v53, %v3346_v54  ;;  %v3362_v58 = vld [vmem:[#allocation5 + $0x1d0] sm:$0xff]  ;;  %v3323_v34 = vld [vmem:[#allocation5 + $0x98] sm:$0xff] }
 0x409   :  { %7714 = vrcp.f32 %v3274_v59  ;;  %v6767_v63 = vcombine.high %v3354_v57, %v3362_v58 }
 0x40a   :  { %7716 = vrcp.f32 %v3275_v61  ;;  %v6750_v61 = vcombine.low %v3338_v53, %v3346_v54  ;;  %v3339_v54 = vld [vmem:[#allocation5 + $0x118] sm:$0xff] }
 0x40b   :  { %4200 = vmatpush1.bf16.msra.mxu1 %v6748_v60 }
 0x40c   :  { %4201 = vmatprep.subr.bf16.mxu1 %v6765_v62 }
 0x40f   :  { %4202 = vmatpush1.bf16.msra.mxu1 %v6764_v1  ;;  %v3378_v1 = vld [vmem:[#allocation5 + $0x250] sm:$0xff] }
 0x410   :  { %4203 = vmatprep.subr.bf16.mxu1 %v6781_v42  ;;  %v6766_v42 = vcombine.low %v3354_v57, %v3362_v58  ;;  %v6783_v2 = vcombine.high %v3370_v0, %v3378_v1  ;;  %v6782_v10 = vcombine.low %v3370_v0, %v3378_v1  ;;  %v3355_v58 = vld [vmem:[#allocation5 + $0x198] sm:$0xff] }
 0x411   :  { %v3371_v1 = vld [vmem:[#allocation5 + $0x218] sm:$0xff] }
 0x413   :  { %v7715_v17 = vpop.eup %7714  ;;  %4204 = vmatpush1.bf16.msra.mxu1 %v6780_v6  ;;  %v3394_v6 = vld [vmem:[#allocation5 + $0x2d0] sm:$0xff] }
 0x414   :  { %v7717_v23 = vpop.eup %7716  ;;  %4205 = vmatprep.subr.bf16.mxu1 %v6797_v9  ;;  %v8531_v9 = vsub.s32 6, %v7975_v13 }
 0x415   :  { %v4579_v25 = vcombine.low %v7715_v17, %v7717_v23  ;;  %v3012_v26 = vpop.f32.mrb[8].mxu1  ;;  %v3402_v17 = vld [vmem:[#allocation5 + $0x310] sm:$0xff] }
 0x416   :  { %v3013_v32 = vadd.f32 %v3012_v26, %v2195_v14  ;;  %v3014_v33 = vpop.f32.mrb[9].mxu1  ;;  %v6799_v14 = vcombine.high %v3386_v3, %v3394_v6 }
 0x417   :  { %v8524_v36 = vrot.slane %v4579_v25, %v7978_v16  ;;  %v3015_v37 = vadd.f32 %v3014_v33, %v2199_v20  ;;  %v3016_v30 = vpop.f32.mrb[10].mxu1  ;;  %4206 = vmatpush1.bf16.msra.mxu1 %v6796_v21  ;;  %v3410_v20 = vld [vmem:[#allocation5 + $0x350] sm:$0xff]  ;;  %v2203_v21 = vrot.slane %v8461_v15, %v8531_v9  ;;  %v6798_v25 = vcombine.low %v3386_v3, %v3394_v6  ;;  %v3387_v6 = vld [vmem:[#allocation5 + $0x298] sm:$0xff] }
 0x418   :  { %v3228_v41 = vsub.f32 0.0, %v3013_v32  ;;  %v3017_v43 = vpop.f32.mrb[11].mxu1  ;;  %4207 = vmatprep.subr.bf16.mxu1 %v6813_v24  ;;  %v2207_v24 = vrot.slane %v8461_v15, %v8534_v11  ;;  %v6815_v27 = vcombine.high %v3402_v17, %v3410_v20  ;;  %v3418_v32 = vld [vmem:[#allocation5 + $0x390] sm:$0xff] }
 0x419   :  { %v3229_v45 = vsub.f32 0.0, %v3015_v37  ;;  %v4594_v48 = vcombine.low %v8521_v35, %v8524_v36  ;;  %v3426_v33 = vld [vmem:[#allocation5 + $0x3d0] sm:$0xff]  ;;  %v6814_v43 = vcombine.low %v3402_v17, %v3410_v20 }
 0x41a   :  { %v3248_v12 = vmul.f32 1.442695, %v3228_v41  ;;  %v6831_v15 = vcombine.high %v3418_v32, %v3426_v33  ;;  %v8551_v17 = vld [vmem:[%s9146_s5 + $0xa] sm:$0xff] }
 0x41b   :  { %v3250_v19 = vmul.f32 1.442695, %v3229_v45  ;;  %4208 = vmatpush1.bf16.msra.mxu1 %v6812_v39 }
 0x41c   :  { %7718 = vpow2.f32 %v3248_v12  ;;  %4209 = vmatprep.subr.bf16.mxu1 %v6829_v44  ;;  %v3315_v12 = vld [vmem:[#allocation5 + $0x58] sm:$0xff] }
 0x41d   :  { %7720 = vpow2.f32 %v3250_v19  ;;  %v6721_v50 = vcombine.high %v3307_v47, %v3315_v12 }
 0x41f   :  { %4210 = vmatpush1.bf16.msra.mxu1 %v6828_v22 }
 0x420   :  { %4236 = vmatprep.subr.bf16.mxu1 %v6719_v49  ;;  %v6830_v49 = vcombine.low %v3418_v32, %v3426_v33 }
 0x422   :  { %4228 = vmatmul.mubr.bf16.vlgmr.msra.gmra.mrb[36].mxu1 %v8503_v38 }
 0x423   :  { %4237 = vmatpush1.bf16.msra.mxu1 %v6718_v51  ;;  %4268 = vmatprep.mubr.bf16.mxu1 %v7913_v28  ;;  %v3331_v51 = vld [vmem:[#allocation5 + $0xd8] sm:$0xff] }
 0x424   :  { %4238 = vmatprep.subr.bf16.mxu1 %v6735_v52  ;;  %v6720_v52 = vcombine.low %v3307_v47, %v3315_v12  ;;  %v6737_v53 = vcombine.high %v3323_v34, %v3331_v51 }
 0x426   :  { %v7719_v40 = vpop.eup %7718 }
 0x427   :  { %v7721_v59 = vpop.eup %7720  ;;  %v3276_v60 = vadd.f32 1.0, %v7719_v40  ;;  %4239 = vmatpush1.bf16.msra.mxu1 %v6734_v55  ;;  %v3347_v55 = vld [vmem:[#allocation5 + $0x158] sm:$0xff] }
 0x428   :  { %v3277_v62 = vadd.f32 1.0, %v7721_v59  ;;  %4240 = vmatprep.subr.bf16.mxu1 %v6751_v56  ;;  %v6736_v56 = vcombine.low %v3323_v34, %v3331_v51  ;;  %v6753_v57 = vcombine.high %v3339_v54, %v3347_v55  ;;  %v3363_v40 = vld [vmem:[#allocation5 + $0x1d8] sm:$0xff]  ;;  %v3308_v51 = vld [vmem:[#allocation5 + $0x20] sm:$0xff] }
 0x429   :  { %7722 = vrcp.f32 %v3276_v60  ;;  %v6769_v0 = vcombine.high %v3355_v58, %v3363_v40 }
 0x42a   :  { %7724 = vrcp.f32 %v3277_v62  ;;  %v6752_v62 = vcombine.low %v3339_v54, %v3347_v55  ;;  %v3324_v55 = vld [vmem:[#allocation5 + $0xa0] sm:$0xff] }
 0x42b   :  { %4241 = vmatpush1.bf16.msra.mxu1 %v6750_v61 }
 0x42c   :  { %4242 = vmatprep.subr.bf16.mxu1 %v6767_v63 }
 0x42f   :  { %4243 = vmatpush1.bf16.msra.mxu1 %v6766_v42  ;;  %v3379_v42 = vld [vmem:[#allocation5 + $0x258] sm:$0xff] }
 0x430   :  { %4244 = vmatprep.subr.bf16.mxu1 %v6783_v2  ;;  %v6768_v2 = vcombine.low %v3355_v58, %v3363_v40  ;;  %v6785_v3 = vcombine.high %v3371_v1, %v3379_v42  ;;  %v3340_v40 = vld [vmem:[#allocation5 + $0x120] sm:$0xff] }
 0x433   :  { %v8538_v23 = vpop.eup %7722  ;;  %4245 = vmatpush1.bf16.msra.mxu1 %v6782_v10  ;;  %v3395_v10 = vld [vmem:[#allocation5 + $0x2d8] sm:$0xff] }
 0x434   :  { %v8542_v26 = vpop.eup %7724  ;;  %4246 = vmatprep.subr.bf16.mxu1 %v6799_v14  ;;  %v6784_v14 = vcombine.low %v3371_v1, %v3379_v42  ;;  %v6801_v20 = vcombine.high %v3387_v6, %v3395_v10  ;;  %v6800_v32 = vcombine.low %v3387_v6, %v3395_v10  ;;  %v3372_v10 = vld [vmem:[#allocation5 + $0x220] sm:$0xff] }
 0x435   :  { %v4595_v13 = vcombine.low %v8538_v23, %v8542_v26  ;;  %v3053_v31 = vpop.f32.mrb[12].mxu1 }
 0x436   :  { %v3054_v37 = vadd.f32 %v3053_v31, %v2203_v21  ;;  %v3055_v30 = vpop.f32.mrb[13].mxu1  ;;  %v3403_v21 = vld [vmem:[#allocation5 + $0x318] sm:$0xff]  ;;  %v2215_v31 = vrot.slane %v8551_v17, %v8464_v18 }
 0x437   :  { %v3056_v39 = vadd.f32 %v3055_v30, %v2207_v24  ;;  %v3057_v41 = vpop.f32.mrb[14].mxu1  ;;  %4247 = vmatpush1.bf16.msra.mxu1 %v6798_v25  ;;  %v3411_v24 = vld [vmem:[#allocation5 + $0x358] sm:$0xff]  ;;  %v2211_v25 = vrot.slane %v8551_v17, %v8113_v29 }
 0x438   :  { %v3230_v44 = vsub.f32 0.0, %v3054_v37  ;;  %v3058_v45 = vpop.f32.mrb[15].mxu1  ;;  %4248 = vmatprep.subr.bf16.mxu1 %v6815_v27  ;;  %v6817_v37 = vcombine.high %v3403_v21, %v3411_v24  ;;  %v3419_v41 = vld [vmem:[#allocation5 + $0x398] sm:$0xff] }
 0x439   :  { %v3231_v46 = vsub.f32 0.0, %v3056_v39 }
 0x43a   :  { %v3252_v19 = vmul.f32 1.442695, %v3230_v44 }
 0x43b   :  { %v3254_v22 = vmul.f32 1.442695, %v3231_v46  ;;  %4249 = vmatpush1.bf16.msra.mxu1 %v6814_v43  ;;  %v3427_v43 = vld [vmem:[#allocation5 + $0x3d8] sm:$0xff] }
 0x43c   :  { %7726 = vpow2.f32 %v3252_v19  ;;  %4250 = vmatprep.subr.bf16.mxu1 %v6831_v15  ;;  %v8561_v15 = vrot.slane %v4595_v13, %v7978_v16  ;;  %v6816_v19 = vcombine.low %v3403_v21, %v3411_v24  ;;  %v6832_v13 = vcombine.low %v3419_v41, %v3427_v43  ;;  %v3388_v24 = vld [vmem:[#allocation5 + $0x2a0] sm:$0xff] }
 0x43d   :  { %7728 = vpow2.f32 %v3254_v22 }
 0x43f   :  { %4251 = vmatpush1.bf16.msra.mxu1 %v6830_v49 }
 0x440   :  { %4277 = vmatprep.subr.bf16.mxu1 %v6721_v50  ;;  %v6833_v50 = vcombine.high %v3419_v41, %v3427_v43 }
 0x442   :  { %4269 = vmatmul.mubr.bf16.vlgmr.msra.gmra.mrb[40].mxu1 %v8503_v38 }
 0x443   :  { %4278 = vmatpush1.bf16.msra.mxu1 %v6720_v52  ;;  %4309 = vmatprep.mubr.bf16.mxu1 %v7913_v28  ;;  %v3316_v52 = vld [vmem:[#allocation5 + $0x60] sm:$0xff] }
 0x444   :  { %4279 = vmatprep.subr.bf16.mxu1 %v6737_v53  ;;  %v6723_v54 = vcombine.high %v3308_v51, %v3316_v52 }
 0x446   :  { %v7727_v59 = vpop.eup %7726 }
 0x447   :  { %v7729_v60 = vpop.eup %7728  ;;  %v3278_v61 = vadd.f32 1.0, %v7727_v59  ;;  %4280 = vmatpush1.bf16.msra.mxu1 %v6736_v56  ;;  %v3332_v56 = vld [vmem:[#allocation5 + $0xe0] sm:$0xff] }
 0x448   :  { %v3279_v63 = vadd.f32 1.0, %v7729_v60  ;;  %4281 = vmatprep.subr.bf16.mxu1 %v6753_v57  ;;  %v6722_v57 = vcombine.low %v3308_v51, %v3316_v52  ;;  %v6739_v58 = vcombine.high %v3324_v55, %v3332_v56  ;;  %v3348_v59 = vld [vmem:[#allocation5 + $0x160] sm:$0xff]  ;;  %v6738_v60 = vcombine.low %v3324_v55, %v3332_v56  ;;  %v3317_v55 = vld [vmem:[#allocation5 + $0x68] sm:$0xff] }
 0x449   :  { %7730 = vrcp.f32 %v3278_v61  ;;  %v6755_v61 = vcombine.high %v3340_v40, %v3348_v59 }
 0x44a   :  { %7732 = vrcp.f32 %v3279_v63  ;;  %v3364_v63 = vld [vmem:[#allocation5 + $0x1e0] sm:$0xff] }
 0x44b   :  { %4282 = vmatpush1.bf16.msra.mxu1 %v6752_v62  ;;  %v3356_v62 = vld [vmem:[#allocation5 + $0x1a0] sm:$0xff] }
 0x44c   :  { %4283 = vmatprep.subr.bf16.mxu1 %v6769_v0  ;;  %v6771_v6 = vcombine.high %v3356_v62, %v3364_v63 }
 0x44f   :  { %4284 = vmatpush1.bf16.msra.mxu1 %v6768_v2  ;;  %v6754_v2 = vcombine.low %v3340_v40, %v3348_v59  ;;  %v3325_v59 = vld [vmem:[#allocation5 + $0xa8] sm:$0xff] }
 0x450   :  { %4285 = vmatprep.subr.bf16.mxu1 %v6785_v3 }
 0x453   :  { %v7731_v27 = vpop.eup %7730  ;;  %4286 = vmatpush1.bf16.msra.mxu1 %v6784_v14  ;;  %v3380_v14 = vld [vmem:[#allocation5 + $0x260] sm:$0xff] }
 0x454   :  { %v7733_v33 = vpop.eup %7732  ;;  %4287 = vmatprep.subr.bf16.mxu1 %v6801_v20  ;;  %v6770_v20 = vcombine.low %v3356_v62, %v3364_v63  ;;  %v6787_v21 = vcombine.high %v3372_v10, %v3380_v14  ;;  %v3341_v63 = vld [vmem:[#allocation5 + $0x128] sm:$0xff] }
 0x455   :  { %v4596_v30 = vcombine.low %v7731_v27, %v7733_v33  ;;  %v3094_v39 = vpop.f32.mrb[16].mxu1  ;;  %v6786_v27 = vcombine.low %v3372_v10, %v3380_v14  ;;  %v3412_v33 = vld [vmem:[#allocation5 + $0x360] sm:$0xff] }
 0x456   :  { %v3095_v44 = vadd.f32 %v3094_v39, %v2211_v25  ;;  %v3096_v45 = vpop.f32.mrb[17].mxu1  ;;  %v3396_v25 = vld [vmem:[#allocation5 + $0x2e0] sm:$0xff]  ;;  %v2223_v39 = vrot.slane %v8551_v17, %v8488_v7 }
 0x457   :  { %v8564_v46 = vrot.slane %v4596_v30, %v7978_v16  ;;  %v3097_v47 = vadd.f32 %v3096_v45, %v2215_v31  ;;  %v3098_v12 = vpop.f32.mrb[18].mxu1  ;;  %4288 = vmatpush1.bf16.msra.mxu1 %v6800_v32  ;;  %v6803_v31 = vcombine.high %v3388_v24, %v3396_v25  ;;  %v3404_v32 = vld [vmem:[#allocation5 + $0x320] sm:$0xff]  ;;  %v6802_v41 = vcombine.low %v3388_v24, %v3396_v25 }
 0x458   :  { %v3232_v22 = vsub.f32 0.0, %v3095_v44  ;;  %v3099_v49 = vpop.f32.mrb[19].mxu1  ;;  %4289 = vmatprep.subr.bf16.mxu1 %v6817_v37  ;;  %v2219_v37 = vrot.slane %v8551_v17, %v8485_v5  ;;  %v6819_v44 = vcombine.high %v3404_v32, %v3412_v33  ;;  %v3420_v12 = vld [vmem:[#allocation5 + $0x3a0] sm:$0xff]  ;;  %v6818_v51 = vcombine.low %v3404_v32, %v3412_v33  ;;  %v3381_v32 = vld [vmem:[#allocation5 + $0x268] sm:$0xff] }
 0x459   :  { %v3233_v34 = vsub.f32 0.0, %v3097_v47  ;;  %v4611_v53 = vcombine.low %v8561_v15, %v8564_v46  ;;  %v7577_v14 = vld [vmem:[%s9145_s4] sm:$0xff]   ;;  %v7580_v33 = vld [vmem:[%s9145_s4 + $0x48] sm:$0xff]  }
 0x45a   :  { %v3256_v23 = vmul.f32 1.442695, %v3232_v22 }
 0x45b   :  { %v3258_v26 = vmul.f32 1.442695, %v3233_v34  ;;  %4290 = vmatpush1.bf16.msra.mxu1 %v6816_v19  ;;  %v3428_v19 = vld [vmem:[#allocation5 + $0x3e0] sm:$0xff] }
 0x45c   :  { %7734 = vpow2.f32 %v3256_v23  ;;  %4291 = vmatprep.subr.bf16.mxu1 %v6833_v50 }
 0x45d   :  { %7736 = vpow2.f32 %v3258_v26  ;;  %v6835_v26 = vcombine.high %v3420_v12, %v3428_v19 }
 0x45f   :  { %4292 = vmatpush1.bf16.msra.mxu1 %v6832_v13 }
 0x460   :  { %4318 = vmatprep.subr.bf16.mxu1 %v6723_v54  ;;  %v3309_v54 = vld [vmem:[#allocation5 + $0x28] sm:$0xff] }
 0x461   :  { %v6725_v40 = vcombine.high %v3309_v54, %v3317_v55 }
 0x462   :  { %4310 = vmatmul.mubr.bf16.vlgmr.msra.gmra.mrb[44].mxu1 %v8503_v38 }
 0x463   :  { %4319 = vmatpush1.bf16.msra.mxu1 %v6722_v57  ;;  %4350 = vmatprep.mubr.bf16.mxu1 %v7913_v28 }
 0x464   :  { %4320 = vmatprep.subr.bf16.mxu1 %v6739_v58  ;;  %v6834_v58 = vcombine.low %v3420_v12, %v3428_v19  ;;  %v7584_v12 = vld [vmem:[%s9145_s4 + $0x50] sm:$0xff]  }
 0x465   :  { %v7585_v19 = vld [vmem:[%s9145_s4 + $0x10] sm:$0xff]  }
 0x466   :  { %v7735_v0 = vpop.eup %7734 }
 0x467   :  { %v7737_v1 = vpop.eup %7736  ;;  %v3280_v42 = vadd.f32 1.0, %v7735_v0  ;;  %4321 = vmatpush1.bf16.msra.mxu1 %v6738_v60  ;;  %v3333_v60 = vld [vmem:[#allocation5 + $0xe8] sm:$0xff] }
 0x468   :  { %v3281_v3 = vadd.f32 1.0, %v7737_v1  ;;  %4322 = vmatprep.subr.bf16.mxu1 %v6755_v61  ;;  %v6724_v61 = vcombine.low %v3309_v54, %v3317_v55  ;;  %v6741_v62 = vcombine.high %v3325_v59, %v3333_v60  ;;  %v3349_v0 = vld [vmem:[#allocation5 + $0x168] sm:$0xff]  ;;  %v6740_v1 = vcombine.low %v3325_v59, %v3333_v60  ;;  %v7592_v60 = vld [vmem:[%s9145_s4 + $0x60] sm:$0xff]  }
 0x469   :  { %7738 = vrcp.f32 %v3280_v42  ;;  %v6757_v42 = vcombine.high %v3341_v63, %v3349_v0  ;;  %v6756_v24 = vcombine.low %v3341_v63, %v3349_v0  ;;  %v3429_v59 = vld [vmem:[#allocation5 + $0x3e8] sm:$0xff]  ;;  %v7593_v0 = vld [vmem:[%s9145_s4 + $0x20] sm:$0xff]  }
 0x46a   :  { %7740 = vrcp.f32 %v3281_v3  ;;  %v3365_v3 = vld [vmem:[#allocation5 + $0x1e8] sm:$0xff] }
 0x46b   :  { %4323 = vmatpush1.bf16.msra.mxu1 %v6754_v2  ;;  %v3357_v2 = vld [vmem:[#allocation5 + $0x1a8] sm:$0xff] }
 0x46c   :  { %4324 = vmatprep.subr.bf16.mxu1 %v6771_v6  ;;  %v7576_v6 = vld [vmem:[%s9145_s4 + $0x40] sm:$0xff]  }
 0x46d   :  { %6971 = vmatprep.subr.bf16.mxu0 %v7576_v6 }
 0x46e   :  { %6972 = vmatpush3.bf16.msra.mxu0 %v7577_v14 }
 0x46f   :  { %4325 = vmatpush1.bf16.msra.mxu1 %v6770_v20  ;;  %6973 = vmatprep.subr.bf16.mxu0 %v7580_v33  ;;  %v3326_v33 = vld [vmem:[#allocation5 + $0xb0] sm:$0xff] }
 0x470   :  { %4326 = vmatprep.subr.bf16.mxu1 %v6787_v21 }
 0x473   :  { %v8572_v30 = vpop.eup %7738  ;;  %4327 = vmatpush1.bf16.msra.mxu1 %v6786_v27  ;;  %v6773_v27 = vcombine.high %v3357_v2, %v3365_v3 }
 0x474   :  { %v8576_v43 = vpop.eup %7740  ;;  %4328 = vmatprep.subr.bf16.mxu1 %v6803_v31  ;;  %v3373_v31 = vld [vmem:[#allocation5 + $0x228] sm:$0xff] }
 0x475   :  { %v4612_v45 = vcombine.low %v8572_v30, %v8576_v43  ;;  %v3135_v47 = vpop.f32.mrb[20].mxu1  ;;  %v7596_v30 = vld [vmem:[%s9145_s4 + $0x68] sm:$0xff]  }
 0x476   :  { %v3136_v22 = vadd.f32 %v3135_v47, %v2219_v37  ;;  %v3137_v49 = vpop.f32.mrb[21].mxu1  ;;  %v7581_v37 = vld [vmem:[%s9145_s4 + $0x8] sm:$0xff]  }
 0x477   :  { %v3138_v50 = vadd.f32 %v3137_v49, %v2223_v39  ;;  %v3139_v34 = vpop.f32.mrb[22].mxu1  ;;  %4329 = vmatpush1.bf16.msra.mxu1 %v6802_v41  ;;  %v6772_v39 = vcombine.low %v3357_v2, %v3365_v3  ;;  %v6789_v41 = vcombine.high %v3373_v31, %v3381_v32  ;;  %6974 = vmatpush3.bf16.msra.mxu0 %v7581_v37  ;;  %v3397_v47 = vld [vmem:[#allocation5 + $0x2e8] sm:$0xff]  ;;  %v3334_v37 = vld [vmem:[#allocation5 + $0xf0] sm:$0xff] }
 0x478   :  { %v3234_v52 = vsub.f32 0.0, %v3136_v22  ;;  %v3140_v23 = vpop.f32.mrb[23].mxu1  ;;  %4330 = vmatprep.subr.bf16.mxu1 %v6819_v44  ;;  %v3389_v44 = vld [vmem:[#allocation5 + $0x2a8] sm:$0xff]  ;;  %v6788_v22 = vcombine.low %v3373_v31, %v3381_v32  ;;  %6975 = vmatprep.subr.bf16.mxu0 %v7584_v12  ;;  %v3342_v12 = vld [vmem:[#allocation5 + $0x130] sm:$0xff] }
 0x479   :  { %v3235_v13 = vsub.f32 0.0, %v3138_v50  ;;  %v6805_v49 = vcombine.high %v3389_v44, %v3397_v47  ;;  %v3405_v50 = vld [vmem:[#allocation5 + $0x328] sm:$0xff]  ;;  %v7589_v23 = vld [vmem:[%s9145_s4 + $0x18] sm:$0xff]   ;;  %v6804_v54 = vcombine.low %v3389_v44, %v3397_v47  ;;  %v6743_v47 = vcombine.high %v3326_v33, %v3334_v37 }
 0x47a   :  { %v3260_v56 = vmul.f32 1.442695, %v3234_v52  ;;  %v3413_v34 = vld [vmem:[#allocation5 + $0x368] sm:$0xff]  ;;  %v2227_v52 = vrot.slane %v8551_v17, %v8508_v4 }
 0x47b   :  { %v3262_v57 = vmul.f32 1.442695, %v3235_v13  ;;  %4331 = vmatpush1.bf16.msra.mxu1 %v6818_v51  ;;  %6976 = vmatpush3.bf16.msra.mxu0 %v7585_v19  ;;  %v7588_v51 = vld [vmem:[%s9145_s4 + $0x58] sm:$0xff]   ;;  %v2231_v13 = vrot.slane %v8551_v17, %v8511_v8  ;;  %v6820_v63 = vcombine.low %v3405_v50, %v3413_v34  ;;  %v3350_v19 = vld [vmem:[#allocation5 + $0x170] sm:$0xff] }
 0x47c   :  { %7742 = vpow2.f32 %v3260_v56  ;;  %4332 = vmatprep.subr.bf16.mxu1 %v6835_v26  ;;  %6977 = vmatprep.subr.bf16.mxu0 %v7588_v51  ;;  %v6821_v56 = vcombine.high %v3405_v50, %v3413_v34  ;;  %v6742_v50 = vcombine.low %v3326_v33, %v3334_v37  ;;  %v6759_v34 = vcombine.high %v3342_v12, %v3350_v19  ;;  %v3358_v51 = vld [vmem:[#allocation5 + $0x1b0] sm:$0xff] }
 0x47d   :  { %7744 = vpow2.f32 %v3262_v57 }
 0x47f   :  { %4333 = vmatpush1.bf16.msra.mxu1 %v6834_v58  ;;  %6978 = vmatpush3.bf16.msra.mxu0 %v7589_v23 }
 0x480   :  { %4359 = vmatprep.subr.bf16.mxu1 %v6725_v40  ;;  %v3421_v40 = vld [vmem:[#allocation5 + $0x3a8] sm:$0xff]  ;;  %6979 = vmatprep.subr.bf16.mxu0 %v7592_v60  ;;  %v3390_v60 = vld [vmem:[#allocation5 + $0x2b0] sm:$0xff] }
 0x481   :  { %v6837_v14 = vcombine.high %v3421_v40, %v3429_v59  ;;  %v6836_v31 = vcombine.low %v3421_v40, %v3429_v59 }
 0x482   :  { %4351 = vmatmul.mubr.bf16.vlgmr.msra.gmra.mrb[48].mxu1 %v8503_v38 }
 0x483   :  { %4360 = vmatpush1.bf16.msra.mxu1 %v6724_v61  ;;  %4391 = vmatprep.mubr.bf16.mxu1 %v7913_v28 }
 0x484   :  { %4361 = vmatprep.subr.bf16.mxu1 %v6741_v62  ;;  %6980 = vmatpush3.bf16.msra.mxu0 %v7593_v0  ;;  %v3406_v0 = vld [vmem:[#allocation5 + $0x330] sm:$0xff] }
 0x485   :  { %6981 = vmatprep.subr.bf16.mxu0 %v7596_v30 }
 0x486   :  { %v7743_v10 = vpop.eup %7742 }
 0x487   :  { %v7745_v20 = vpop.eup %7744  ;;  %v3282_v21 = vadd.f32 1.0, %v7743_v10  ;;  %4362 = vmatpush1.bf16.msra.mxu1 %v6740_v1  ;;  %v8620_v1 = vrot.slane %v4612_v45, %v7978_v16 }
 0x488   :  { %v3283_v25 = vadd.f32 1.0, %v7745_v20  ;;  %4363 = vmatprep.subr.bf16.mxu1 %v6757_v42 }
 0x489   :  { %7746 = vrcp.f32 %v3282_v21  ;;  %v3310_v21 = vld [vmem:[#allocation5 + $0x30] sm:$0xff] }
 0x48a   :  { %7748 = vrcp.f32 %v3283_v25  ;;  %v7597_v25 = vld [vmem:[%s9145_s4 + $0x28] sm:$0xff]  }
 0x48b   :  { %4364 = vmatpush1.bf16.msra.mxu1 %v6756_v24  ;;  %v3318_v24 = vld [vmem:[#allocation5 + $0x70] sm:$0xff]  ;;  %6982 = vmatpush3.bf16.msra.mxu0 %v7597_v25 }
 0x48c   :  { %4365 = vmatprep.subr.bf16.mxu1 %v6773_v27  ;;  %v6727_v32 = vcombine.high %v3310_v21, %v3318_v24  ;;  %v6726_v44 = vcombine.low %v3310_v21, %v3318_v24  ;;  %v3430_v25 = vld [vmem:[#allocation5 + $0x3f0] sm:$0xff] }
 0x48f   :  { %4366 = vmatpush1.bf16.msra.mxu1 %v6772_v39  ;;  %v7600_v39 = vld [vmem:[%s9145_s4 + $0x70] sm:$0xff]  }
 0x490   :  { %4367 = vmatprep.subr.bf16.mxu1 %v6789_v41  ;;  %v7601_v41 = vld [vmem:[%s9145_s4 + $0x30] sm:$0xff]   ;;  %6983 = vmatprep.subr.bf16.mxu0 %v7600_v39 }
 0x491   :  { %6984 = vmatpush3.bf16.msra.mxu0 %v7601_v41 }
 0x493   :  { %v7747_v26 = vpop.eup %7746  ;;  %4368 = vmatpush1.bf16.msra.mxu1 %v6788_v22  ;;  %v7604_v22 = vld [vmem:[%s9145_s4 + $0x78] sm:$0xff]  }
 0x494   :  { %v7749_v55 = vpop.eup %7748  ;;  %4369 = vmatprep.subr.bf16.mxu1 %v6805_v49  ;;  %v7605_v49 = vld [vmem:[%s9145_s4 + $0x38] sm:$0xff]   ;;  %6985 = vmatprep.subr.bf16.mxu0 %v7604_v22 }
 0x495   :  { %v4613_v57 = vcombine.low %v7747_v26, %v7749_v55  ;;  %v3176_v58 = vpop.f32.mrb[24].mxu1  ;;  %6986 = vmatpush3.bf16.msra.mxu0 %v7605_v49 }
 0x496   :  { %v3177_v61 = vadd.f32 %v3176_v58, %v2227_v52  ;;  %v3178_v62 = vpop.f32.mrb[25].mxu1  ;;  %v3366_v52 = vld [vmem:[#allocation5 + $0x1f0] sm:$0xff] }
 0x497   :  { %v8623_v42 = vrot.slane %v4613_v57, %v7978_v16  ;;  %v3179_v2 = vadd.f32 %v3178_v62, %v2231_v13  ;;  %v3180_v3 = vpop.f32.mrb[26].mxu1  ;;  %4370 = vmatpush1.bf16.msra.mxu1 %v6804_v54  ;;  %v6758_v54 = vcombine.low %v3342_v12, %v3350_v19  ;;  %v3374_v57 = vld [vmem:[#allocation5 + $0x230] sm:$0xff]  ;;  %v6774_v40 = vcombine.low %v3358_v51, %v3366_v52  ;;  %v3319_v12 = vld [vmem:[#allocation5 + $0x78] sm:$0xff] }
 0x498   :  { %v3236_v6 = vsub.f32 0.0, %v3177_v61  ;;  %v3181_v10 = vpop.f32.mrb[27].mxu1  ;;  %4371 = vmatprep.subr.bf16.mxu1 %v6821_v56  ;;  %v6775_v56 = vcombine.high %v3358_v51, %v3366_v52  ;;  %v3382_v58 = vld [vmem:[#allocation5 + $0x270] sm:$0xff]  ;;  %v2235_v3 = vrot.slane %v8551_v17, %v8531_v9  ;;  %v3335_v51 = vld [vmem:[#allocation5 + $0xf8] sm:$0xff] }
 0x499   :  { %v3237_v20 = vsub.f32 0.0, %v3179_v2  ;;  %v4628_v43 = vcombine.low %v8620_v1, %v8623_v42  ;;  %v6791_v59 = vcombine.high %v3374_v57, %v3382_v58  ;;  %v3398_v61 = vld [vmem:[#allocation5 + $0x2f0] sm:$0xff]  ;;  %v6790_v62 = vcombine.low %v3374_v57, %v3382_v58  ;;  %v3367_v57 = vld [vmem:[#allocation5 + $0x1f8] sm:$0xff]  ;;  %v7608_v58 = vld [vmem:[%s9145_s4 + $0x140] sm:$0xff]  }
 0x49a   :  { %v3264_v45 = vmul.f32 1.442695, %v3236_v6  ;;  %v3414_v2 = vld [vmem:[#allocation5 + $0x370] sm:$0xff]  ;;  %v2239_v10 = vrot.slane %v8551_v17, %v8534_v11  ;;  %7015 = vmatprep.subr.bf16.mxu0 %v7608_v58  ;;  %v7578_v58 = vld [vmem:[%s9145_s4 + $0xc8] sm:$0xff]  }
 0x49b   :  { %v3266_v27 = vmul.f32 1.442695, %v3237_v20  ;;  %4372 = vmatpush1.bf16.msra.mxu1 %v6820_v63  ;;  %v6807_v63 = vcombine.high %v3390_v60, %v3398_v61  ;;  %v6823_v21 = vcombine.high %v3406_v0, %v3414_v2  ;;  %v6822_v37 = vcombine.low %v3406_v0, %v3414_v2  ;;  %v3375_v0 = vld [vmem:[#allocation5 + $0x238] sm:$0xff] }
 0x49c   :  { %7750 = vpow2.f32 %v3264_v45  ;;  %4373 = vmatprep.subr.bf16.mxu1 %v6837_v14  ;;  %v6806_v14 = vcombine.low %v3390_v60, %v3398_v61  ;;  %v3422_v45 = vld [vmem:[#allocation5 + $0x3b0] sm:$0xff] }
 0x49d   :  { %7752 = vpow2.f32 %v3266_v27  ;;  %v6839_v17 = vcombine.high %v3422_v45, %v3430_v25  ;;  %v6838_v49 = vcombine.low %v3422_v45, %v3430_v25  ;;  %v3407_v25 = vld [vmem:[#allocation5 + $0x338] sm:$0xff] }
 0x49f   :  { %4374 = vmatpush1.bf16.msra.mxu1 %v6836_v31 }
 0x4a0   :  { %4400 = vmatprep.subr.bf16.mxu1 %v6727_v32 }
 0x4a2   :  { %4392 = vmatmul.mubr.bf16.vlgmr.msra.gmra.mrb[52].mxu1 %v8503_v38 }
 0x4a3   :  { %4401 = vmatpush1.bf16.msra.mxu1 %v6726_v44  ;;  %4432 = vmatprep.mubr.bf16.mxu1 %v7913_v28 }
 0x4a4   :  { %4402 = vmatprep.subr.bf16.mxu1 %v6743_v47  ;;  %v3311_v47 = vld [vmem:[#allocation5 + $0x38] sm:$0xff] }
 0x4a5   :  { %v6728_v52 = vcombine.low %v3311_v47, %v3319_v12 }
 0x4a6   :  { %v7751_v23 = vpop.eup %7750 }
 0x4a7   :  { %v7753_v26 = vpop.eup %7752  ;;  %v3284_v13 = vadd.f32 1.0, %v7751_v23  ;;  %4403 = vmatpush1.bf16.msra.mxu1 %v6742_v50  ;;  %v6729_v50 = vcombine.high %v3311_v47, %v3319_v12  ;;  %v3423_v47 = vld [vmem:[#allocation5 + $0x3b8] sm:$0xff] }
 0x4a8   :  { %v3285_v55 = vadd.f32 1.0, %v7753_v26  ;;  %4404 = vmatprep.subr.bf16.mxu1 %v6759_v34  ;;  %v3327_v34 = vld [vmem:[#allocation5 + $0xb8] sm:$0xff] }
 0x4a9   :  { %7754 = vrcp.f32 %v3284_v13  ;;  %v6745_v23 = vcombine.high %v3327_v34, %v3335_v51  ;;  %v3343_v26 = vld [vmem:[#allocation5 + $0x138] sm:$0xff] }
 0x4aa   :  { %7756 = vrcp.f32 %v3285_v55  ;;  %v3351_v13 = vld [vmem:[#allocation5 + $0x178] sm:$0xff] }
 0x4ab   :  { %4405 = vmatpush1.bf16.msra.mxu1 %v6758_v54  ;;  %v6744_v54 = vcombine.low %v3327_v34, %v3335_v51  ;;  %v6761_v55 = vcombine.high %v3343_v26, %v3351_v13  ;;  %v6760_v61 = vcombine.low %v3343_v26, %v3351_v13  ;;  %v3431_v12 = vld [vmem:[#allocation5 + $0x3f8] sm:$0xff] }
 0x4ac   :  { %4406 = vmatprep.subr.bf16.mxu1 %v6775_v56  ;;  %v3359_v56 = vld [vmem:[#allocation5 + $0x1b8] sm:$0xff]  ;;  %v6841_v13 = vcombine.high %v3423_v47, %v3431_v12 }
 0x4ad   :  { %v6776_v2 = vcombine.low %v3359_v56, %v3367_v57 }
 0x4af   :  { %4407 = vmatpush1.bf16.msra.mxu1 %v6774_v40 }
 0x4b0   :  { %4408 = vmatprep.subr.bf16.mxu1 %v6791_v59 }
 0x4b3   :  { %v8649_v6 = vpop.eup %7754  ;;  %4409 = vmatpush1.bf16.msra.mxu1 %v6790_v62 }
 0x4b4   :  { %v8653_v20 = vpop.eup %7756  ;;  %4410 = vmatprep.subr.bf16.mxu1 %v6807_v63  ;;  %v6777_v63 = vcombine.high %v3359_v56, %v3367_v57 }
 0x4b5   :  { %v4629_v24 = vcombine.low %v8649_v6, %v8653_v20  ;;  %v3217_v30 = vpop.f32.mrb[28].mxu1  ;;  %v6840_v6 = vcombine.low %v3423_v47, %v3431_v12  ;;  %v7574_v20 = vld [vmem:[%s9145_s4 + $0xc0] sm:$0xff]  }
 0x4b6   :  { %v3218_v27 = vadd.f32 %v3217_v30, %v2235_v3  ;;  %v3219_v31 = vpop.f32.mrb[29].mxu1  ;;  %v8665_v30 = vld [vmem:[%s9146_s5 + $0x12] sm:$0xff] }
 0x4b7   :  { %v3220_v32 = vadd.f32 %v3219_v31, %v2239_v10  ;;  %v3221_v33 = vpop.f32.mrb[30].mxu1  ;;  %4411 = vmatpush1.bf16.msra.mxu1 %v6806_v14  ;;  %v3391_v10 = vld [vmem:[#allocation5 + $0x2b8] sm:$0xff]  ;;  %v3437_v31 = vrot.slane %v8665_v30, %v8113_v29 }
 0x4b8   :  { %v3238_v39 = vsub.f32 0.0, %v3218_v27  ;;  %v3222_v41 = vpop.f32.mrb[31].mxu1  ;;  %4412 = vmatprep.subr.bf16.mxu1 %v6823_v21  ;;  %v3399_v14 = vld [vmem:[#allocation5 + $0x2f8] sm:$0xff]  ;;  %v3441_v33 = vrot.slane %v8665_v30, %v8464_v18 }
 0x4b9   :  { %v3239_v44 = vsub.f32 0.0, %v3220_v32  ;;  %v6809_v45 = vcombine.high %v3391_v10, %v3399_v14  ;;  %v3415_v27 = vld [vmem:[#allocation5 + $0x378] sm:$0xff] }
 0x4ba   :  { %v3268_v19 = vmul.f32 1.442695, %v3238_v39  ;;  %v6825_v41 = vcombine.high %v3407_v25, %v3415_v27 }
 0x4bb   :  { %v3270_v22 = vmul.f32 1.442695, %v3239_v44  ;;  %4413 = vmatpush1.bf16.msra.mxu1 %v6822_v37  ;;  %v6808_v37 = vcombine.low %v3391_v10, %v3399_v14  ;;  %v7594_v10 = vld [vmem:[%s9145_s4 + $0xe8] sm:$0xff]   ;;  %v3445_v14 = vrot.slane %v8665_v30, %v8485_v5 }
 0x4bc   :  { %7758 = vpow2.f32 %v3268_v19  ;;  %4414 = vmatprep.subr.bf16.mxu1 %v6839_v17 }
 0x4bd   :  { %7760 = vpow2.f32 %v3270_v22 }
 0x4bf   :  { %4415 = vmatpush1.bf16.msra.mxu1 %v6838_v49  ;;  %v8675_v49 = vrot.slane %v4629_v24, %v7978_v16  ;;  %v7575_v24 = vld [vmem:[%s9145_s4 + $0x80] sm:$0xff]  }
 0x4c0   :  { %4441 = vmatprep.subr.bf16.mxu1 %v6729_v50 }
 0x4c2   :  { %4433 = vmatmul.mubr.bf16.vlgmr.msra.gmra.mrb[56].mxu1 %v8503_v38 }
 0x4c3   :  { %4442 = vmatpush1.bf16.msra.mxu1 %v6728_v52  ;;  %4473 = vmatprep.mubr.bf16.mxu1 %v7913_v28  ;;  %v3383_v28 = vld [vmem:[#allocation5 + $0x278] sm:$0xff]  ;;  %v6824_v52 = vcombine.low %v3407_v25, %v3415_v27  ;;  %v7595_v25 = vld [vmem:[%s9145_s4 + $0xa8] sm:$0xff]  }
 0x4c4   :  { %4443 = vmatprep.subr.bf16.mxu1 %v6745_v23  ;;  %v6793_v3 = vcombine.high %v3375_v0, %v3383_v28  ;;  %v6792_v21 = vcombine.low %v3375_v0, %v3383_v28  ;;  %v7587_v28 = vld [vmem:[%s9145_s4 + $0x98] sm:$0xff]  }
 0x4c6   :  { %v7759_v40 = vpop.eup %7758 }
 0x4c7   :  { %v7761_v59 = vpop.eup %7760  ;;  %v3286_v60 = vadd.f32 1.0, %v7759_v40  ;;  %4444 = vmatpush1.bf16.msra.mxu1 %v6744_v54  ;;  %v7579_v40 = vld [vmem:[%s9145_s4 + $0x88] sm:$0xff]  }
 0x4c8   :  { %v3287_v62 = vadd.f32 1.0, %v7761_v59  ;;  %4445 = vmatprep.subr.bf16.mxu1 %v6761_v55  ;;  %v7582_v59 = vld [vmem:[%s9145_s4 + $0xd0] sm:$0xff]  }
 0x4c9   :  { %7762 = vrcp.f32 %v3286_v60 }
 0x4ca   :  { %7764 = vrcp.f32 %v3287_v62 }
 0x4cb   :  { %4446 = vmatpush1.bf16.msra.mxu1 %v6760_v61 }
 0x4cc   :  { %4447 = vmatprep.subr.bf16.mxu1 %v6777_v63  ;;  %v7583_v63 = vld [vmem:[%s9145_s4 + $0x90] sm:$0xff]  }
 0x4cf   :  { %4448 = vmatpush1.bf16.msra.mxu1 %v6776_v2  ;;  %v7590_v2 = vld [vmem:[%s9145_s4 + $0xe0] sm:$0xff]  }
 0x4d0   :  { %4449 = vmatprep.subr.bf16.mxu1 %v6793_v3  ;;  %v7591_v3 = vld [vmem:[%s9145_s4 + $0xa0] sm:$0xff]  }
 0x4d3   :  { %v7763_v32 = vpop.eup %7762  ;;  %4450 = vmatpush1.bf16.msra.mxu1 %v6792_v21 }
 0x4d4   :  { %v7765_v39 = vpop.eup %7764  ;;  %4451 = vmatprep.subr.bf16.mxu1 %v6809_v45  ;;  %v3449_v45 = vrot.slane %v8665_v30, %v8488_v7 }
 0x4d5   :  { %v4630_v17 = vcombine.low %v7763_v32, %v7765_v39  ;;  %v4188_v44 = vpop.f32.mrb[32].mxu1 }
 0x4d6   :  { %v4189_v19 = vadd.f32 %v4188_v44, %v3437_v31  ;;  %v4190_v22 = vpop.f32.mrb[33].mxu1  ;;  %v7598_v31 = vld [vmem:[%s9145_s4 + $0xf0] sm:$0xff]  }
 0x4d7   :  { %v8678_v50 = vrot.slane %v4630_v17, %v7978_v16  ;;  %v4191_v34 = vadd.f32 %v4190_v22, %v3441_v33  ;;  %v4192_v51 = vpop.f32.mrb[34].mxu1  ;;  %4452 = vmatpush1.bf16.msra.mxu1 %v6808_v37  ;;  %v7599_v44 = vld [vmem:[%s9145_s4 + $0xb0] sm:$0xff]  }
 0x4d8   :  { %v4482_v23 = vsub.f32 0.0, %v4189_v19  ;;  %v4193_v26 = vpop.f32.mrb[35].mxu1  ;;  %4453 = vmatprep.subr.bf16.mxu1 %v6825_v41  ;;  %v7602_v19 = vld [vmem:[%s9145_s4 + $0xf8] sm:$0xff]  }
 0x4d9   :  { %v4483_v54 = vsub.f32 0.0, %v4191_v34  ;;  %v4645_v55 = vcombine.low %v8675_v49, %v8678_v50 }
 0x4da   :  { %v4498_v56 = vmul.f32 1.442695, %v4482_v23  ;;  %v7606_v23 = vld [vmem:[%s9145_s4 + $0x1c0] sm:$0xff]  }
 0x4db   :  { %v4500_v57 = vmul.f32 1.442695, %v4483_v54  ;;  %4454 = vmatpush1.bf16.msra.mxu1 %v6824_v52  ;;  %v7603_v52 = vld [vmem:[%s9145_s4 + $0xb8] sm:$0xff]  }
 0x4dc   :  { %7766 = vpow2.f32 %v4498_v56  ;;  %4455 = vmatprep.subr.bf16.mxu1 %v6841_v13 }
 0x4dd   :  { %7768 = vpow2.f32 %v4500_v57  ;;  %v3453_v57 = vrot.slane %v8665_v30, %v8508_v4 }
 0x4df   :  { %4456 = vmatpush1.bf16.msra.mxu1 %v6840_v6 }
 0x4e0   :  { %6993 = vmatprep.subr.bf16.mxu1 %v7574_v20  ;;  %v3457_v20 = vrot.slane %v8665_v30, %v8511_v8 }
 0x4e2   :  { %4474 = vmatmul.mubr.bf16.vlgmr.msra.gmra.mrb[60].mxu1 %v8503_v38  ;;  %v7586_v38 = vld [vmem:[%s9145_s4 + $0xd8] sm:$0xff]  }
 0x4e3   :  { %6994 = vmatpush3.bf16.msra.mxu1 %v7575_v24  ;;  %v7830_v24 = vld [vmem:[%s9141_s0] sm:$0xff] }
 0x4e4   :  { %6995 = vmatprep.subr.bf16.mxu1 %v7578_v58  ;;  %v4650_v58 = vmul.f32 %v7830_v24, %v4594_v48 }
 0x4e6   :  { %v7767_v60 = vpop.eup %7766 }
 0x4e7   :  { %v7769_v61 = vpop.eup %7768  ;;  %v4530_v62 = vadd.f32 1.0, %v7767_v60  ;;  %6996 = vmatpush3.bf16.msra.mxu1 %v7579_v40 }
 0x4e8   :  { %v4531_v0 = vadd.f32 1.0, %v7769_v61  ;;  %6997 = vmatprep.subr.bf16.mxu1 %v7582_v59 }
 0x4e9   :  { %7770 = vrcp.f32 %v4530_v62 }
 0x4ea   :  { %7772 = vrcp.f32 %v4531_v0 }
 0x4eb   :  { %6998 = vmatpush3.bf16.msra.mxu1 %v7583_v63 }
 0x4ec   :  { %6999 = vmatprep.subr.bf16.mxu1 %v7586_v38 }
 0x4ef   :  { %7000 = vmatpush3.bf16.msra.mxu1 %v7587_v28 }
 0x4f0   :  { %7001 = vmatprep.subr.bf16.mxu1 %v7590_v2  ;;  %v4750_v2 = vcombine.high %v4650_v58, %v4650_v58 }
 0x4f2   :  { %v4764_v36 = vrot.slane %v4750_v2, %v7978_v16  ;;  %v3461_v2 = vrot.slane %v8665_v30, %v8531_v9 }
 0x4f3   :  { %v7771_v21 = vpop.eup %7770  ;;  %7002 = vmatpush3.bf16.msra.mxu1 %v7591_v3 }
 0x4f4   :  { %v7773_v27 = vpop.eup %7772  ;;  %7003 = vmatprep.subr.bf16.mxu1 %v7594_v10 }
 0x4f5   :  { %v4670_v32 = vcombine.low %v7771_v21, %v7773_v27  ;;  %v4229_v33 = vpop.f32.mrb[36].mxu1  ;;  %v4757_v27 = vrot.slane %v4650_v58, %v7978_v16  ;;  %v7613_v58 = vld [vmem:[%s9145_s4 + $0x108] sm:$0xff]  }
 0x4f6   :  { %v4230_v37 = vadd.f32 %v4229_v33, %v3445_v14  ;;  %v4231_v39 = vpop.f32.mrb[37].mxu1 }
 0x4f7   :  { %v4232_v41 = vadd.f32 %v4231_v39, %v3449_v45  ;;  %v4233_v17 = vpop.f32.mrb[38].mxu1  ;;  %7004 = vmatpush3.bf16.msra.mxu1 %v7595_v25  ;;  %v4678_v38 = vrot.slane %v4670_v32, %v7978_v16  ;;  %v4766_v32 = vcombine.high %v4764_v36, %v4764_v36 }
 0x4f8   :  { %v4484_v47 = vsub.f32 0.0, %v4230_v37  ;;  %v4234_v12 = vpop.f32.mrb[39].mxu1  ;;  %7005 = vmatprep.subr.bf16.mxu1 %v7598_v31  ;;  %v4765_v17 = vcombine.high %v4757_v27, %v4757_v27 }
 0x4f9   :  { %v4485_v22 = vsub.f32 0.0, %v4232_v41 }
 0x4fa   :  { %v4502_v34 = vmul.f32 1.442695, %v4484_v47 }
 0x4fb   :  { %v4504_v51 = vmul.f32 1.442695, %v4485_v22  ;;  %7006 = vmatpush3.bf16.msra.mxu1 %v7599_v44 }
 0x4fc   :  { %7774 = vpow2.f32 %v4502_v34  ;;  %7007 = vmatprep.subr.bf16.mxu1 %v7602_v19  ;;  %v7607_v19 = vld [vmem:[%s9145_s4 + $0x180] sm:$0xff]  }
 0x4fd   :  { %7776 = vpow2.f32 %v4504_v51  ;;  %v7610_v51 = vld [vmem:[%s9145_s4 + $0x1c8] sm:$0xff]  }
 0x4ff   :  { %7008 = vmatpush3.bf16.msra.mxu1 %v7603_v52 }
 0x500   :  { %7037 = vmatprep.subr.bf16.mxu1 %v7606_v23  ;;  %v7609_v23 = vld [vmem:[%s9145_s4 + $0x100] sm:$0xff]  }
 0x506   :  { %v7775_v26 = vpop.eup %7774 }
 0x507   :  { %v7777_v13 = vpop.eup %7776  ;;  %v4532_v54 = vadd.f32 1.0, %v7775_v26 }
 0x508   :  { %v4533_v56 = vadd.f32 1.0, %v7777_v13  ;;  %v7612_v13 = vld [vmem:[%s9145_s4 + $0x148] sm:$0xff]  }
 0x509   :  { %7778 = vrcp.f32 %v4532_v54 }
 0x50a   :  { %7780 = vrcp.f32 %v4533_v56  ;;  %v7611_v56 = vld [vmem:[%s9145_s4 + $0x188] sm:$0xff]  }
 0x513   :  { %v7779_v6 = vpop.eup %7778 }
 0x514   :  { %v7781_v40 = vpop.eup %7780 }
 0x515   :  { %v4671_v59 = vcombine.low %v7779_v6, %v7781_v40  ;;  %v4270_v60 = vpop.f32.mrb[40].mxu1  ;;  %v7616_v40 = vld [vmem:[%s9145_s4 + $0x150] sm:$0xff]  }
 0x516   :  { %v4271_v61 = vadd.f32 %v4270_v60, %v3453_v57  ;;  %v4272_v62 = vpop.f32.mrb[41].mxu1  ;;  %v7618_v60 = vld [vmem:[%s9145_s4 + $0x1d8] sm:$0xff]  }
 0x517   :  { %v4273_v63 = vadd.f32 %v4272_v62, %v3457_v20  ;;  %v4274_v0 = vpop.f32.mrb[42].mxu1  ;;  %v4685_v28 = vrot.slane %v4671_v59, %v7978_v16  ;;  %v7614_v20 = vld [vmem:[%s9145_s4 + $0x1d0] sm:$0xff]   ;;  %v7620_v62 = vld [vmem:[%s9145_s4 + $0x158] sm:$0xff]  }
 0x518   :  { %v4486_v3 = vsub.f32 0.0, %v4271_v61  ;;  %v4275_v10 = vpop.f32.mrb[43].mxu1  ;;  %v7615_v59 = vld [vmem:[%s9145_s4 + $0x190] sm:$0xff]   ;;  %v7622_v0 = vld [vmem:[%s9145_s4 + $0x1e0] sm:$0xff]  }
 0x519   :  { %v4487_v14 = vsub.f32 0.0, %v4273_v63  ;;  %v4686_v21 = vcombine.low %v4678_v38, %v4685_v28  ;;  %v7617_v61 = vld [vmem:[%s9145_s4 + $0x110] sm:$0xff]   ;;  %v7619_v63 = vld [vmem:[%s9145_s4 + $0x198] sm:$0xff]   ;;  %v7624_v28 = vld [vmem:[%s9145_s4 + $0x160] sm:$0xff]  }
 0x51a   :  { %v4506_v45 = vmul.f32 1.442695, %v4486_v3  ;;  %v7621_v38 = vld [vmem:[%s9145_s4 + $0x118] sm:$0xff]   ;;  %v7623_v3 = vld [vmem:[%s9145_s4 + $0x1a0] sm:$0xff]  }
 0x51b   :  { %v4508_v25 = vmul.f32 1.442695, %v4487_v14  ;;  %v4742_v35 = vmul.f32 %v7830_v24, %v4686_v21  ;;  %v3465_v14 = vrot.slane %v8665_v30, %v8534_v11  ;;  %v7626_v21 = vld [vmem:[%s9145_s4 + $0x1e8] sm:$0xff]  }
 0x51c   :  { %7782 = vpow2.f32 %v4506_v45  ;;  %v7628_v30 = vld [vmem:[%s9145_s4 + $0x168] sm:$0xff]  }
 0x51d   :  { %7784 = vpow2.f32 %v4508_v25  ;;  %v4852_v48 = vrot.slane %v4742_v35, %v7978_v16  ;;  %v4838_v31 = vcombine.low %v4742_v35, %v4742_v35  ;;  %v7625_v25 = vld [vmem:[%s9145_s4 + $0x120] sm:$0xff]  }
 0x51f   :  { %v4854_v33 = vcombine.high %v4852_v48, %v4852_v48  ;;  %v4925_v37 = vsel %vm4922_vm0, %v4764_v36, %v4852_v48  ;;  %v4845_v39 = vrot.slane %v4838_v31, %v7978_v16  ;;  %v7627_v31 = vld [vmem:[%s9145_s4 + $0x1a8] sm:$0xff]  }
 0x520   :  { %v4941_v22 = vpack.c.bf16 %v4925_v37, %v4925_v37  ;;  %v7630_v37 = vld [vmem:[%s9145_s4 + $0x1f0] sm:$0xff]  }
 0x521   :  { %v4926_v41 = vsel %vm4922_vm0, %v4766_v32, %v4854_v33  ;;  %v4853_v44 = vcombine.high %v4845_v39, %v4845_v39  ;;  %v4923_v47 = vsel %vm4922_vm0, %v4757_v27, %v4845_v39 }
 0x522   :  { %v4942_v12 = vpack.c.bf16 %v4926_v41, %v4926_v41  ;;  %v4939_v26 = vpack.c.bf16 %v4923_v47, %v4923_v47  ;;  %v7632_v47 = vld [vmem:[%s9145_s4 + $0x170] sm:$0xff]  }
 0x523   :  { %v4924_v34 = vsel %vm4922_vm0, %v4765_v17, %v4853_v44  ;;  %v7629_v17 = vld [vmem:[%s9145_s4 + $0x128] sm:$0xff]  }
 0x524   :  { %6057 = vmatprep.mubr.bf16.mxu1 %v4942_v12  ;;  %v4940_v52 = vpack.c.bf16 %v4924_v34, %v4924_v34  ;;  %v7634_v34 = vld [vmem:[%s9145_s4 + $0x1f8] sm:$0xff]  }
 0x525   :  { %6058 = vmatmul.mubr.bf16.vlgmr.msra.gmra.mrb[64].mxu1 %v4941_v22 }
 0x526   :  { %v7783_v54 = vpop.eup %7782  ;;  %6017 = vmatprep.mubr.bf16.mxu0 %v4940_v52  ;;  %7038 = vmatpush3.bf16.msra.mxu1 %v7607_v19  ;;  %v7631_v19 = vld [vmem:[%s9145_s4 + $0x1b0] sm:$0xff]   ;;  %v7636_v52 = vld [vmem:[%s9145_s4 + $0x178] sm:$0xff]  }
 0x527   :  { %v7785_v57 = vpop.eup %7784  ;;  %v4534_v6 = vadd.f32 1.0, %v7783_v54  ;;  %6018 = vmatmul.mubr.bf16.vlgmr.msra.gmra.mrb[4].mxu0 %v4939_v26  ;;  %7039 = vmatprep.subr.bf16.mxu1 %v7610_v51  ;;  %v7633_v51 = vld [vmem:[%s9145_s4 + $0x130] sm:$0xff]   ;;  %v7638_v26 = vld [vmem:[%s9145_s4 + $0x2c0] sm:$0xff]  }
 0x528   :  { %v4535_v24 = vadd.f32 1.0, %v7785_v57  ;;  %7016 = vmatpush3.bf16.msra.mxu0 %v7609_v23  ;;  %v7635_v23 = vld [vmem:[%s9145_s4 + $0x1b8] sm:$0xff]   ;;  %v7640_v54 = vld [vmem:[%s9145_s4 + $0x240] sm:$0xff]  }
 0x529   :  { %7786 = vrcp.f32 %v4534_v6  ;;  %7017 = vmatprep.subr.bf16.mxu0 %v7612_v13  ;;  %v7637_v13 = vld [vmem:[%s9145_s4 + $0x138] sm:$0xff]  }
 0x52a   :  { %7788 = vrcp.f32 %v4535_v24  ;;  %7040 = vmatpush3.bf16.msra.mxu1 %v7611_v56  ;;  %v8867_v24 = vld [vmem:[%s9146_s5 + $0x1a] sm:$0xff] }
 0x52b   :  { %7041 = vmatprep.subr.bf16.mxu1 %v7614_v20 }
 0x52c   :  { %7018 = vmatpush3.bf16.msra.mxu0 %v7613_v58  ;;  %v3469_v58 = vrot.slane %v8867_v24, %v8113_v29 }
 0x52d   :  { %7019 = vmatprep.subr.bf16.mxu0 %v7616_v40 }
 0x52e   :  { %7042 = vmatpush3.bf16.msra.mxu1 %v7615_v59  ;;  %v3473_v59 = vrot.slane %v8867_v24, %v8464_v18 }
 0x52f   :  { %7043 = vmatprep.subr.bf16.mxu1 %v7618_v60  ;;  %v7831_v60 = vld [vmem:[%s9141_s0 + $0x8] sm:$0xff] }
 0x530   :  { %7020 = vmatpush3.bf16.msra.mxu0 %v7617_v61  ;;  %v4651_v61 = vmul.f32 %v7831_v60, %v4611_v53 }
 0x531   :  { %7021 = vmatprep.subr.bf16.mxu0 %v7620_v62 }
 0x532   :  { %7044 = vmatpush3.bf16.msra.mxu1 %v7619_v63  ;;  %v4767_v18 = vcombine.high %v4651_v61, %v4651_v61 }
 0x533   :  { %v8811_v10 = vpop.eup %7786  ;;  %7045 = vmatprep.subr.bf16.mxu1 %v7622_v0 }
 0x534   :  { %v8818_v45 = vpop.eup %7788  ;;  %7022 = vmatpush3.bf16.msra.mxu0 %v7621_v38  ;;  %v4781_v46 = vrot.slane %v4767_v18, %v7978_v16 }
 0x535   :  { %v4687_v35 = vcombine.low %v8811_v10, %v8818_v45  ;;  %v4311_v36 = vpop.f32.mrb[44].mxu1  ;;  %7023 = vmatprep.subr.bf16.mxu0 %v7624_v28 }
 0x536   :  { %v4312_v48 = vadd.f32 %v4311_v36, %v3461_v2  ;;  %v4313_v27 = vpop.f32.mrb[45].mxu1  ;;  %7046 = vmatpush3.bf16.msra.mxu1 %v7623_v3 }
 0x537   :  { %v4314_v32 = vadd.f32 %v4313_v27, %v3465_v14  ;;  %v4315_v33 = vpop.f32.mrb[46].mxu1  ;;  %7047 = vmatprep.subr.bf16.mxu1 %v7626_v21  ;;  %v4695_v29 = vrot.slane %v4687_v35, %v7978_v16  ;;  %v4783_v35 = vcombine.high %v4781_v46, %v4781_v46 }
 0x538   :  { %v4488_v39 = vsub.f32 0.0, %v4312_v48  ;;  %v4316_v41 = vpop.f32.mrb[47].mxu1  ;;  %7024 = vmatpush3.bf16.msra.mxu0 %v7625_v25  ;;  %v4774_v48 = vrot.slane %v4651_v61, %v7978_v16  ;;  %v7652_v61 = vld [vmem:[%s9145_s4 + $0x258] sm:$0xff]  }
 0x539   :  { %v4489_v44 = vsub.f32 0.0, %v4314_v32  ;;  %7025 = vmatprep.subr.bf16.mxu0 %v7628_v30 }
 0x53a   :  { %v4510_v12 = vmul.f32 1.442695, %v4488_v39  ;;  %7048 = vmatpush3.bf16.msra.mxu1 %v7627_v31  ;;  %v4782_v39 = vcombine.high %v4774_v48, %v4774_v48 }
 0x53b   :  { %v4512_v22 = vmul.f32 1.442695, %v4489_v44  ;;  %7049 = vmatprep.subr.bf16.mxu1 %v7630_v37 }
 0x53c   :  { %7790 = vpow2.f32 %v4510_v12  ;;  %7026 = vmatpush3.bf16.msra.mxu0 %v7629_v17 }
 0x53d   :  { %7792 = vpow2.f32 %v4512_v22  ;;  %7027 = vmatprep.subr.bf16.mxu0 %v7632_v47  ;;  %v7639_v47 = vld [vmem:[%s9145_s4 + $0x280] sm:$0xff]   ;;  %v7642_v22 = vld [vmem:[%s9145_s4 + $0x2c8] sm:$0xff]  }
 0x53e   :  { %7050 = vmatpush3.bf16.msra.mxu1 %v7631_v19 }
 0x53f   :  { %7051 = vmatprep.subr.bf16.mxu1 %v7634_v34 }
 0x540   :  { %7028 = vmatpush3.bf16.msra.mxu0 %v7633_v51  ;;  %v7641_v51 = vld [vmem:[%s9145_s4 + $0x200] sm:$0xff]  }
 0x541   :  { %7029 = vmatprep.subr.bf16.mxu0 %v7636_v52 }
 0x542   :  { %7052 = vmatpush3.bf16.msra.mxu1 %v7635_v23  ;;  %v7644_v23 = vld [vmem:[%s9145_s4 + $0x248] sm:$0xff]  }
 0x543   :  { %7081 = vmatprep.subr.bf16.mxu1 %v7638_v26 }
 0x544   :  { %7030 = vmatpush3.bf16.msra.mxu0 %v7637_v13  ;;  %v7643_v13 = vld [vmem:[%s9145_s4 + $0x288] sm:$0xff]  }
 0x545   :  { %7059 = vmatprep.subr.bf16.mxu0 %v7640_v54 }
 0x546   :  { %v7791_v56 = vpop.eup %7790 }
 0x547   :  { %v7793_v57 = vpop.eup %7792  ;;  %v4536_v6 = vadd.f32 1.0, %v7791_v56 }
 0x548   :  { %v4537_v20 = vadd.f32 1.0, %v7793_v57  ;;  %v7646_v57 = vld [vmem:[%s9145_s4 + $0x2d0] sm:$0xff]  }
 0x549   :  { %7794 = vrcp.f32 %v4536_v6 }
 0x54a   :  { %7796 = vrcp.f32 %v4537_v20  ;;  %v7645_v20 = vld [vmem:[%s9145_s4 + $0x208] sm:$0xff]  }
 0x553   :  { %v7795_v40 = vpop.eup %7794 }
 0x554   :  { %v7797_v62 = vpop.eup %7796 }
 0x555   :  { %v4688_v63 = vcombine.low %v7795_v40, %v7797_v62  ;;  %v4352_v0 = vpop.f32.mrb[48].mxu1  ;;  %v7647_v40 = vld [vmem:[%s9145_s4 + $0x290] sm:$0xff]   ;;  %v7651_v62 = vld [vmem:[%s9145_s4 + $0x298] sm:$0xff]  }
 0x556   :  { %v4353_v38 = vadd.f32 %v4352_v0, %v3469_v58  ;;  %v4354_v28 = vpop.f32.mrb[49].mxu1  ;;  %v7648_v58 = vld [vmem:[%s9145_s4 + $0x250] sm:$0xff]   ;;  %v7653_v0 = vld [vmem:[%s9145_s4 + $0x218] sm:$0xff]  }
 0x557   :  { %v4355_v2 = vadd.f32 %v4354_v28, %v3473_v59  ;;  %v4356_v3 = vpop.f32.mrb[50].mxu1  ;;  %v4702_v10 = vrot.slane %v4688_v63, %v7978_v16  ;;  %v7650_v59 = vld [vmem:[%s9145_s4 + $0x2d8] sm:$0xff]   ;;  %v7654_v63 = vld [vmem:[%s9145_s4 + $0x2e0] sm:$0xff]   ;;  %v3477_v28 = vrot.slane %v8867_v24, %v8485_v5 }
 0x558   :  { %v4490_v14 = vsub.f32 0.0, %v4353_v38  ;;  %v4357_v21 = vpop.f32.mrb[51].mxu1  ;;  %v7656_v38 = vld [vmem:[%s9145_s4 + $0x260] sm:$0xff]  }
 0x559   :  { %v4491_v45 = vsub.f32 0.0, %v4355_v2  ;;  %v4703_v25 = vcombine.low %v4695_v29, %v4702_v10  ;;  %v7655_v2 = vld [vmem:[%s9145_s4 + $0x2a0] sm:$0xff]   ;;  %v3481_v29 = vrot.slane %v8867_v24, %v8488_v7  ;;  %v7658_v10 = vld [vmem:[%s9145_s4 + $0x2e8] sm:$0xff]  }
 0x55a   :  { %v4514_v36 = vmul.f32 1.442695, %v4490_v14  ;;  %v7657_v5 = vld [vmem:[%s9145_s4 + $0x220] sm:$0xff]   ;;  %v7660_v7 = vld [vmem:[%s9145_s4 + $0x268] sm:$0xff]  }
 0x55b   :  { %v4516_v30 = vmul.f32 1.442695, %v4491_v45  ;;  %v4743_v15 = vmul.f32 %v7831_v60, %v4703_v25  ;;  %v7649_v60 = vld [vmem:[%s9145_s4 + $0x210] sm:$0xff]  }
 0x55c   :  { %7798 = vpow2.f32 %v4514_v36  ;;  %v7659_v36 = vld [vmem:[%s9145_s4 + $0x2a8] sm:$0xff]  }
 0x55d   :  { %7800 = vpow2.f32 %v4516_v30  ;;  %v4869_v53 = vrot.slane %v4743_v15, %v7978_v16  ;;  %v4855_v27 = vcombine.low %v4743_v15, %v4743_v15 }
 0x55f   :  { %v4871_v31 = vcombine.high %v4869_v53, %v4869_v53  ;;  %v4929_v32 = vsel %vm4922_vm0, %v4781_v46, %v4869_v53  ;;  %v4862_v33 = vrot.slane %v4855_v27, %v7978_v16  ;;  %v7662_v46 = vld [vmem:[%s9145_s4 + $0x2f0] sm:$0xff]   ;;  %v7661_v27 = vld [vmem:[%s9145_s4 + $0x228] sm:$0xff]  }
 0x560   :  { %v4945_v12 = vpack.c.bf16 %v4929_v32, %v4929_v32 }
 0x561   :  { %v4930_v37 = vsel %vm4922_vm0, %v4783_v35, %v4871_v31  ;;  %v4870_v41 = vcombine.high %v4862_v33, %v4862_v33  ;;  %v4927_v17 = vsel %vm4922_vm0, %v4774_v48, %v4862_v33  ;;  %v7664_v31 = vld [vmem:[%s9145_s4 + $0x270] sm:$0xff]  }
 0x562   :  { %v4946_v44 = vpack.c.bf16 %v4930_v37, %v4930_v37  ;;  %v4943_v52 = vpack.c.bf16 %v4927_v17, %v4927_v17  ;;  %v7663_v33 = vld [vmem:[%s9145_s4 + $0x2b0] sm:$0xff]   ;;  %v7668_v17 = vld [vmem:[%s9145_s4 + $0x278] sm:$0xff]  }
 0x563   :  { %v4928_v19 = vsel %vm4922_vm0, %v4782_v39, %v4870_v41  ;;  %v7666_v39 = vld [vmem:[%s9145_s4 + $0x2f8] sm:$0xff]   ;;  %v7665_v41 = vld [vmem:[%s9145_s4 + $0x230] sm:$0xff]  }
 0x564   :  { %6137 = vmatprep.mubr.bf16.mxu1 %v4946_v44  ;;  %v4944_v34 = vpack.c.bf16 %v4928_v19, %v4928_v19  ;;  %v7667_v44 = vld [vmem:[%s9145_s4 + $0x2b8] sm:$0xff]   ;;  %v7672_v19 = vld [vmem:[%s9145_s4 + $0x340] sm:$0xff]  }
 0x565   :  { %6138 = vmatmul.mubr.bf16.vlgmr.msra.gmra.mrb[68].mxu1 %v4945_v12  ;;  %v7669_v12 = vld [vmem:[%s9145_s4 + $0x238] sm:$0xff]  }
 0x566   :  { %v7799_v26 = vpop.eup %7798  ;;  %6097 = vmatprep.mubr.bf16.mxu0 %v4944_v34  ;;  %7082 = vmatpush3.bf16.msra.mxu1 %v7639_v47  ;;  %v7670_v47 = vld [vmem:[%s9145_s4 + $0x3c0] sm:$0xff]  }
 0x567   :  { %v7801_v54 = vpop.eup %7800  ;;  %v4538_v56 = vadd.f32 1.0, %v7799_v26  ;;  %6098 = vmatmul.mubr.bf16.vlgmr.msra.gmra.mrb[8].mxu0 %v4943_v52  ;;  %7083 = vmatprep.subr.bf16.mxu1 %v7642_v22 }
 0x568   :  { %v4539_v6 = vadd.f32 1.0, %v7801_v54  ;;  %7060 = vmatpush3.bf16.msra.mxu0 %v7641_v51  ;;  %v7832_v54 = vld [vmem:[%s9141_s0 + $0x10] sm:$0xff] }
 0x569   :  { %7802 = vrcp.f32 %v4538_v56  ;;  %7061 = vmatprep.subr.bf16.mxu0 %v7644_v23  ;;  %v3485_v23 = vrot.slane %v8867_v24, %v8508_v4  ;;  %v4652_v56 = vmul.f32 %v7832_v54, %v4628_v43 }
 0x56a   :  { %7804 = vrcp.f32 %v4539_v6  ;;  %7084 = vmatpush3.bf16.msra.mxu1 %v7643_v13  ;;  %v3489_v13 = vrot.slane %v8867_v24, %v8511_v8 }
 0x56b   :  { %7085 = vmatprep.subr.bf16.mxu1 %v7646_v57  ;;  %v4784_v8 = vcombine.high %v4652_v56, %v4652_v56 }
 0x56c   :  { %7062 = vmatpush3.bf16.msra.mxu0 %v7645_v20 }
 0x56d   :  { %7063 = vmatprep.subr.bf16.mxu0 %v7648_v58  ;;  %v4798_v42 = vrot.slane %v4784_v8, %v7978_v16  ;;  %v7694_v8 = vld [vmem:[%s9145_s4 + $0x3f0] sm:$0xff]  }
 0x56e   :  { %7086 = vmatpush3.bf16.msra.mxu1 %v7647_v40 }
 0x56f   :  { %7087 = vmatprep.subr.bf16.mxu1 %v7650_v59 }
 0x570   :  { %7064 = vmatpush3.bf16.msra.mxu0 %v7649_v60 }
 0x571   :  { %7065 = vmatprep.subr.bf16.mxu0 %v7652_v61 }
 0x572   :  { %7088 = vmatpush3.bf16.msra.mxu1 %v7651_v62 }
 0x573   :  { %v8942_v3 = vpop.eup %7802  ;;  %7089 = vmatprep.subr.bf16.mxu1 %v7654_v63 }
 0x574   :  { %v8949_v18 = vpop.eup %7804  ;;  %7066 = vmatpush3.bf16.msra.mxu0 %v7653_v0 }
 0x575   :  { %v4704_v14 = vcombine.low %v8942_v3, %v8949_v18  ;;  %v4393_v21 = vpop.f32.mrb[52].mxu1  ;;  %7067 = vmatprep.subr.bf16.mxu0 %v7656_v38  ;;  %v4791_v3 = vrot.slane %v4652_v56, %v7978_v16 }
 0x576   :  { %v4394_v45 = vadd.f32 %v4393_v21, %v3477_v28  ;;  %v4395_v25 = vpop.f32.mrb[53].mxu1  ;;  %7090 = vmatpush3.bf16.msra.mxu1 %v7655_v2 }
 0x577   :  { %v4396_v30 = vadd.f32 %v4395_v25, %v3481_v29  ;;  %v4397_v15 = vpop.f32.mrb[54].mxu1  ;;  %7091 = vmatprep.subr.bf16.mxu1 %v7658_v10  ;;  %v4712_v4 = vrot.slane %v4704_v14, %v7978_v16  ;;  %v4800_v10 = vcombine.high %v4798_v42, %v4798_v42 }
 0x578   :  { %v4492_v53 = vsub.f32 0.0, %v4394_v45  ;;  %v4398_v48 = vpop.f32.mrb[55].mxu1  ;;  %7068 = vmatpush3.bf16.msra.mxu0 %v7657_v5 }
 0x579   :  { %v4493_v35 = vsub.f32 0.0, %v4396_v30  ;;  %7069 = vmatprep.subr.bf16.mxu0 %v7660_v7  ;;  %v4799_v7 = vcombine.high %v4791_v3, %v4791_v3  ;;  %v7671_v30 = vld [vmem:[%s9145_s4 + $0x380] sm:$0xff]  }
 0x57a   :  { %v4518_v32 = vmul.f32 1.442695, %v4492_v53  ;;  %7092 = vmatpush3.bf16.msra.mxu1 %v7659_v36  ;;  %v7674_v53 = vld [vmem:[%s9145_s4 + $0x3c8] sm:$0xff]  }
 0x57b   :  { %v4520_v37 = vmul.f32 1.442695, %v4493_v35  ;;  %7093 = vmatprep.subr.bf16.mxu1 %v7662_v46 }
 0x57c   :  { %7806 = vpow2.f32 %v4518_v32  ;;  %7070 = vmatpush3.bf16.msra.mxu0 %v7661_v27  ;;  %v7673_v27 = vld [vmem:[%s9145_s4 + $0x300] sm:$0xff]  }
 0x57d   :  { %7808 = vpow2.f32 %v4520_v37  ;;  %7071 = vmatprep.subr.bf16.mxu0 %v7664_v31  ;;  %v7676_v31 = vld [vmem:[%s9145_s4 + $0x348] sm:$0xff]  }
 0x57e   :  { %7094 = vmatpush3.bf16.msra.mxu1 %v7663_v33  ;;  %v7675_v33 = vld [vmem:[%s9145_s4 + $0x388] sm:$0xff]  }
 0x57f   :  { %7095 = vmatprep.subr.bf16.mxu1 %v7666_v39 }
 0x580   :  { %7072 = vmatpush3.bf16.msra.mxu0 %v7665_v41  ;;  %v7678_v41 = vld [vmem:[%s9145_s4 + $0x3d0] sm:$0xff]  }
 0x581   :  { %7073 = vmatprep.subr.bf16.mxu0 %v7668_v17 }
 0x582   :  { %7096 = vmatpush3.bf16.msra.mxu1 %v7667_v44  ;;  %v7677_v44 = vld [vmem:[%s9145_s4 + $0x308] sm:$0xff]  }
 0x583   :  { %7125 = vmatprep.subr.bf16.mxu1 %v7670_v47  ;;  %v7680_v47 = vld [vmem:[%s9145_s4 + $0x350] sm:$0xff]  }
 0x584   :  { %7074 = vmatpush3.bf16.msra.mxu0 %v7669_v12  ;;  %v7679_v12 = vld [vmem:[%s9145_s4 + $0x390] sm:$0xff]  }
 0x585   :  { %7103 = vmatprep.subr.bf16.mxu0 %v7672_v19  ;;  %v7682_v19 = vld [vmem:[%s9145_s4 + $0x3d8] sm:$0xff]  }
 0x586   :  { %v7807_v22 = vpop.eup %7806 }
 0x587   :  { %v7809_v34 = vpop.eup %7808  ;;  %v4540_v51 = vadd.f32 1.0, %v7807_v22  ;;  %v7681_v22 = vld [vmem:[%s9145_s4 + $0x310] sm:$0xff]  }
 0x588   :  { %v4541_v52 = vadd.f32 1.0, %v7809_v34  ;;  %v7684_v34 = vld [vmem:[%s9145_s4 + $0x358] sm:$0xff]  }
 0x589   :  { %7810 = vrcp.f32 %v4540_v51  ;;  %v7683_v51 = vld [vmem:[%s9145_s4 + $0x398] sm:$0xff]  }
 0x58a   :  { %7812 = vrcp.f32 %v4541_v52  ;;  %v7686_v52 = vld [vmem:[%s9145_s4 + $0x3e0] sm:$0xff]  }
 0x593   :  { %v7811_v26 = vpop.eup %7810 }
 0x594   :  { %v7813_v57 = vpop.eup %7812 }
 0x595   :  { %v4705_v6 = vcombine.low %v7811_v26, %v7813_v57  ;;  %v4434_v20 = vpop.f32.mrb[56].mxu1  ;;  %v7688_v26 = vld [vmem:[%s9145_s4 + $0x360] sm:$0xff]   ;;  %v3497_v57 = vrot.slane %v8867_v24, %v8534_v11 }
 0x596   :  { %v4435_v58 = vadd.f32 %v4434_v20, %v3485_v23  ;;  %v4436_v40 = vpop.f32.mrb[57].mxu1  ;;  %v7685_v23 = vld [vmem:[%s9145_s4 + $0x318] sm:$0xff]  }
 0x597   :  { %v4437_v59 = vadd.f32 %v4436_v40, %v3489_v13  ;;  %v4438_v60 = vpop.f32.mrb[58].mxu1  ;;  %v4719_v61 = vrot.slane %v4705_v6, %v7978_v16  ;;  %v3493_v13 = vrot.slane %v8867_v24, %v8531_v9  ;;  %v7690_v6 = vld [vmem:[%s9145_s4 + $0x3e8] sm:$0xff]   ;;  %v7689_v9 = vld [vmem:[%s9145_s4 + $0x320] sm:$0xff]  }
 0x598   :  { %v4494_v62 = vsub.f32 0.0, %v4435_v58  ;;  %v4439_v63 = vpop.f32.mrb[59].mxu1  ;;  %v7691_v24 = vld [vmem:[%s9145_s4 + $0x3a8] sm:$0xff]  }
 0x599   :  { %v4495_v0 = vsub.f32 0.0, %v4437_v59  ;;  %v4720_v38 = vcombine.low %v4712_v4, %v4719_v61  ;;  %v7692_v59 = vld [vmem:[%s9145_s4 + $0x368] sm:$0xff]  }
 0x59a   :  { %v4522_v28 = vmul.f32 1.442695, %v4494_v62 }
 0x59b   :  { %v4524_v2 = vmul.f32 1.442695, %v4495_v0  ;;  %v4744_v1 = vmul.f32 %v7832_v54, %v4720_v38  ;;  %v7687_v54 = vld [vmem:[%s9145_s4 + $0x3a0] sm:$0xff]   ;;  %v7693_v0 = vld [vmem:[%s9145_s4 + $0x328] sm:$0xff]  }
 0x59c   :  { %7814 = vpow2.f32 %v4522_v28  ;;  %v7696_v28 = vld [vmem:[%s9145_s4 + $0x370] sm:$0xff]  }
 0x59d   :  { %7816 = vpow2.f32 %v4524_v2  ;;  %v4886_v43 = vrot.slane %v4744_v1, %v7978_v16  ;;  %v4872_v29 = vcombine.low %v4744_v1, %v4744_v1  ;;  %v7695_v1 = vld [vmem:[%s9145_s4 + $0x3b0] sm:$0xff]  }
 0x59f   :  { %v4888_v18 = vcombine.high %v4886_v43, %v4886_v43  ;;  %v4933_v5 = vsel %vm4922_vm0, %v4798_v42, %v4886_v43  ;;  %v4879_v14 = vrot.slane %v4872_v29, %v7978_v16  ;;  %v7698_v43 = vld [vmem:[%s9145_s4 + $0x3f8] sm:$0xff]  }
 0x5a0   :  { %v4949_v15 = vpack.c.bf16 %v4933_v5, %v4933_v5  ;;  %v7700_v29 = vld [vmem:[%s9145_s4 + $0x378] sm:$0xff]  }
 0x5a1   :  { %v4934_v21 = vsel %vm4922_vm0, %v4800_v10, %v4888_v18  ;;  %v4887_v45 = vcombine.high %v4879_v14, %v4879_v14  ;;  %v4931_v25 = vsel %vm4922_vm0, %v4791_v3, %v4879_v14  ;;  %v7697_v3 = vld [vmem:[%s9145_s4 + $0x330] sm:$0xff]   ;;  %v7699_v10 = vld [vmem:[%s9145_s4 + $0x3b8] sm:$0xff]  }
 0x5a2   :  { %v4950_v36 = vpack.c.bf16 %v4934_v21, %v4934_v21  ;;  %v4947_v35 = vpack.c.bf16 %v4931_v25, %v4931_v25  ;;  %v7701_v18 = vld [vmem:[%s9145_s4 + $0x338] sm:$0xff]  }
 0x5a3   :  { %v4932_v46 = vsel %vm4922_vm0, %v4799_v7, %v4887_v45  ;;  %v7833_v25 = vld [vmem:[%s9141_s0 + $0x18] sm:$0xff] }
 0x5a4   :  { %6217 = vmatprep.mubr.bf16.mxu1 %v4950_v36  ;;  %v4948_v48 = vpack.c.bf16 %v4932_v46, %v4932_v46  ;;  %v4653_v36 = vmul.f32 %v7833_v25, %v4645_v55 }
 0x5a5   :  { %6218 = vmatmul.mubr.bf16.vlgmr.msra.gmra.mrb[72].mxu1 %v4949_v15 }
 0x5a6   :  { %v7815_v32 = vpop.eup %7814  ;;  %6177 = vmatprep.mubr.bf16.mxu0 %v4948_v48  ;;  %7126 = vmatpush3.bf16.msra.mxu1 %v7671_v30  ;;  %v4801_v48 = vcombine.high %v4653_v36, %v4653_v36 }
 0x5a7   :  { %v7817_v37 = vpop.eup %7816  ;;  %v4542_v39 = vadd.f32 1.0, %v7815_v32  ;;  %6178 = vmatmul.mubr.bf16.vlgmr.msra.gmra.mrb[12].mxu0 %v4947_v35  ;;  %7127 = vmatprep.subr.bf16.mxu1 %v7674_v53 }
 0x5a8   :  { %v4543_v17 = vadd.f32 1.0, %v7817_v37  ;;  %7104 = vmatpush3.bf16.msra.mxu0 %v7673_v27 }
 0x5a9   :  { %7818 = vrcp.f32 %v4542_v39  ;;  %7105 = vmatprep.subr.bf16.mxu0 %v7676_v31  ;;  %v4815_v31 = vrot.slane %v4801_v48, %v7978_v16 }
 0x5aa   :  { %7820 = vrcp.f32 %v4543_v17  ;;  %7128 = vmatpush3.bf16.msra.mxu1 %v7675_v33  ;;  %v4808_v33 = vrot.slane %v4653_v36, %v7978_v16 }
 0x5ab   :  { %7129 = vmatprep.subr.bf16.mxu1 %v7678_v41  ;;  %v4817_v39 = vcombine.high %v4815_v31, %v4815_v31 }
 0x5ac   :  { %7106 = vmatpush3.bf16.msra.mxu0 %v7677_v44  ;;  %v4816_v17 = vcombine.high %v4808_v33, %v4808_v33 }
 0x5ad   :  { %7107 = vmatprep.subr.bf16.mxu0 %v7680_v47 }
 0x5ae   :  { %7130 = vmatpush3.bf16.msra.mxu1 %v7679_v12 }
 0x5af   :  { %7131 = vmatprep.subr.bf16.mxu1 %v7682_v19 }
 0x5b0   :  { %7108 = vmatpush3.bf16.msra.mxu0 %v7681_v22 }
 0x5b1   :  { %7109 = vmatprep.subr.bf16.mxu0 %v7684_v34 }
 0x5b2   :  { %7132 = vmatpush3.bf16.msra.mxu1 %v7683_v51 }
 0x5b3   :  { %v7819_v56 = vpop.eup %7818  ;;  %7133 = vmatprep.subr.bf16.mxu1 %v7686_v52 }
 0x5b4   :  { %v7821_v20 = vpop.eup %7820  ;;  %7110 = vmatpush3.bf16.msra.mxu0 %v7685_v23 }
 0x5b5   :  { %v4721_v58 = vcombine.low %v7819_v56, %v7821_v20  ;;  %v4475_v40 = vpop.f32.mrb[60].mxu1  ;;  %7111 = vmatprep.subr.bf16.mxu0 %v7688_v26 }
 0x5b6   :  { %v4476_v60 = vadd.f32 %v4475_v40, %v3493_v13  ;;  %v4477_v11 = vpop.f32.mrb[61].mxu1  ;;  %7134 = vmatpush3.bf16.msra.mxu1 %v7687_v54  ;;  %v6842_v54 = vld [vmem:[%s9146_s5 + $0x22] ss:$0 sm:$0xff]  ;;  %s7914_s5 = smov [#allocation7]  }
 0x5b7   :  { %v4478_v4 = vadd.f32 %v4477_v11, %v3497_v57  ;;  %v4479_v61 = vpop.f32.mrb[62].mxu1  ;;  %7135 = vmatprep.subr.bf16.mxu1 %v7690_v6  ;;  %v4729_v46 = vrot.slane %v4721_v58, %v7978_v16  ;;  %s6320_s25 = sshll.u32 %s7914_s5, 4  ;;  %s6321_s25 = int_to_ptr.vmem [resolvable:$true] %s6320_s25 }
 0x5b8   :  { %v4496_v62 = vsub.f32 0.0, %v4476_v60  ;;  %v4480_v63 = vpop.f32.mrb[63].mxu1  ;;  %7112 = vmatpush3.bf16.msra.mxu0 %v7689_v9  ;;  %s7878_s26 = scalar_lea.vmem %s6321_s25, 32  ;;  %p7883_p3 = scmp.lt.s32.totalorder %s6321_s25, %s6321_s25 }
 0x5b9   :  { %v4497_v38 = vsub.f32 0.0, %v4478_v4  ;;  %7113 = vmatprep.subr.bf16.mxu0 %v7692_v59  ;;  %p7879_p2 = scmp.ne.s32.totalorder %s6321_s25, %s7878_s26  ;;  %p7884_p4 = scmp.lt.s32.totalorder %s7878_s26, %s7878_s26 }
 0x5ba   :  { %v4526_v2 = vmul.f32 1.442695, %v4496_v62  ;;  %7136 = vmatpush3.bf16.msra.mxu1 %v7691_v24 }
 0x5bb   :  { %v4528_v42 = vmul.f32 1.442695, %v4497_v38  ;;  %7137 = vmatprep.subr.bf16.mxu1 %v7694_v8  ;;  %p7885_p5 = por %p7884_p4, %p7883_p3 }
 0x5bc   :  { %7822 = vpow2.f32 %v4526_v2  ;;  %7114 = vmatpush3.bf16.msra.mxu0 %v7693_v0 }
 0x5bd   :  { %7824 = vpow2.f32 %v4528_v42  ;;  %7115 = vmatprep.subr.bf16.mxu0 %v7696_v28  ;;  %p7886_p6 = pnand %p7885_p5, %p7879_p2 }
 0x5be   :  { %7138 = vmatpush3.bf16.msra.mxu1 %v7695_v1 }
 0x5bf   :  { %7139 = vmatprep.subr.bf16.mxu1 %v7698_v43 }
 0x5c0   :  { %7116 = vmatpush3.bf16.msra.mxu0 %v7697_v3 }
 0x5c1   :  { %7117 = vmatprep.subr.bf16.mxu0 %v7700_v29 }
 0x5c2   :  { %7140 = vmatpush3.bf16.msra.mxu1 %v7699_v10 }
 0x5c4   :  { %7118 = vmatpush3.bf16.msra.mxu0 %v7701_v18 }
 0x5c6   :  { %v7823_v5 = vpop.eup %7822 }
 0x5c7   :  { %v7825_v14 = vpop.eup %7824  ;;  %v4544_v21 = vadd.f32 1.0, %v7823_v5 }
 0x5c8   :  { %v4545_v7 = vadd.f32 1.0, %v7825_v14 }
 0x5c9   :  { %7826 = vrcp.f32 %v4544_v21 }
 0x5ca   :  { %7828 = vrcp.f32 %v4545_v7 }
 0x5d3   :  { %v7827_v45 = vpop.eup %7826 }
 0x5d4   :  { %v7829_v30 = vpop.eup %7828 }
 0x5d5   :  { %v4722_v15 = vcombine.low %v7827_v45, %v7829_v30 }
 0x5d7   :  { %v4736_v53 = vrot.slane %v4722_v15, %v7978_v16 }
 0x5d9   :  { %v4737_v27 = vcombine.low %v4729_v46, %v4736_v53 }
 0x5db   :  { %v4745_v35 = vmul.f32 %v7833_v25, %v4737_v27 }
 0x5dd   :  { %v4903_v32 = vrot.slane %v4745_v35, %v7978_v16  ;;  %v4889_v37 = vcombine.low %v4745_v35, %v4745_v35 }
 0x5df   :  { %v4905_v41 = vcombine.high %v4903_v32, %v4903_v32  ;;  %v4937_v49 = vsel %vm4922_vm0, %v4815_v31, %v4903_v32  ;;  %v4896_v50 = vrot.slane %v4889_v37, %v7978_v16 }
 0x5e0   :  { %v4953_v19 = vpack.c.bf16 %v4937_v49, %v4937_v49 }
 0x5e1   :  { %v4938_v55 = vsel %vm4922_vm0, %v4817_v39, %v4905_v41  ;;  %v4904_v44 = vcombine.high %v4896_v50, %v4896_v50  ;;  %v4935_v47 = vsel %vm4922_vm0, %v4808_v33, %v4896_v50 }
 0x5e2   :  { %v4954_v12 = vpack.c.bf16 %v4938_v55, %v4938_v55  ;;  %v4951_v51 = vpack.c.bf16 %v4935_v47, %v4935_v47 }
 0x5e3   :  { %v4936_v22 = vsel %vm4922_vm0, %v4816_v17, %v4904_v44 }
 0x5e4   :  { %6297 = vmatprep.mubr.bf16.mxu1 %v4954_v12  ;;  %v4952_v34 = vpack.c.bf16 %v4936_v22, %v4936_v22 }
 0x5e5   :  { %6298 = vmatmul.mubr.bf16.vlgmr.msra.gmra.mrb[76].mxu1 %v4953_v19 }
 0x5e6   :  { %6257 = vmatprep.mubr.bf16.mxu0 %v4952_v34 }
 0x5e7   :  { %6258 = vmatmul.mubr.bf16.vlgmr.msra.gmra.mrb[16].mxu0 %v4951_v51 }
 0x5f8   :  { %v7009_v52 = vpop.f32.mrb[64].mxu1 }
 0x5f9   :  { %v7010_v23 = vpop.f32.mrb[65].mxu1 }
 0x5fa   :  { %v7011_v26 = vadd.f32 %v7010_v23, %v7009_v52  ;;  %v6987_v16 = vpop.f32.mrb[4].mxu0  ;;  %v7012_v13 = vpop.f32.mrb[66].mxu1 }
 0x5fb   :  { %v6988_v56 = vpop.f32.mrb[5].mxu0  ;;  %v7013_v57 = vpop.f32.mrb[67].mxu1 }
 0x5fc   :  { %v6989_v6 = vadd.f32 %v6988_v56, %v6987_v16  ;;  %v6990_v20 = vpop.f32.mrb[6].mxu0 }
 0x5fd   :  { %v6991_v9 = vpop.f32.mrb[7].mxu0 }
 0x5fe   :  { %v6020_v58 = vadd.f32 %v6989_v6, %v6842_v54 }
 0x600   :  { %v6060_v40 = vadd.f32 %v7011_v26, %v6020_v58 }
 0x638   :  { %v7053_v59 = vpop.f32.mrb[68].mxu1 }
 0x639   :  { %v7054_v60 = vpop.f32.mrb[69].mxu1 }
 0x63a   :  { %v7055_v11 = vadd.f32 %v7054_v60, %v7053_v59  ;;  %v7031_v24 = vpop.f32.mrb[8].mxu0  ;;  %v7056_v4 = vpop.f32.mrb[70].mxu1 }
 0x63b   :  { %v7032_v61 = vpop.f32.mrb[9].mxu0  ;;  %v7057_v8 = vpop.f32.mrb[71].mxu1 }
 0x63c   :  { %v7033_v62 = vadd.f32 %v7032_v61, %v7031_v24  ;;  %v7034_v63 = vpop.f32.mrb[10].mxu0 }
 0x63d   :  { %v7035_v0 = vpop.f32.mrb[11].mxu0 }
 0x63e   :  { %v6100_v38 = vadd.f32 %v7033_v62, %v6060_v40 }
 0x640   :  { %v6140_v28 = vadd.f32 %v7055_v11, %v6100_v38 }
 0x678   :  { %v7097_v2 = vpop.f32.mrb[72].mxu1 }
 0x679   :  { %v7098_v1 = vpop.f32.mrb[73].mxu1 }
 0x67a   :  { %v7099_v42 = vadd.f32 %v7098_v1, %v7097_v2  ;;  %v7075_v43 = vpop.f32.mrb[12].mxu0  ;;  %v7100_v3 = vpop.f32.mrb[74].mxu1 }
 0x67b   :  { %v7076_v29 = vpop.f32.mrb[13].mxu0  ;;  %v7101_v10 = vpop.f32.mrb[75].mxu1 }
 0x67c   :  { %v7077_v18 = vadd.f32 %v7076_v29, %v7075_v43  ;;  %v7078_v5 = vpop.f32.mrb[14].mxu0 }
 0x67d   :  { %v7079_v14 = vpop.f32.mrb[15].mxu0 }
 0x67e   :  { %v6180_v21 = vadd.f32 %v7077_v18, %v6140_v28 }
 0x680   :  { %v6220_v7 = vadd.f32 %v7099_v42, %v6180_v21 }
 0x6b8   :  { %v7141_v45 = vpop.f32.mrb[76].mxu1 }
 0x6b9   :  { %v7142_v25 = vpop.f32.mrb[77].mxu1 }
 0x6ba   :  { %v7143_v36 = vadd.f32 %v7142_v25, %v7141_v45  ;;  %v7119_v30 = vpop.f32.mrb[16].mxu0  ;;  %v7144_v15 = vpop.f32.mrb[78].mxu1 }
 0x6bb   :  { %v7120_v46 = vpop.f32.mrb[17].mxu0  ;;  %v7145_v53 = vpop.f32.mrb[79].mxu1 }
 0x6bc   :  { %v7121_v48 = vadd.f32 %v7120_v46, %v7119_v30  ;;  %v7122_v27 = vpop.f32.mrb[18].mxu0 }
 0x6bd   :  { %v7123_v35 = vpop.f32.mrb[19].mxu0 }
 0x6be   :  { %v6260_v31 = vadd.f32 %v7121_v48, %v6220_v7 }
 0x6c0   :  { %v6300_v32 = vadd.f32 %v7143_v36, %v6260_v31 }
 0x6c2   :  { %v6306_v33 = vrot.slane %v6300_v32, 2 }
 0x6c4   :  { %6307 = vrot.lane.b32.xlu0 %v6306_v33, %s7908_s8 }
 0x736   :  { %v6308_v37 = vpop.permute.xlu0 %6307 }
 0x737   :  { %v6311_v39 = vsel %vm6310_vm1, %v6300_v32, %v6308_v37 }
 0x738   :  { %6313 = vst.msk [vmem:[#allocation7] sm:$0x3] %vm6312_vm2, %v6311_v39 }
 0x739   :  { %7889 = shalt.err (!%p7886_p6)
}
 0x73a   :  { %s7890_s29 = scalar_lea.hbm %s9147_s6, 32 }
 0x73b   :  { %p7891_p7 = scmp.ne.s32.totalorder %s9147_s6, %s7890_s29  ;;  %p7894_p8 = scmp.lt.u32.totalorder %s7890_s29, %s9147_s6 }
 0x73d   :  { %p7896_p9 = pnand %p7894_p8, %p7891_p7 }
 0x73f   :  { %7899 = shalt.err (!%p7896_p9)
}
 0x740   :  { %6323 = dma.vmem_to_hbm [thread:$0]  %s6321_s25, 32, %s9147_s6, [#allocation4]  }
 0x741   :  { %7904 = dma.done.wait [#allocation4], 32  }
 0x742   :  { %7905 = vsyncadd [#allocation4], 4294967264 }
 0x743   :  { %6327 = vsyncpa [#allocation3], 1 }
 0x744   :  { %6328 = vsyncpa [#allocation6], 1 }
 0x745   :  { %6329 = vsyncpa [#allocation4], 1 }

</bundles_post_ra>
